<compile_context>
chip_gen: v7x
topology: tpu7x:2x2x1
jax: 0.10.0
libtpu: 0.0.40
codegen_flags: <defaults>
</compile_context>

<pallas_src>
import functools

import jax
import jax.numpy as jnp
from jax import lax
from jax.experimental import pallas as pl
from jax.experimental.pallas import tpu as pltpu

EPS = 1e-5
VMEM_BUDGET = 48 * 1024 * 1024  # safe on v5e/v6e (128 MiB phys) and v7x (64 MiB phys)


def _round_up(x, m):
    return (x + m - 1) // m * m


# ==========================================================================
# Fused single-call encoder (small graphs: everything resident in VMEM)
# ==========================================================================
def fused_encoder_kernel(a_ref, invdeg_ref, x_ref,
                         wl1_ref, wr1_ref, b1_ref, g1_ref, be1_ref,
                         wl2_ref, wr2_ref, b2_ref, g2_ref, be2_ref,
                         out_ref, *, n_real):
    a = a_ref[...]                                 # (Np, Np) bf16 edge counts (exact)
    invd = invdeg_ref[...]                         # (Np, 1)  f32  1/max(deg,1)
    n_p = a.shape[0]

    rows = lax.broadcasted_iota(jnp.int32, (n_p, 1), 0)
    valid = (rows < n_real).astype(jnp.float32)    # mask out padded rows for BN stats
    inv_n = 1.0 / float(n_real)

    def sage_layer(z_bf16, wl, wr, b):
        # P = Z @ Wl ; S = Z @ Wr + b ; h = (A_counts @ P) * inv_deg + S
        p = jnp.dot(z_bf16, wl, preferred_element_type=jnp.float32)
        s = jnp.dot(z_bf16, wr, preferred_element_type=jnp.float32) + b
        agg = jnp.dot(a, p.astype(jnp.bfloat16), preferred_element_type=jnp.float32)
        return agg * invd + s

    def batchnorm(h, gamma, beta):
        # Centered two-pass batch statistics in f32 (numerically safe).
        hm = h * valid
        mu = jnp.sum(hm, axis=0, keepdims=True) * inv_n
        d = (h - mu) * valid
        var = jnp.sum(d * d, axis=0, keepdims=True) * inv_n
        inv = lax.rsqrt(var + EPS)
        return (h - mu) * (inv * gamma) + beta

    xb = x_ref[...].astype(jnp.bfloat16)
    h1 = sage_layer(xb, wl1_ref[...], wr1_ref[...], b1_ref[...])
    z1 = jnp.maximum(batchnorm(h1, g1_ref[...], be1_ref[...]), 0.0)
    h2 = sage_layer(z1.astype(jnp.bfloat16), wl2_ref[...], wr2_ref[...], b2_ref[...])
    out_ref[...] = batchnorm(h2, g2_ref[...], be2_ref[...])


def _fused_forward(a_p, inv_deg, x_p, wparams, *, n_real, out_dim):
    n_p = a_p.shape[0]
    kern = functools.partial(fused_encoder_kernel, n_real=n_real)
    return pl.pallas_call(
        kern,
        out_shape=jax.ShapeDtypeStruct((n_p, out_dim), jnp.float32),
        compiler_params=pltpu.CompilerParams(vmem_limit_bytes=VMEM_BUDGET),
    )(a_p, inv_deg, x_p, *wparams)


# ==========================================================================
# Tiled fallback path (large graphs)
# ==========================================================================
def _const2(i):
    return (0, 0)


def _row(i):
    return (i, 0)


# --- per-node projections:  P = Z @ Wl (bf16),  S = Z @ Wr + b (f32) -------
def proj_kernel(z_ref, wl_ref, wr_ref, b_ref, p_ref, s_ref):
    zb = z_ref[...].astype(jnp.bfloat16)
    p = jnp.dot(zb, wl_ref[...], preferred_element_type=jnp.float32)
    s = jnp.dot(zb, wr_ref[...], preferred_element_type=jnp.float32) + b_ref[...]
    p_ref[...] = p.astype(jnp.bfloat16)
    s_ref[...] = s


# --- BN(scale/shift) + ReLU fused with next layer's projections ------------
def bn_relu_proj_kernel(h_ref, sc_ref, sh_ref, wl_ref, wr_ref, b_ref, p_ref, s_ref):
    z = jnp.maximum(h_ref[...] * sc_ref[...] + sh_ref[...], 0.0)
    zb = z.astype(jnp.bfloat16)
    p = jnp.dot(zb, wl_ref[...], preferred_element_type=jnp.float32)
    s = jnp.dot(zb, wr_ref[...], preferred_element_type=jnp.float32) + b_ref[...]
    p_ref[...] = p.astype(jnp.bfloat16)
    s_ref[...] = s


# --- final BN (scale/shift only) -------------------------------------------
def bn_kernel(h_ref, sc_ref, sh_ref, out_ref):
    out_ref[...] = h_ref[...] * sc_ref[...] + sh_ref[...]


# --- tiled aggregation: h[i] = (sum_k A[i,k] @ P[k]) * inv_deg[i] + S[i] ----
def agg_kernel(a_ref, p_ref, s_ref, invdeg_ref, h_ref, stats_ref, *, tile_m, n_real):
    # All grid ids hoisted out of pl.when bodies (interpret-mode safe).
    i = pl.program_id(0)
    k = pl.program_id(1)
    nk = pl.num_programs(1)

    @pl.when(k == 0)
    def _():
        h_ref[...] = jnp.zeros_like(h_ref)

    # Accumulate directly into the resident f32 output block (no scratch).
    h_ref[...] += jnp.dot(a_ref[...], p_ref[...], preferred_element_type=jnp.float32)

    @pl.when(k == nk - 1)
    def _():
        h = h_ref[...] * invdeg_ref[...] + s_ref[...]
        h_ref[...] = h
        # Masked per-row-tile BN statistics (only rows 0 and 1 are meaningful).
        row = i * tile_m + lax.broadcasted_iota(jnp.int32, h.shape, 0)
        hm = jnp.where(row < n_real, h, 0.0)
        stats_ref[0:1, :] = jnp.sum(hm, axis=0, keepdims=True)
        stats_ref[1:2, :] = jnp.sum(hm * hm, axis=0, keepdims=True)


def _proj(z, wl, wr, b, *, tile_n):
    n_p, cin = z.shape
    cout = wl.shape[1]
    return pl.pallas_call(
        proj_kernel,
        out_shape=(jax.ShapeDtypeStruct((n_p, cout), jnp.bfloat16),
                   jax.ShapeDtypeStruct((n_p, cout), jnp.float32)),
        grid=(n_p // tile_n,),
        in_specs=[pl.BlockSpec((tile_n, cin), _row),
                  pl.BlockSpec((cin, cout), _const2),
                  pl.BlockSpec((cin, cout), _const2),
                  pl.BlockSpec((1, cout), _const2)],
        out_specs=(pl.BlockSpec((tile_n, cout), _row),
                   pl.BlockSpec((tile_n, cout), _row)),
        compiler_params=pltpu.CompilerParams(dimension_semantics=("parallel",)),
    )(z, wl, wr, b)


def _bn_relu_proj(h, sc, sh, wl, wr, b, *, tile_n):
    n_p, cin = h.shape
    cout = wl.shape[1]
    return pl.pallas_call(
        bn_relu_proj_kernel,
        out_shape=(jax.ShapeDtypeStruct((n_p, cout), jnp.bfloat16),
                   jax.ShapeDtypeStruct((n_p, cout), jnp.float32)),
        grid=(n_p // tile_n,),
        in_specs=[pl.BlockSpec((tile_n, cin), _row),
                  pl.BlockSpec((1, cin), _const2),
                  pl.BlockSpec((1, cin), _const2),
                  pl.BlockSpec((cin, cout), _const2),
                  pl.BlockSpec((cin, cout), _const2),
                  pl.BlockSpec((1, cout), _const2)],
        out_specs=(pl.BlockSpec((tile_n, cout), _row),
                   pl.BlockSpec((tile_n, cout), _row)),
        compiler_params=pltpu.CompilerParams(dimension_semantics=("parallel",)),
    )(h, sc, sh, wl, wr, b)


def _bn(h, sc, sh, *, tile_n):
    n_p, c = h.shape
    return pl.pallas_call(
        bn_kernel,
        out_shape=jax.ShapeDtypeStruct((n_p, c), jnp.float32),
        grid=(n_p // tile_n,),
        in_specs=[pl.BlockSpec((tile_n, c), _row),
                  pl.BlockSpec((1, c), _const2),
                  pl.BlockSpec((1, c), _const2)],
        out_specs=pl.BlockSpec((tile_n, c), _row),
        compiler_params=pltpu.CompilerParams(dimension_semantics=("parallel",)),
    )(h, sc, sh)


def _agg(a, p, s, inv_deg, *, n_real, tile_m, tile_k):
    n_p = a.shape[0]
    cout = p.shape[1]
    nrt = n_p // tile_m
    nkt = n_p // tile_k
    kern = functools.partial(agg_kernel, tile_m=tile_m, n_real=n_real)
    return pl.pallas_call(
        kern,
        out_shape=(jax.ShapeDtypeStruct((n_p, cout), jnp.float32),
                   jax.ShapeDtypeStruct((nrt * 8, cout), jnp.float32)),
        grid=(nrt, nkt),
        in_specs=[pl.BlockSpec((tile_m, tile_k), lambda i, k: (i, k)),
                  pl.BlockSpec((tile_k, cout), lambda i, k: (k, 0)),
                  pl.BlockSpec((tile_m, cout), lambda i, k: (i, 0)),
                  pl.BlockSpec((tile_m, 1), lambda i, k: (i, 0))],
        out_specs=(pl.BlockSpec((tile_m, cout), lambda i, k: (i, 0)),
                   pl.BlockSpec((8, cout), lambda i, k: (i, 0))),
        compiler_params=pltpu.CompilerParams(
            dimension_semantics=("parallel", "arbitrary"),
            vmem_limit_bytes=VMEM_BUDGET),
    )(a, p, s, inv_deg)


def _bn_scale_shift(stats, gamma, beta, n_real):
    """Reduce per-row-tile (sum, sum_sq) -> fused BN (scale, shift) vectors (f32)."""
    c = stats.shape[-1]
    st = stats.reshape(-1, 8, c)
    ssum = jnp.sum(st[:, 0, :], axis=0)
    ssq = jnp.sum(st[:, 1, :], axis=0)
    mu = ssum / n_real
    var = jnp.maximum(ssq / n_real - mu * mu, 0.0)
    inv = lax.rsqrt(var + EPS)
    scale = gamma[0] * inv
    shift = beta[0] - mu * scale
    return scale[None, :], shift[None, :]


# ==========================================================================
# Forward pass
# ==========================================================================
def encoder_forward(x, edge_index, params, *, hidden, out_ch, fused_max_np=2048):
    """x: [N, F] float32, edge_index: [2, E] int32."""
    n, f = x.shape
    (wl1, wr1, b1, g1, be1, wl2, wr2, b2, g2, be2) = params

    f_p = _round_up(f, 128)
    h_p = _round_up(hidden, 128)
    o_p = _round_up(out_ch, 128)

    use_fused = n <= fused_max_np
    if use_fused:
        n_p = _round_up(max(n, 128), 128)
        tile_m, tile_k, tile_n = None, None, None
    else:
        tile_m, tile_k, tile_n = 256, 1024, 512
        n_p = _round_up(n, tile_k)

    src = edge_index[0]
    dst = edge_index[1]

    # Adjacency: exact bf16 edge counts, built directly at padded size (1 scatter).
    ones_bf16 = jnp.ones(src.shape, jnp.bfloat16)
    a_p = jnp.zeros((n_p, n_p), jnp.bfloat16).at[dst, src].add(ones_bf16)
    # In-degree via a length-E scatter (no dense row-sum); 1/deg folded into finalize.
    deg = jnp.zeros((n_p,), jnp.float32).at[dst].add(1.0)
    inv_deg = (1.0 / jnp.maximum(deg, 1.0))[:, None]           # (n_p, 1) f32

    x_p = jnp.zeros((n_p, f_p), jnp.float32).at[:n, :f].set(x)

    def pad2(w, r, c, dtype):
        out = jnp.zeros((r, c), jnp.float32).at[:w.shape[0], :w.shape[1]].set(w)
        return out.astype(dtype)

    wl1p = pad2(wl1, f_p, h_p, jnp.bfloat16)
    wr1p = pad2(wr1, f_p, h_p, jnp.bfloat16)
    b1p = pad2(b1, 1, h_p, jnp.float32)
    g1p = pad2(g1, 1, h_p, jnp.float32)
    be1p = pad2(be1, 1, h_p, jnp.float32)
    wl2p = pad2(wl2, h_p, o_p, jnp.bfloat16)
    wr2p = pad2(wr2, h_p, o_p, jnp.bfloat16)
    b2p = pad2(b2, 1, o_p, jnp.float32)
    g2p = pad2(g2, 1, o_p, jnp.float32)
    be2p = pad2(be2, 1, o_p, jnp.float32)

    if use_fused:
        wparams = (wl1p, wr1p, b1p, g1p, be1p, wl2p, wr2p, b2p, g2p, be2p)
        out_p = _fused_forward(a_p, inv_deg, x_p, wparams, n_real=n, out_dim=o_p)
        return out_p[:n, :out_ch]

    # ---- tiled path (large graphs) ----
    p1, s1 = _proj(x_p, wl1p, wr1p, b1p, tile_n=tile_n)
    h1, stats1 = _agg(a_p, p1, s1, inv_deg, n_real=n, tile_m=tile_m, tile_k=tile_k)
    sc1, sh1 = _bn_scale_shift(stats1, g1p, be1p, n)

    p2, s2 = _bn_relu_proj(h1, sc1, sh1, wl2p, wr2p, b2p, tile_n=tile_n)
    h2, stats2 = _agg(a_p, p2, s2, inv_deg, n_real=n, tile_m=tile_m, tile_k=tile_k)
    sc2, sh2 = _bn_scale_shift(stats2, g2p, be2p, n)

    out_p = _bn(h2, sc2, sh2, tile_n=tile_n)
    return out_p[:n, :out_ch]


def init_params(key, in_feat, hidden, out_ch):
    ks = jax.random.split(key, 6)
    s1 = 1.0 / jnp.sqrt(jnp.float32(in_feat))
    s2 = 1.0 / jnp.sqrt(jnp.float32(hidden))
    wl1 = jax.random.uniform(ks[0], (in_feat, hidden), jnp.float32, -s1, s1)
    wr1 = jax.random.uniform(ks[1], (in_feat, hidden), jnp.float32, -s1, s1)
    b1 = jax.random.uniform(ks[2], (1, hidden), jnp.float32, -s1, s1)
    g1 = jnp.ones((1, hidden), jnp.float32)
    be1 = jnp.zeros((1, hidden), jnp.float32)
    wl2 = jax.random.uniform(ks[3], (hidden, out_ch), jnp.float32, -s2, s2)
    wr2 = jax.random.uniform(ks[4], (hidden, out_ch), jnp.float32, -s2, s2)
    b2 = jax.random.uniform(ks[5], (1, out_ch), jnp.float32, -s2, s2)
    g2 = jnp.ones((1, out_ch), jnp.float32)
    be2 = jnp.zeros((1, out_ch), jnp.float32)
    return (wl1, wr1, b1, g1, be1, wl2, wr2, b2, g2, be2)


if __name__ == "__main__":
    key = jax.random.PRNGKey(0)
    k_x, k_e, k_p = jax.random.split(key, 3)

    N, F, HIDDEN, OUT, E = 500, 12, 32, 16, 3000

    x = jax.random.normal(k_x, (N, F), jnp.float32)
    edge_index = jax.random.randint(k_e, (2, E), 0, N, jnp.int32)
    params = init_params(k_p, F, HIDDEN, OUT)

    fwd = jax.jit(functools.partial(encoder_forward, hidden=HIDDEN, out_ch=OUT))
    out = fwd(x, edge_index, params)
    out = jax.block_until_ready(out)

    assert out.shape == (N, OUT)
    assert bool(jnp.all(jnp.isfinite(out)))
    print("KERNEL_OK")
</pallas_src>

<mosaic_0001>
module attributes {stable_mosaic.version = 11 : i64} {
  func.func @fused_encoder_kernel(%arg0: memref<512x512xbf16, #tpu.memory_space<vmem>>, %arg1: memref<512x1xf32, #tpu.memory_space<vmem>>, %arg2: memref<512x128xf32, #tpu.memory_space<vmem>>, %arg3: memref<128x128xbf16, #tpu.memory_space<vmem>>, %arg4: memref<128x128xbf16, #tpu.memory_space<vmem>>, %arg5: memref<1x128xf32, #tpu.memory_space<vmem>>, %arg6: memref<1x128xf32, #tpu.memory_space<vmem>>, %arg7: memref<1x128xf32, #tpu.memory_space<vmem>>, %arg8: memref<128x128xbf16, #tpu.memory_space<vmem>>, %arg9: memref<128x128xbf16, #tpu.memory_space<vmem>>, %arg10: memref<1x128xf32, #tpu.memory_space<vmem>>, %arg11: memref<1x128xf32, #tpu.memory_space<vmem>>, %arg12: memref<1x128xf32, #tpu.memory_space<vmem>>, %arg13: memref<512x128xf32, #tpu.memory_space<vmem>>) attributes {dimension_semantics = [], scalar_prefetch = 0 : i64, scratch_operands = 0 : i64, tpu.core_type = #tpu.core_type<tc>} {
    %c0 = arith.constant 0 : index
    %c0_0 = arith.constant 0 : index
    %0 = vector.load %arg0[%c0, %c0_0] : memref<512x512xbf16, #tpu.memory_space<vmem>>, vector<512x512xbf16>
    %c0_1 = arith.constant 0 : index
    %c0_2 = arith.constant 0 : index
    %1 = vector.load %arg1[%c0_1, %c0_2] : memref<512x1xf32, #tpu.memory_space<vmem>>, vector<512x1xf32>
    %2 = tpu.iota {dimensions = array<i32: 0>} : vector<512x1xi32>
    %c500_i32 = arith.constant 500 : i32
    %3 = vector.broadcast %c500_i32 : i32 to vector<512x1xi32>
    %4 = arith.cmpi slt, %2, %3 : vector<512x1xi32>
    %5 = arith.extui %4 : vector<512x1xi1> to vector<512x1xi32>
    %6 = arith.sitofp %5 : vector<512x1xi32> to vector<512x1xf32>
    %c0_3 = arith.constant 0 : index
    %c0_4 = arith.constant 0 : index
    %7 = vector.load %arg2[%c0_3, %c0_4] : memref<512x128xf32, #tpu.memory_space<vmem>>, vector<512x128xf32>
    %8 = arith.truncf %7 : vector<512x128xf32> to vector<512x128xbf16>
    %c0_5 = arith.constant 0 : index
    %c0_6 = arith.constant 0 : index
    %9 = vector.load %arg3[%c0_5, %c0_6] : memref<128x128xbf16, #tpu.memory_space<vmem>>, vector<128x128xbf16>
    %c0_7 = arith.constant 0 : index
    %c0_8 = arith.constant 0 : index
    %10 = vector.load %arg4[%c0_7, %c0_8] : memref<128x128xbf16, #tpu.memory_space<vmem>>, vector<128x128xbf16>
    %c0_9 = arith.constant 0 : index
    %c0_10 = arith.constant 0 : index
    %11 = vector.load %arg5[%c0_9, %c0_10] : memref<1x128xf32, #tpu.memory_space<vmem>>, vector<1x128xf32>
    %cst = arith.constant dense<0.000000e+00> : vector<512x128xf32>
    %12 = tpu.matmul %8, %9, %cst {dimension_numbers = #tpu.dot_dimension_numbers<[1], [0], [0], [1], [0, 0, 1, 1], [], []>} : vector<512x128xbf16>, vector<128x128xbf16>, vector<512x128xf32> -> vector<512x128xf32>
    %cst_11 = arith.constant dense<0.000000e+00> : vector<512x128xf32>
    %13 = tpu.matmul %8, %10, %cst_11 {dimension_numbers = #tpu.dot_dimension_numbers<[1], [0], [0], [1], [0, 0, 1, 1], [], []>} : vector<512x128xbf16>, vector<128x128xbf16>, vector<512x128xf32> -> vector<512x128xf32>
    %14 = vector.broadcast %11 : vector<1x128xf32> to vector<512x128xf32>
    %15 = arith.addf %13, %14 : vector<512x128xf32>
    %16 = arith.truncf %12 : vector<512x128xf32> to vector<512x128xbf16>
    %cst_12 = arith.constant dense<0.000000e+00> : vector<512x128xf32>
    %17 = tpu.matmul %0, %16, %cst_12 {dimension_numbers = #tpu.dot_dimension_numbers<[1], [0], [0], [1], [0, 0, 1, 1], [], []>} : vector<512x512xbf16>, vector<512x128xbf16>, vector<512x128xf32> -> vector<512x128xf32>
    %18 = vector.broadcast %1 : vector<512x1xf32> to vector<512x128xf32>
    %19 = arith.mulf %17, %18 : vector<512x128xf32>
    %20 = arith.addf %19, %15 : vector<512x128xf32>
    %c0_13 = arith.constant 0 : index
    %c0_14 = arith.constant 0 : index
    %21 = vector.load %arg6[%c0_13, %c0_14] : memref<1x128xf32, #tpu.memory_space<vmem>>, vector<1x128xf32>
    %c0_15 = arith.constant 0 : index
    %c0_16 = arith.constant 0 : index
    %22 = vector.load %arg7[%c0_15, %c0_16] : memref<1x128xf32, #tpu.memory_space<vmem>>, vector<1x128xf32>
    %23 = vector.broadcast %6 : vector<512x1xf32> to vector<512x128xf32>
    %24 = arith.mulf %20, %23 : vector<512x128xf32>
    %cst_17 = arith.constant dense<0.000000e+00> : vector<128xf32>
    %25 = vector.multi_reduction <add>, %24, %cst_17 [0] : vector<512x128xf32> to vector<128xf32>
    %26 = vector.shape_cast %25 : vector<128xf32> to vector<1x128xf32>
    %cst_18 = arith.constant 2.000000e-03 : f32
    %27 = vector.broadcast %cst_18 : f32 to vector<1x128xf32>
    %28 = arith.mulf %26, %27 : vector<1x128xf32>
    %29 = vector.broadcast %28 : vector<1x128xf32> to vector<512x128xf32>
    %30 = arith.subf %20, %29 : vector<512x128xf32>
    %31 = vector.broadcast %6 : vector<512x1xf32> to vector<512x128xf32>
    %32 = arith.mulf %30, %31 : vector<512x128xf32>
    %33 = arith.mulf %32, %32 : vector<512x128xf32>
    %cst_19 = arith.constant dense<0.000000e+00> : vector<128xf32>
    %34 = vector.multi_reduction <add>, %33, %cst_19 [0] : vector<512x128xf32> to vector<128xf32>
    %35 = vector.shape_cast %34 : vector<128xf32> to vector<1x128xf32>
    %cst_20 = arith.constant 2.000000e-03 : f32
    %36 = vector.broadcast %cst_20 : f32 to vector<1x128xf32>
    %37 = arith.mulf %35, %36 : vector<1x128xf32>
    %cst_21 = arith.constant 9.99999974E-6 : f32
    %38 = vector.broadcast %cst_21 : f32 to vector<1x128xf32>
    %39 = arith.addf %37, %38 : vector<1x128xf32>
    %40 = math.rsqrt %39 : vector<1x128xf32>
    %41 = vector.broadcast %28 : vector<1x128xf32> to vector<512x128xf32>
    %42 = arith.subf %20, %41 : vector<512x128xf32>
    %43 = arith.mulf %40, %21 : vector<1x128xf32>
    %44 = vector.broadcast %43 : vector<1x128xf32> to vector<512x128xf32>
    %45 = arith.mulf %42, %44 : vector<512x128xf32>
    %46 = vector.broadcast %22 : vector<1x128xf32> to vector<512x128xf32>
    %47 = arith.addf %45, %46 : vector<512x128xf32>
    %cst_22 = arith.constant 0.000000e+00 : f32
    %48 = vector.broadcast %cst_22 : f32 to vector<512x128xf32>
    %49 = arith.maximumf %47, %48 : vector<512x128xf32>
    %50 = arith.truncf %49 : vector<512x128xf32> to vector<512x128xbf16>
    %c0_23 = arith.constant 0 : index
    %c0_24 = arith.constant 0 : index
    %51 = vector.load %arg8[%c0_23, %c0_24] : memref<128x128xbf16, #tpu.memory_space<vmem>>, vector<128x128xbf16>
    %c0_25 = arith.constant 0 : index
    %c0_26 = arith.constant 0 : index
    %52 = vector.load %arg9[%c0_25, %c0_26] : memref<128x128xbf16, #tpu.memory_space<vmem>>, vector<128x128xbf16>
    %c0_27 = arith.constant 0 : index
    %c0_28 = arith.constant 0 : index
    %53 = vector.load %arg10[%c0_27, %c0_28] : memref<1x128xf32, #tpu.memory_space<vmem>>, vector<1x128xf32>
    %cst_29 = arith.constant dense<0.000000e+00> : vector<512x128xf32>
    %54 = tpu.matmul %50, %51, %cst_29 {dimension_numbers = #tpu.dot_dimension_numbers<[1], [0], [0], [1], [0, 0, 1, 1], [], []>} : vector<512x128xbf16>, vector<128x128xbf16>, vector<512x128xf32> -> vector<512x128xf32>
    %cst_30 = arith.constant dense<0.000000e+00> : vector<512x128xf32>
    %55 = tpu.matmul %50, %52, %cst_30 {dimension_numbers = #tpu.dot_dimension_numbers<[1], [0], [0], [1], [0, 0, 1, 1], [], []>} : vector<512x128xbf16>, vector<128x128xbf16>, vector<512x128xf32> -> vector<512x128xf32>
    %56 = vector.broadcast %53 : vector<1x128xf32> to vector<512x128xf32>
    %57 = arith.addf %55, %56 : vector<512x128xf32>
    %58 = arith.truncf %54 : vector<512x128xf32> to vector<512x128xbf16>
    %cst_31 = arith.constant dense<0.000000e+00> : vector<512x128xf32>
    %59 = tpu.matmul %0, %58, %cst_31 {dimension_numbers = #tpu.dot_dimension_numbers<[1], [0], [0], [1], [0, 0, 1, 1], [], []>} : vector<512x512xbf16>, vector<512x128xbf16>, vector<512x128xf32> -> vector<512x128xf32>
    %60 = vector.broadcast %1 : vector<512x1xf32> to vector<512x128xf32>
    %61 = arith.mulf %59, %60 : vector<512x128xf32>
    %62 = arith.addf %61, %57 : vector<512x128xf32>
    %c0_32 = arith.constant 0 : index
    %c0_33 = arith.constant 0 : index
    %63 = vector.load %arg11[%c0_32, %c0_33] : memref<1x128xf32, #tpu.memory_space<vmem>>, vector<1x128xf32>
    %c0_34 = arith.constant 0 : index
    %c0_35 = arith.constant 0 : index
    %64 = vector.load %arg12[%c0_34, %c0_35] : memref<1x128xf32, #tpu.memory_space<vmem>>, vector<1x128xf32>
    %65 = vector.broadcast %6 : vector<512x1xf32> to vector<512x128xf32>
    %66 = arith.mulf %62, %65 : vector<512x128xf32>
    %cst_36 = arith.constant dense<0.000000e+00> : vector<128xf32>
    %67 = vector.multi_reduction <add>, %66, %cst_36 [0] : vector<512x128xf32> to vector<128xf32>
    %68 = vector.shape_cast %67 : vector<128xf32> to vector<1x128xf32>
    %cst_37 = arith.constant 2.000000e-03 : f32
    %69 = vector.broadcast %cst_37 : f32 to vector<1x128xf32>
    %70 = arith.mulf %68, %69 : vector<1x128xf32>
    %71 = vector.broadcast %70 : vector<1x128xf32> to vector<512x128xf32>
    %72 = arith.subf %62, %71 : vector<512x128xf32>
    %73 = vector.broadcast %6 : vector<512x1xf32> to vector<512x128xf32>
    %74 = arith.mulf %72, %73 : vector<512x128xf32>
    %75 = arith.mulf %74, %74 : vector<512x128xf32>
    %cst_38 = arith.constant dense<0.000000e+00> : vector<128xf32>
    %76 = vector.multi_reduction <add>, %75, %cst_38 [0] : vector<512x128xf32> to vector<128xf32>
    %77 = vector.shape_cast %76 : vector<128xf32> to vector<1x128xf32>
    %cst_39 = arith.constant 2.000000e-03 : f32
    %78 = vector.broadcast %cst_39 : f32 to vector<1x128xf32>
    %79 = arith.mulf %77, %78 : vector<1x128xf32>
    %cst_40 = arith.constant 9.99999974E-6 : f32
    %80 = vector.broadcast %cst_40 : f32 to vector<1x128xf32>
    %81 = arith.addf %79, %80 : vector<1x128xf32>
    %82 = math.rsqrt %81 : vector<1x128xf32>
    %83 = vector.broadcast %70 : vector<1x128xf32> to vector<512x128xf32>
    %84 = arith.subf %62, %83 : vector<512x128xf32>
    %85 = arith.mulf %82, %63 : vector<1x128xf32>
    %86 = vector.broadcast %85 : vector<1x128xf32> to vector<512x128xf32>
    %87 = arith.mulf %84, %86 : vector<512x128xf32>
    %88 = vector.broadcast %64 : vector<1x128xf32> to vector<512x128xf32>
    %89 = arith.addf %87, %88 : vector<512x128xf32>
    %c0_41 = arith.constant 0 : index
    %c0_42 = arith.constant 0 : index
    %90 = vector.load %arg13[%c0_41, %c0_42] : memref<512x128xf32, #tpu.memory_space<vmem>>, vector<512x128xf32>
    tpu.vector_store %arg13[%c0_41, %c0_42], %89 {strides = array<i32>} : memref<512x128xf32, #tpu.memory_space<vmem>>, vector<512x128xf32>,
    return
  }
}

</mosaic_0001>

<bundles_post_ra>
// kernel: encoder_forward.1
= control target key start
LH: loop header
LB: loop body
LE: loop exit
PB: predicated region body
PF: predicated region fallthrough
CT: control target
= control target key end

     0   :  { %s11402_s3 = inlined_call_operand.vmem [shape: bf16[128,128], index: 3, kind: input, shape index: {}]   ;;  %s11403_s2 = inlined_call_operand.vmem [shape: f32[512,128], index: 2, kind: input, shape index: {}]   ;;  %s11404_s4 = inlined_call_operand.vmem [shape: bf16[128,128], index: 4, kind: input, shape index: {}]   ;;  %s11405_s0 = inlined_call_operand.vmem [shape: bf16[512,512], index: 0, kind: input, shape index: {}]   ;;  %s11406_s1 = inlined_call_operand.vmem [shape: f32[512,1], index: 1, kind: input, shape index: {}]   ;;  %s11407_s5 = inlined_call_operand.vmem [shape: f32[1,128], index: 5, kind: input, shape index: {}]   ;;  %s11408_s8 = inlined_call_operand.vmem [shape: bf16[128,128], index: 8, kind: input, shape index: {}]   ;;  %s11409_s9 = inlined_call_operand.vmem [shape: bf16[128,128], index: 9, kind: input, shape index: {}]   ;;  %s11410_s6 = inlined_call_operand.vmem [shape: f32[1,128], index: 6, kind: input, shape index: {}]   ;;  %s11411_s7 = inlined_call_operand.vmem [shape: f32[1,128], index: 7, kind: input, shape index: {}]   ;;  %s11412_s10 = inlined_call_operand.vmem [shape: f32[1,128], index: 10, kind: input, shape index: {}]   ;;  %s11413_s11 = inlined_call_operand.vmem [shape: f32[1,128], index: 11, kind: input, shape index: {}]   ;;  %s11414_s12 = inlined_call_operand.vmem [shape: f32[1,128], index: 12, kind: input, shape index: {}]   ;;  %s11415_s13 = inlined_call_operand.vmem [shape: f32[512,128], index: 13, kind: output, shape index: {}]  }
   0x1   :  { %v6599_v0 = vld [vmem:[%s11402_s3] sm:$0xff]   ;;  %v6600_v1 = vld [vmem:[%s11402_s3 + $0x8] sm:$0xff]   ;;  %v6601_v2 = vld [vmem:[%s11402_s3 + $0x10] sm:$0xff]  }
   0x2   :  { %6019 = vmatprep.subr.bf16.mxu0 %v6599_v0  ;;  %v6602_v3 = vld [vmem:[%s11402_s3 + $0x18] sm:$0xff]   ;;  %v494_v4 = vld [vmem:[%s11403_s2] sm:$0xff]  ;;  %v495_v5 = vld [vmem:[%s11403_s2 + $0x8] sm:$0xff] }
   0x3   :  { %6020 = vmatpush3.bf16.msra.mxu0 %v6599_v0  ;;  %v7045_v6 = vpack.c.bf16 %v495_v5, %v494_v4  ;;  %v6603_v7 = vld [vmem:[%s11402_s3 + $0x20] sm:$0xff]   ;;  %v6604_v8 = vld [vmem:[%s11402_s3 + $0x28] sm:$0xff]   ;;  %v6605_v9 = vld [vmem:[%s11402_s3 + $0x30] sm:$0xff]  }
   0x4   :  { %6021 = vmatprep.subr.bf16.mxu0 %v6600_v1  ;;  %v6606_v10 = vld [vmem:[%s11402_s3 + $0x38] sm:$0xff]   ;;  %v496_v11 = vld [vmem:[%s11403_s2 + $0x10] sm:$0xff]  ;;  %v498_v13 = vld [vmem:[%s11403_s2 + $0x20] sm:$0xff] }
   0x5   :  { %6035 = vmatprep.mubr.bf16.mxu0 %v7045_v6  ;;  %v497_v12 = vld [vmem:[%s11403_s2 + $0x18] sm:$0xff]  ;;  %v499_v14 = vld [vmem:[%s11403_s2 + $0x28] sm:$0xff]  ;;  %v6607_v15 = vld [vmem:[%s11404_s4] sm:$0xff]  }
   0x6   :  { %v7075_v16 = vpack.c.bf16 %v497_v12, %v496_v11  ;;  %v7077_v17 = vpack.c.bf16 %v499_v14, %v498_v13  ;;  %v6608_v18 = vld [vmem:[%s11404_s4 + $0x8] sm:$0xff]   ;;  %v500_v19 = vld [vmem:[%s11403_s2 + $0x30] sm:$0xff]  ;;  %v501_v20 = vld [vmem:[%s11403_s2 + $0x38] sm:$0xff] }
   0x7   :  { %6022 = vmatpush3.bf16.msra.mxu0 %v6600_v1  ;;  %v502_v21 = vld [vmem:[%s11403_s2 + $0x40] sm:$0xff]  ;;  %v503_v22 = vld [vmem:[%s11403_s2 + $0x48] sm:$0xff]  ;;  %v6609_v23 = vld [vmem:[%s11404_s4 + $0x10] sm:$0xff]   ;;  %v7099_v24 = vpack.c.bf16 %v501_v20, %v500_v19 }
   0x8   :  { %6023 = vmatprep.subr.bf16.mxu0 %v6601_v2  ;;  %v7101_v25 = vpack.c.bf16 %v503_v22, %v502_v21  ;;  %v6610_v26 = vld [vmem:[%s11404_s4 + $0x18] sm:$0xff]   ;;  %v504_v27 = vld [vmem:[%s11403_s2 + $0x50] sm:$0xff]  ;;  %v506_v29 = vld [vmem:[%s11403_s2 + $0x60] sm:$0xff] }
   0x9   :  { %v505_v28 = vld [vmem:[%s11403_s2 + $0x58] sm:$0xff]  ;;  %v507_v30 = vld [vmem:[%s11403_s2 + $0x68] sm:$0xff]  ;;  %v6611_v31 = vld [vmem:[%s11404_s4 + $0x20] sm:$0xff]  }
   0xa   :  { %v7123_v32 = vpack.c.bf16 %v505_v28, %v504_v27  ;;  %v7125_v33 = vpack.c.bf16 %v507_v30, %v506_v29  ;;  %v6612_v34 = vld [vmem:[%s11404_s4 + $0x28] sm:$0xff]   ;;  %v508_v35 = vld [vmem:[%s11403_s2 + $0x70] sm:$0xff]  ;;  %v509_v36 = vld [vmem:[%s11403_s2 + $0x78] sm:$0xff] }
   0xb   :  { %6024 = vmatpush3.bf16.msra.mxu0 %v6601_v2  ;;  %v510_v37 = vld [vmem:[%s11403_s2 + $0x80] sm:$0xff]  ;;  %v511_v38 = vld [vmem:[%s11403_s2 + $0x88] sm:$0xff]  ;;  %v6613_v39 = vld [vmem:[%s11404_s4 + $0x30] sm:$0xff]   ;;  %v7147_v40 = vpack.c.bf16 %v509_v36, %v508_v35 }
   0xc   :  { %6025 = vmatprep.subr.bf16.mxu0 %v6602_v3  ;;  %v7149_v41 = vpack.c.bf16 %v511_v38, %v510_v37  ;;  %v6614_v42 = vld [vmem:[%s11404_s4 + $0x38] sm:$0xff]   ;;  %v512_v43 = vld [vmem:[%s11403_s2 + $0x90] sm:$0xff]  ;;  %v514_v45 = vld [vmem:[%s11403_s2 + $0xa0] sm:$0xff] }
   0xd   :  { %v513_v44 = vld [vmem:[%s11403_s2 + $0x98] sm:$0xff]  ;;  %v515_v46 = vld [vmem:[%s11403_s2 + $0xa8] sm:$0xff]  ;;  %v516_v49 = vld [vmem:[%s11403_s2 + $0xb0] sm:$0xff] }
   0xe   :  { %v7168_v47 = vpack.c.bf16 %v513_v44, %v512_v43  ;;  %v7170_v48 = vpack.c.bf16 %v515_v46, %v514_v45  ;;  %v517_v50 = vld [vmem:[%s11403_s2 + $0xb8] sm:$0xff]  ;;  %v518_v51 = vld [vmem:[%s11403_s2 + $0xc0] sm:$0xff]  ;;  %v519_v52 = vld [vmem:[%s11403_s2 + $0xc8] sm:$0xff] }
   0xf   :  { %6026 = vmatpush3.bf16.msra.mxu0 %v6602_v3  ;;  %v7186_v53 = vpack.c.bf16 %v517_v50, %v516_v49  ;;  %v7188_v54 = vpack.c.bf16 %v519_v52, %v518_v51  ;;  %v520_v55 = vld [vmem:[%s11403_s2 + $0xd0] sm:$0xff]  ;;  %v521_v56 = vld [vmem:[%s11403_s2 + $0xd8] sm:$0xff]  ;;  %v522_v57 = vld [vmem:[%s11403_s2 + $0xe0] sm:$0xff] }
  0x10   :  { %6027 = vmatprep.subr.bf16.mxu0 %v6603_v7  ;;  %v523_v58 = vld [vmem:[%s11403_s2 + $0xe8] sm:$0xff]  ;;  %v7204_v59 = vpack.c.bf16 %v521_v56, %v520_v55  ;;  %v524_v61 = vld [vmem:[%s11403_s2 + $0xf0] sm:$0xff]  ;;  %v525_v62 = vld [vmem:[%s11403_s2 + $0xf8] sm:$0xff] }
  0x11   :  { %v7206_v60 = vpack.c.bf16 %v523_v58, %v522_v57  ;;  %v526_v63 = vld [vmem:[%s11403_s2 + $0x100] sm:$0xff]  ;;  %v527_v0 = vld [vmem:[%s11403_s2 + $0x108] sm:$0xff]  ;;  %v7222_v1 = vpack.c.bf16 %v525_v62, %v524_v61  ;;  %v528_v3 = vld [vmem:[%s11403_s2 + $0x110] sm:$0xff] }
  0x12   :  { %v7224_v2 = vpack.c.bf16 %v527_v0, %v526_v63  ;;  %v529_v4 = vld [vmem:[%s11403_s2 + $0x118] sm:$0xff]  ;;  %v530_v5 = vld [vmem:[%s11403_s2 + $0x120] sm:$0xff]  ;;  %v535_v13 = vld [vmem:[%s11403_s2 + $0x148] sm:$0xff] }
  0x13   :  { %6028 = vmatpush3.bf16.msra.mxu0 %v6603_v7  ;;  %v531_v7 = vld [vmem:[%s11403_s2 + $0x128] sm:$0xff]  ;;  %v533_v11 = vld [vmem:[%s11403_s2 + $0x138] sm:$0xff]  ;;  %v534_v12 = vld [vmem:[%s11403_s2 + $0x140] sm:$0xff] }
  0x14   :  { %6029 = vmatprep.subr.bf16.mxu0 %v6604_v8  ;;  %v537_v19 = vld [vmem:[%s11403_s2 + $0x158] sm:$0xff]  ;;  %v538_v20 = vld [vmem:[%s11403_s2 + $0x160] sm:$0xff]  ;;  %v539_v21 = vld [vmem:[%s11403_s2 + $0x168] sm:$0xff] }
  0x15   :  { %v541_v27 = vld [vmem:[%s11403_s2 + $0x178] sm:$0xff]  ;;  %v542_v28 = vld [vmem:[%s11403_s2 + $0x180] sm:$0xff]  ;;  %v543_v29 = vld [vmem:[%s11403_s2 + $0x188] sm:$0xff] }
  0x16   :  { %v544_v35 = vld [vmem:[%s11403_s2 + $0x190] sm:$0xff]  ;;  %v545_v36 = vld [vmem:[%s11403_s2 + $0x198] sm:$0xff]  ;;  %v546_v37 = vld [vmem:[%s11403_s2 + $0x1a0] sm:$0xff] }
  0x17   :  { %6030 = vmatpush3.bf16.msra.mxu0 %v6604_v8  ;;  %v7240_v8 = vpack.c.bf16 %v529_v4, %v528_v3  ;;  %v547_v38 = vld [vmem:[%s11403_s2 + $0x1a8] sm:$0xff]  ;;  %v548_v43 = vld [vmem:[%s11403_s2 + $0x1b0] sm:$0xff]  ;;  %v549_v44 = vld [vmem:[%s11403_s2 + $0x1b8] sm:$0xff] }
  0x18   :  { %6031 = vmatprep.subr.bf16.mxu0 %v6605_v9  ;;  %v550_v45 = vld [vmem:[%s11403_s2 + $0x1c0] sm:$0xff]  ;;  %v551_v46 = vld [vmem:[%s11403_s2 + $0x1c8] sm:$0xff]  ;;  %v7333_v49 = vpack.c.bf16 %v549_v44, %v548_v43  ;;  %v552_v51 = vld [vmem:[%s11403_s2 + $0x1d0] sm:$0xff] }
  0x19   :  { %v7335_v50 = vpack.c.bf16 %v551_v46, %v550_v45  ;;  %v553_v52 = vld [vmem:[%s11403_s2 + $0x1d8] sm:$0xff]  ;;  %v554_v55 = vld [vmem:[%s11403_s2 + $0x1e0] sm:$0xff]  ;;  %v555_v56 = vld [vmem:[%s11403_s2 + $0x1e8] sm:$0xff] }
  0x1a   :  { %v7351_v57 = vpack.c.bf16 %v553_v52, %v552_v51  ;;  %v7353_v58 = vpack.c.bf16 %v555_v56, %v554_v55  ;;  %v556_v61 = vld [vmem:[%s11403_s2 + $0x1f0] sm:$0xff]  ;;  %v557_v62 = vld [vmem:[%s11403_s2 + $0x1f8] sm:$0xff] }
  0x1b   :  { %6032 = vmatpush3.bf16.msra.mxu0 %v6605_v9  ;;  %v7242_v9 = vpack.c.bf16 %v531_v7, %v530_v5  ;;  %v7363_v63 = vpack.c.bf16 %v557_v62, %v556_v61  ;;  %v6615_v45 = vld [vmem:[%s11405_s0] ss:$16 sps:$4 sm:$0xff]   ;;  %v6621_v61 = vld [vmem:[%s11405_s0 + $0x44] ss:$16 sps:$4 sm:$0xff]  }
  0x1c   :  { %6033 = vmatprep.subr.bf16.mxu0 %v6606_v10 }
  0x1f   :  { %6034 = vmatpush3.bf16.msra.mxu0 %v6606_v10  ;;  %v532_v10 = vld [vmem:[%s11403_s2 + $0x130] sm:$0xff] }
  0x20   :  { %6099 = vmatprep.subr.bf16.mxu0 %v6607_v15  ;;  %v7258_v14 = vpack.c.bf16 %v533_v11, %v532_v10 }
  0x22   :  { %6036 = vmatmul.mubr.bf16.vlgmr.msra.gmra.mrb[0].mxu0 %v7075_v16 }
  0x23   :  { %6039 = vmatprep.mubr.bf16.mxu0 %v7077_v17  ;;  %6100 = vmatpush3.bf16.msra.mxu0 %v6607_v15  ;;  %v7260_v15 = vpack.c.bf16 %v535_v13, %v534_v12  ;;  %v6617_v13 = vld [vmem:[%s11405_s0 + $0x4] ss:$16 sps:$4 sm:$0xff]  }
  0x24   :  { %6101 = vmatprep.subr.bf16.mxu0 %v6608_v18 }
  0x27   :  { %6102 = vmatpush3.bf16.msra.mxu0 %v6608_v18  ;;  %v536_v18 = vld [vmem:[%s11403_s2 + $0x150] sm:$0xff] }
  0x28   :  { %6103 = vmatprep.subr.bf16.mxu0 %v6609_v23  ;;  %v7276_v22 = vpack.c.bf16 %v537_v19, %v536_v18 }
  0x2a   :  { %6040 = vmatmul.mubr.bf16.gmra.mrb[4].mxu0 %v7099_v24 }
  0x2b   :  { %6043 = vmatprep.mubr.bf16.mxu0 %v7101_v25  ;;  %6104 = vmatpush3.bf16.msra.mxu0 %v6609_v23  ;;  %v7278_v23 = vpack.c.bf16 %v539_v21, %v538_v20 }
  0x2c   :  { %6105 = vmatprep.subr.bf16.mxu0 %v6610_v26 }
  0x2f   :  { %6106 = vmatpush3.bf16.msra.mxu0 %v6610_v26  ;;  %v540_v26 = vld [vmem:[%s11403_s2 + $0x170] sm:$0xff] }
  0x30   :  { %6107 = vmatprep.subr.bf16.mxu0 %v6611_v31  ;;  %v7294_v30 = vpack.c.bf16 %v541_v27, %v540_v26 }
  0x32   :  { %6044 = vmatmul.mubr.bf16.gmra.mrb[8].mxu0 %v7123_v32 }
  0x33   :  { %6047 = vmatprep.mubr.bf16.mxu0 %v7125_v33  ;;  %6108 = vmatpush3.bf16.msra.mxu0 %v6611_v31  ;;  %v7296_v31 = vpack.c.bf16 %v543_v29, %v542_v28 }
  0x34   :  { %6109 = vmatprep.subr.bf16.mxu0 %v6612_v34 }
  0x37   :  { %6110 = vmatpush3.bf16.msra.mxu0 %v6612_v34  ;;  %v11416_v34 = vmov 0  }
  0x38   :  { %6111 = vmatprep.subr.bf16.mxu0 %v6613_v39  ;;  %6597 = vset.pattern.permute.xlu0 %v11416_v34 }
  0x39   :  { %6598 = vset.pattern.permute.xlu1 %v11416_v34 }
  0x3a   :  { %6048 = vmatmul.mubr.bf16.gmra.mrb[12].mxu0 %v7147_v40 }
  0x3b   :  { %6051 = vmatprep.mubr.bf16.mxu0 %v7149_v41  ;;  %6112 = vmatpush3.bf16.msra.mxu0 %v6613_v39  ;;  %v7315_v39 = vpack.c.bf16 %v545_v36, %v544_v35 }
  0x3c   :  { %6113 = vmatprep.subr.bf16.mxu0 %v6614_v42 }
  0x3f   :  { %6114 = vmatpush3.bf16.msra.mxu0 %v6614_v42  ;;  %v7317_v42 = vpack.c.bf16 %v547_v38, %v546_v37 }
  0x40   :  { %1975 = vmatprep.subr.bf16.mxu0 %v11416_v34 }
  0x42   :  { %6052 = vmatmul.mubr.bf16.gmra.mrb[16].mxu0 %v7168_v47 }
  0x43   :  { %6055 = vmatprep.mubr.bf16.mxu0 %v7170_v48 }
  0x4a   :  { %6056 = vmatmul.mubr.bf16.gmra.mrb[20].mxu0 %v7186_v53 }
  0x4b   :  { %6059 = vmatprep.mubr.bf16.mxu0 %v7188_v54 }
  0x52   :  { %6060 = vmatmul.mubr.bf16.gmra.mrb[24].mxu0 %v7204_v59 }
  0x53   :  { %6063 = vmatprep.mubr.bf16.mxu0 %v7206_v60 }
  0x5a   :  { %6064 = vmatmul.mubr.bf16.gmra.mrb[28].mxu0 %v7222_v1 }
  0x5b   :  { %6067 = vmatprep.mubr.bf16.mxu0 %v7224_v2 }
  0x62   :  { %6068 = vmatmul.mubr.bf16.gmra.mrb[32].mxu0 %v7240_v8 }
  0x63   :  { %6071 = vmatprep.mubr.bf16.mxu0 %v7242_v9 }
  0x6a   :  { %6072 = vmatmul.mubr.bf16.gmra.mrb[36].mxu0 %v7258_v14 }
  0x6b   :  { %6075 = vmatprep.mubr.bf16.mxu0 %v7260_v15 }
  0x72   :  { %6076 = vmatmul.mubr.bf16.gmra.mrb[40].mxu0 %v7276_v22 }
  0x73   :  { %6079 = vmatprep.mubr.bf16.mxu0 %v7278_v23 }
  0x7a   :  { %6080 = vmatmul.mubr.bf16.gmra.mrb[44].mxu0 %v7294_v30 }
  0x7b   :  { %6083 = vmatprep.mubr.bf16.mxu0 %v7296_v31 }
  0x82   :  { %6084 = vmatmul.mubr.bf16.gmra.mrb[48].mxu0 %v7315_v39 }
  0x83   :  { %6087 = vmatprep.mubr.bf16.mxu0 %v7317_v42 }
  0x8a   :  { %6088 = vmatmul.mubr.bf16.gmra.mrb[52].mxu0 %v7333_v49 }
  0x8b   :  { %6091 = vmatprep.mubr.bf16.mxu0 %v7335_v50 }
  0x92   :  { %6092 = vmatmul.mubr.bf16.gmra.mrb[56].mxu0 %v7351_v57 }
  0x93   :  { %6095 = vmatprep.mubr.bf16.mxu0 %v7353_v58 }
  0x9a   :  { %6096 = vmatmul.mubr.bf16.gmra.mrb[60].mxu0 %v7363_v63 }
  0x9b   :  { %6115 = vmatprep.mubr.bf16.mxu0 %v7045_v6 }
  0xa2   :  { %6116 = vmatmul.mubr.bf16.vlgmr.msra.gmra.mrb[64].mxu0 %v7075_v16 }
  0xa3   :  { %6119 = vmatprep.mubr.bf16.mxu0 %v7077_v17 }
  0xaa   :  { %6120 = vmatmul.mubr.bf16.gmra.mrb[68].mxu0 %v7099_v24 }
  0xab   :  { %6123 = vmatprep.mubr.bf16.mxu0 %v7101_v25 }
  0xb2   :  { %6124 = vmatmul.mubr.bf16.gmra.mrb[72].mxu0 %v7123_v32 }
  0xb3   :  { %6127 = vmatprep.mubr.bf16.mxu0 %v7125_v33 }
  0xba   :  { %6128 = vmatmul.mubr.bf16.gmra.mrb[76].mxu0 %v7147_v40 }
  0xbb   :  { %6131 = vmatprep.mubr.bf16.mxu0 %v7149_v41 }
  0xc2   :  { %6132 = vmatmul.mubr.bf16.gmra.mrb[80].mxu0 %v7168_v47 }
  0xc3   :  { %6135 = vmatprep.mubr.bf16.mxu0 %v7170_v48 }
  0xca   :  { %6136 = vmatmul.mubr.bf16.gmra.mrb[84].mxu0 %v7186_v53 }
  0xcb   :  { %6139 = vmatprep.mubr.bf16.mxu0 %v7188_v54 }
  0xd2   :  { %6140 = vmatmul.mubr.bf16.gmra.mrb[88].mxu0 %v7204_v59 }
  0xd3   :  { %6143 = vmatprep.mubr.bf16.mxu0 %v7206_v60 }
  0xda   :  { %6144 = vmatmul.mubr.bf16.gmra.mrb[92].mxu0 %v7222_v1 }
  0xdb   :  { %6147 = vmatprep.mubr.bf16.mxu0 %v7224_v2 }
  0xe2   :  { %6148 = vmatmul.mubr.bf16.gmra.mrb[96].mxu0 %v7240_v8 }
  0xe3   :  { %6151 = vmatprep.mubr.bf16.mxu0 %v7242_v9 }
  0xea   :  { %6152 = vmatmul.mubr.bf16.gmra.mrb[100].mxu0 %v7258_v14 }
  0xeb   :  { %6155 = vmatprep.mubr.bf16.mxu0 %v7260_v15 }
  0xf2   :  { %6156 = vmatmul.mubr.bf16.gmra.mrb[104].mxu0 %v7276_v22 }
  0xf3   :  { %6159 = vmatprep.mubr.bf16.mxu0 %v7278_v23 }
  0xf5   :  { %v6037_v6 = vpop.f32.mrb[0].mxu0 }
  0xf6   :  { %v705_v16 = vpop.f32.mrb[1].mxu0 }
  0xf7   :  { %v6038_v17 = vpop.f32.mrb[2].mxu0 }
  0xf8   :  { %v1304_v24 = vpack.c.bf16 %v6038_v17, %v6037_v6  ;;  %v708_v25 = vpop.f32.mrb[3].mxu0 }
  0xf9   :  { %v1303_v32 = vpack.c.bf16 %v708_v25, %v705_v16 }
  0xfa   :  { %6160 = vmatmul.mubr.bf16.gmra.mrb[108].mxu0 %v7294_v30 }
  0xfb   :  { %1976 = vmatpush1.bf16.msra.mxu0 %v1303_v32  ;;  %6163 = vmatprep.mubr.bf16.mxu0 %v7296_v31  ;;  %v6624_v32 = vld [vmem:[%s11405_s0 + $0x64] ss:$16 sps:$4 sm:$0xff]  }
  0xfc   :  { %1977 = vmatprep.subr.bf16.mxu0 %v11416_v34 }
  0xfd   :  { %v6041_v33 = vpop.f32.mrb[4].mxu0 }
  0xfe   :  { %v721_v40 = vpop.f32.mrb[5].mxu0 }
  0xff   :  { %v6042_v41 = vpop.f32.mrb[6].mxu0  ;;  %1978 = vmatpush1.bf16.msra.mxu0 %v1304_v24  ;;  %v6623_v24 = vld [vmem:[%s11405_s0 + $0x40] ss:$16 sps:$4 sm:$0xff]  }
 0x100   :  { %v1306_v47 = vpack.c.bf16 %v6042_v41, %v6041_v33  ;;  %v724_v48 = vpop.f32.mrb[7].mxu0  ;;  %1979 = vmatprep.subr.bf16.mxu0 %v11416_v34 }
 0x101   :  { %v1305_v53 = vpack.c.bf16 %v724_v48, %v721_v40 }
 0x102   :  { %6164 = vmatmul.mubr.bf16.gmra.mrb[112].mxu0 %v7315_v39 }
 0x103   :  { %1980 = vmatpush1.bf16.msra.mxu0 %v1305_v53  ;;  %6167 = vmatprep.mubr.bf16.mxu0 %v7317_v42  ;;  %v6626_v53 = vld [vmem:[%s11405_s0 + $0x60] ss:$16 sps:$4 sm:$0xff]  }
 0x104   :  { %1981 = vmatprep.subr.bf16.mxu0 %v11416_v34 }
 0x105   :  { %v6045_v54 = vpop.f32.mrb[8].mxu0 }
 0x106   :  { %v737_v59 = vpop.f32.mrb[9].mxu0 }
 0x107   :  { %v6046_v60 = vpop.f32.mrb[10].mxu0  ;;  %1982 = vmatpush1.bf16.msra.mxu0 %v1306_v47 }
 0x108   :  { %v1308_v0 = vpack.c.bf16 %v6046_v60, %v6045_v54  ;;  %v740_v1 = vpop.f32.mrb[11].mxu0  ;;  %1983 = vmatprep.subr.bf16.mxu0 %v11416_v34 }
 0x109   :  { %v1307_v2 = vpack.c.bf16 %v740_v1, %v737_v59  ;;  %v6627_v59 = vld [vmem:[%s11405_s0 + $0x84] ss:$16 sps:$4 sm:$0xff]  }
 0x10a   :  { %6168 = vmatmul.mubr.bf16.gmra.mrb[116].mxu0 %v7333_v49  ;;  %v6618_v49 = vld [vmem:[%s11405_s0 + $0x24] ss:$16 sps:$4 sm:$0xff]  }
 0x10b   :  { %1984 = vmatpush1.bf16.msra.mxu0 %v1307_v2  ;;  %6171 = vmatprep.mubr.bf16.mxu0 %v7335_v50 }
 0x10c   :  { %1985 = vmatprep.subr.bf16.mxu0 %v11416_v34 }
 0x10d   :  { %v6049_v3 = vpop.f32.mrb[12].mxu0 }
 0x10e   :  { %v753_v4 = vpop.f32.mrb[13].mxu0 }
 0x10f   :  { %v6050_v5 = vpop.f32.mrb[14].mxu0  ;;  %1986 = vmatpush1.bf16.msra.mxu0 %v1308_v0 }
 0x110   :  { %v1310_v7 = vpack.c.bf16 %v6050_v5, %v6049_v3  ;;  %v756_v8 = vpop.f32.mrb[15].mxu0  ;;  %1987 = vmatprep.subr.bf16.mxu0 %v11416_v34 }
 0x111   :  { %v1309_v9 = vpack.c.bf16 %v756_v8, %v753_v4  ;;  %v6629_v4 = vld [vmem:[%s11405_s0 + $0x80] ss:$16 sps:$4 sm:$0xff]  }
 0x112   :  { %6172 = vmatmul.mubr.bf16.gmra.mrb[120].mxu0 %v7351_v57  ;;  %v6620_v57 = vld [vmem:[%s11405_s0 + $0x20] ss:$16 sps:$4 sm:$0xff]  }
 0x113   :  { %1988 = vmatpush1.bf16.msra.mxu0 %v1309_v9  ;;  %6175 = vmatprep.mubr.bf16.mxu0 %v7353_v58 }
 0x114   :  { %1989 = vmatprep.subr.bf16.mxu0 %v11416_v34 }
 0x115   :  { %v6053_v10 = vpop.f32.mrb[16].mxu0 }
 0x116   :  { %v769_v11 = vpop.f32.mrb[17].mxu0 }
 0x117   :  { %v6054_v12 = vpop.f32.mrb[18].mxu0  ;;  %1990 = vmatpush1.bf16.msra.mxu0 %v1310_v7  ;;  %v6630_v7 = vld [vmem:[%s11405_s0 + $0xa4] ss:$16 sps:$4 sm:$0xff]  }
 0x118   :  { %v1312_v14 = vpack.c.bf16 %v6054_v12, %v6053_v10  ;;  %v772_v15 = vpop.f32.mrb[19].mxu0  ;;  %1991 = vmatprep.subr.bf16.mxu0 %v11416_v34 }
 0x119   :  { %v1311_v18 = vpack.c.bf16 %v772_v15, %v769_v11  ;;  %v6633_v15 = vld [vmem:[%s11405_s0 + $0xc4] ss:$16 sps:$4 sm:$0xff]  }
 0x11a   :  { %6176 = vmatmul.mubr.bf16.gmra.mrb[124].mxu0 %v7363_v63 }
 0x11b   :  { %1992 = vmatpush1.bf16.msra.mxu0 %v1311_v18  ;;  %2007 = vmatprep.mubr.bf16.mxu0 %v6617_v13  ;;  %v6632_v13 = vld [vmem:[%s11405_s0 + $0xa0] ss:$16 sps:$4 sm:$0xff]  }
 0x11c   :  { %1993 = vmatprep.subr.bf16.mxu0 %v11416_v34 }
 0x11d   :  { %v6057_v19 = vpop.f32.mrb[20].mxu0 }
 0x11e   :  { %v785_v20 = vpop.f32.mrb[21].mxu0 }
 0x11f   :  { %v6058_v21 = vpop.f32.mrb[22].mxu0  ;;  %1994 = vmatpush1.bf16.msra.mxu0 %v1312_v14 }
 0x120   :  { %v1314_v22 = vpack.c.bf16 %v6058_v21, %v6057_v19  ;;  %v788_v23 = vpop.f32.mrb[23].mxu0  ;;  %1995 = vmatprep.subr.bf16.mxu0 %v11416_v34 }
 0x121   :  { %v1313_v26 = vpack.c.bf16 %v788_v23, %v785_v20  ;;  %v6635_v23 = vld [vmem:[%s11405_s0 + $0xc0] ss:$16 sps:$4 sm:$0xff]  }
 0x123   :  { %1996 = vmatpush1.bf16.msra.mxu0 %v1313_v26 }
 0x124   :  { %1997 = vmatprep.subr.bf16.mxu0 %v11416_v34 }
 0x125   :  { %v6061_v27 = vpop.f32.mrb[24].mxu0 }
 0x126   :  { %v801_v28 = vpop.f32.mrb[25].mxu0 }
 0x127   :  { %v6062_v29 = vpop.f32.mrb[26].mxu0  ;;  %1998 = vmatpush1.bf16.msra.mxu0 %v1314_v22 }
 0x128   :  { %v1316_v30 = vpack.c.bf16 %v6062_v29, %v6061_v27  ;;  %v804_v31 = vpop.f32.mrb[27].mxu0  ;;  %1999 = vmatprep.subr.bf16.mxu0 %v11416_v34  ;;  %v6636_v27 = vld [vmem:[%s11405_s0 + $0xe4] ss:$16 sps:$4 sm:$0xff]  }
 0x129   :  { %v1315_v35 = vpack.c.bf16 %v804_v31, %v801_v28 }
 0x12b   :  { %2000 = vmatpush1.bf16.msra.mxu0 %v1315_v35 }
 0x12c   :  { %2001 = vmatprep.subr.bf16.mxu0 %v11416_v34 }
 0x12d   :  { %v6065_v36 = vpop.f32.mrb[28].mxu0 }
 0x12e   :  { %v817_v37 = vpop.f32.mrb[29].mxu0 }
 0x12f   :  { %v6066_v38 = vpop.f32.mrb[30].mxu0  ;;  %2002 = vmatpush1.bf16.msra.mxu0 %v1316_v30 }
 0x130   :  { %v1318_v39 = vpack.c.bf16 %v6066_v38, %v6065_v36  ;;  %v820_v42 = vpop.f32.mrb[31].mxu0  ;;  %2003 = vmatprep.subr.bf16.mxu0 %v11416_v34  ;;  %v6638_v36 = vld [vmem:[%s11405_s0 + $0xe0] ss:$16 sps:$4 sm:$0xff]   ;;  %v6639_v38 = vld [vmem:[%s11405_s0 + $0x104] ss:$16 sps:$4 sm:$0xff]  }
 0x131   :  { %v1317_v43 = vpack.c.bf16 %v820_v42, %v817_v37 }
 0x133   :  { %2004 = vmatpush1.bf16.msra.mxu0 %v1317_v43 }
 0x134   :  { %2005 = vmatprep.subr.bf16.mxu0 %v11416_v34 }
 0x135   :  { %v6069_v44 = vpop.f32.mrb[32].mxu0 }
 0x136   :  { %v833_v46 = vpop.f32.mrb[33].mxu0 }
 0x137   :  { %2006 = vmatpush1.bf16.msra.mxu0 %v1318_v39  ;;  %v6070_v50 = vpop.f32.mrb[34].mxu0 }
 0x138   :  { %v1320_v51 = vpack.c.bf16 %v6070_v50, %v6069_v44  ;;  %v836_v52 = vpop.f32.mrb[35].mxu0  ;;  %2264 = vmatprep.subr.bf16.mxu0 %v11416_v34  ;;  %v6642_v50 = vld [vmem:[%s11405_s0 + $0x124] ss:$16 sps:$4 sm:$0xff]  }
 0x139   :  { %v1319_v55 = vpack.c.bf16 %v836_v52, %v833_v46  ;;  %v6641_v46 = vld [vmem:[%s11405_s0 + $0x100] ss:$16 sps:$4 sm:$0xff]  }
 0x13a   :  { %2008 = vmatmul.mubr.bf16.vlgmr.msra.gmra.mrb[128].mxu0 %v6615_v45 }
 0x13b   :  { %2015 = vmatprep.mubr.bf16.mxu0 %v6618_v49  ;;  %2265 = vmatpush1.bf16.msra.mxu0 %v1319_v55 }
 0x13c   :  { %2266 = vmatprep.subr.bf16.mxu0 %v11416_v34 }
 0x13d   :  { %v6073_v56 = vpop.f32.mrb[36].mxu0 }
 0x13e   :  { %v849_v58 = vpop.f32.mrb[37].mxu0 }
 0x13f   :  { %v6074_v62 = vpop.f32.mrb[38].mxu0  ;;  %2267 = vmatpush1.bf16.msra.mxu0 %v1320_v51 }
 0x140   :  { %v1322_v63 = vpack.c.bf16 %v6074_v62, %v6073_v56  ;;  %v852_v6 = vpop.f32.mrb[39].mxu0  ;;  %2268 = vmatprep.subr.bf16.mxu0 %v11416_v34  ;;  %v6644_v56 = vld [vmem:[%s11405_s0 + $0x120] ss:$16 sps:$4 sm:$0xff]  }
 0x141   :  { %v1321_v16 = vpack.c.bf16 %v852_v6, %v849_v58  ;;  %v6645_v58 = vld [vmem:[%s11405_s0 + $0x144] ss:$16 sps:$4 sm:$0xff]   ;;  %v6647_v6 = vld [vmem:[%s11405_s0 + $0x140] ss:$16 sps:$4 sm:$0xff]  }
 0x142   :  { %2016 = vmatmul.mubr.bf16.gmra.mrb[132].mxu0 %v6620_v57 }
 0x143   :  { %2023 = vmatprep.mubr.bf16.mxu0 %v6621_v61  ;;  %2269 = vmatpush1.bf16.msra.mxu0 %v1321_v16 }
 0x144   :  { %2270 = vmatprep.subr.bf16.mxu0 %v11416_v34 }
 0x145   :  { %v6077_v17 = vpop.f32.mrb[40].mxu0 }
 0x146   :  { %v865_v25 = vpop.f32.mrb[41].mxu0 }
 0x147   :  { %v6078_v33 = vpop.f32.mrb[42].mxu0  ;;  %2271 = vmatpush1.bf16.msra.mxu0 %v1322_v63 }
 0x148   :  { %v1324_v40 = vpack.c.bf16 %v6078_v33, %v6077_v17  ;;  %v868_v41 = vpop.f32.mrb[43].mxu0  ;;  %2272 = vmatprep.subr.bf16.mxu0 %v11416_v34  ;;  %v6648_v17 = vld [vmem:[%s11405_s0 + $0x164] ss:$16 sps:$4 sm:$0xff]   ;;  %v6650_v33 = vld [vmem:[%s11405_s0 + $0x160] ss:$16 sps:$4 sm:$0xff]  }
 0x149   :  { %v1323_v47 = vpack.c.bf16 %v868_v41, %v865_v25  ;;  %v6651_v41 = vld [vmem:[%s11405_s0 + $0x184] ss:$16 sps:$4 sm:$0xff]  }
 0x14a   :  { %2024 = vmatmul.mubr.bf16.gmra.mrb[136].mxu0 %v6623_v24 }
 0x14b   :  { %2031 = vmatprep.mubr.bf16.mxu0 %v6624_v32  ;;  %2273 = vmatpush1.bf16.msra.mxu0 %v1323_v47 }
 0x14c   :  { %2274 = vmatprep.subr.bf16.mxu0 %v11416_v34 }
 0x14d   :  { %v6081_v48 = vpop.f32.mrb[44].mxu0 }
 0x14e   :  { %v881_v54 = vpop.f32.mrb[45].mxu0 }
 0x14f   :  { %v6082_v60 = vpop.f32.mrb[46].mxu0  ;;  %2275 = vmatpush1.bf16.msra.mxu0 %v1324_v40 }
 0x150   :  { %v1326_v0 = vpack.c.bf16 %v6082_v60, %v6081_v48  ;;  %v884_v1 = vpop.f32.mrb[47].mxu0  ;;  %2276 = vmatprep.subr.bf16.mxu0 %v11416_v34  ;;  %v6654_v60 = vld [vmem:[%s11405_s0 + $0x1a4] ss:$16 sps:$4 sm:$0xff]  }
 0x151   :  { %v1325_v2 = vpack.c.bf16 %v884_v1, %v881_v54  ;;  %v6653_v54 = vld [vmem:[%s11405_s0 + $0x180] ss:$16 sps:$4 sm:$0xff]  }
 0x152   :  { %2032 = vmatmul.mubr.bf16.gmra.mrb[140].mxu0 %v6626_v53 }
 0x153   :  { %2039 = vmatprep.mubr.bf16.mxu0 %v6627_v59  ;;  %2277 = vmatpush1.bf16.msra.mxu0 %v1325_v2 }
 0x154   :  { %2278 = vmatprep.subr.bf16.mxu0 %v11416_v34 }
 0x155   :  { %v6085_v3 = vpop.f32.mrb[48].mxu0 }
 0x156   :  { %v897_v5 = vpop.f32.mrb[49].mxu0 }
 0x157   :  { %v6086_v8 = vpop.f32.mrb[50].mxu0  ;;  %2279 = vmatpush1.bf16.msra.mxu0 %v1326_v0 }
 0x158   :  { %v1328_v9 = vpack.c.bf16 %v6086_v8, %v6085_v3  ;;  %v900_v10 = vpop.f32.mrb[51].mxu0  ;;  %2280 = vmatprep.subr.bf16.mxu0 %v11416_v34  ;;  %v6656_v3 = vld [vmem:[%s11405_s0 + $0x1a0] ss:$16 sps:$4 sm:$0xff]  }
 0x159   :  { %v1327_v11 = vpack.c.bf16 %v900_v10, %v897_v5  ;;  %v6657_v5 = vld [vmem:[%s11405_s0 + $0x1c4] ss:$16 sps:$4 sm:$0xff]   ;;  %v6659_v10 = vld [vmem:[%s11405_s0 + $0x1c0] ss:$16 sps:$4 sm:$0xff]  }
 0x15a   :  { %2040 = vmatmul.mubr.bf16.gmra.mrb[144].mxu0 %v6629_v4 }
 0x15b   :  { %2047 = vmatprep.mubr.bf16.mxu0 %v6630_v7  ;;  %2281 = vmatpush1.bf16.msra.mxu0 %v1327_v11 }
 0x15c   :  { %2282 = vmatprep.subr.bf16.mxu0 %v11416_v34 }
 0x15d   :  { %v6089_v12 = vpop.f32.mrb[52].mxu0 }
 0x15e   :  { %v913_v14 = vpop.f32.mrb[53].mxu0 }
 0x15f   :  { %v6090_v18 = vpop.f32.mrb[54].mxu0  ;;  %2283 = vmatpush1.bf16.msra.mxu0 %v1328_v9 }
 0x160   :  { %v1330_v19 = vpack.c.bf16 %v6090_v18, %v6089_v12  ;;  %v916_v20 = vpop.f32.mrb[55].mxu0  ;;  %2284 = vmatprep.subr.bf16.mxu0 %v11416_v34  ;;  %v6660_v12 = vld [vmem:[%s11405_s0 + $0x1e4] ss:$16 sps:$4 sm:$0xff]   ;;  %v6662_v18 = vld [vmem:[%s11405_s0 + $0x1e0] ss:$16 sps:$4 sm:$0xff]  }
 0x161   :  { %v1329_v21 = vpack.c.bf16 %v916_v20, %v913_v14  ;;  %v6663_v20 = vld [vmem:[%s11405_s0 + $0x204] ss:$16 sps:$4 sm:$0xff]  }
 0x162   :  { %2048 = vmatmul.mubr.bf16.gmra.mrb[148].mxu0 %v6632_v13 }
 0x163   :  { %2055 = vmatprep.mubr.bf16.mxu0 %v6633_v15  ;;  %2285 = vmatpush1.bf16.msra.mxu0 %v1329_v21 }
 0x164   :  { %2286 = vmatprep.subr.bf16.mxu0 %v11416_v34 }
 0x165   :  { %v6093_v22 = vpop.f32.mrb[56].mxu0 }
 0x166   :  { %v929_v26 = vpop.f32.mrb[57].mxu0 }
 0x167   :  { %v6094_v28 = vpop.f32.mrb[58].mxu0  ;;  %2287 = vmatpush1.bf16.msra.mxu0 %v1330_v19 }
 0x168   :  { %v1332_v29 = vpack.c.bf16 %v6094_v28, %v6093_v22  ;;  %v932_v30 = vpop.f32.mrb[59].mxu0  ;;  %2288 = vmatprep.subr.bf16.mxu0 %v11416_v34  ;;  %v6666_v28 = vld [vmem:[%s11405_s0 + $0x224] ss:$16 sps:$4 sm:$0xff]  }
 0x169   :  { %v1331_v31 = vpack.c.bf16 %v932_v30, %v929_v26  ;;  %v6665_v26 = vld [vmem:[%s11405_s0 + $0x200] ss:$16 sps:$4 sm:$0xff]  }
 0x16a   :  { %2056 = vmatmul.mubr.bf16.gmra.mrb[152].mxu0 %v6635_v23 }
 0x16b   :  { %2063 = vmatprep.mubr.bf16.mxu0 %v6636_v27  ;;  %2289 = vmatpush1.bf16.msra.mxu0 %v1331_v31 }
 0x16c   :  { %2290 = vmatprep.subr.bf16.mxu0 %v11416_v34 }
 0x16d   :  { %v6097_v35 = vpop.f32.mrb[60].mxu0 }
 0x16e   :  { %v945_v37 = vpop.f32.mrb[61].mxu0 }
 0x16f   :  { %v6098_v39 = vpop.f32.mrb[62].mxu0  ;;  %2291 = vmatpush1.bf16.msra.mxu0 %v1332_v29 }
 0x170   :  { %v1334_v42 = vpack.c.bf16 %v6098_v39, %v6097_v35  ;;  %v948_v43 = vpop.f32.mrb[63].mxu0  ;;  %2292 = vmatprep.subr.bf16.mxu0 %v11416_v34  ;;  %v6668_v35 = vld [vmem:[%s11405_s0 + $0x220] ss:$16 sps:$4 sm:$0xff]  }
 0x171   :  { %v1333_v44 = vpack.c.bf16 %v948_v43, %v945_v37  ;;  %v6669_v37 = vld [vmem:[%s11405_s0 + $0x244] ss:$16 sps:$4 sm:$0xff]   ;;  %v6671_v43 = vld [vmem:[%s11405_s0 + $0x240] ss:$16 sps:$4 sm:$0xff]  }
 0x172   :  { %2064 = vmatmul.mubr.bf16.gmra.mrb[156].mxu0 %v6638_v36 }
 0x173   :  { %2071 = vmatprep.mubr.bf16.mxu0 %v6639_v38  ;;  %2293 = vmatpush1.bf16.msra.mxu0 %v1333_v44 }
 0x174   :  { %2294 = vmatprep.subr.bf16.mxu0 %v11416_v34 }
 0x175   :  { %v7480_v45 = vpop.f32.mrb[64].mxu0 }
 0x176   :  { %v7485_v49 = vpop.f32.mrb[65].mxu0 }
 0x177   :  { %2295 = vmatpush1.bf16.msra.mxu0 %v1334_v42  ;;  %v7490_v51 = vpop.f32.mrb[66].mxu0 }
 0x178   :  { %v7492_v52 = vpop.f32.mrb[67].mxu0 }
 0x17a   :  { %2072 = vmatmul.mubr.bf16.gmra.mrb[160].mxu0 %v6641_v46  ;;  %v6672_v46 = vld [vmem:[%s11405_s0 + $0x264] ss:$16 sps:$4 sm:$0xff]  }
 0x17b   :  { %2079 = vmatprep.mubr.bf16.mxu0 %v6642_v50 }
 0x17d   :  { %v7494_v55 = vpop.f32.mrb[68].mxu0 }
 0x17e   :  { %v7499_v57 = vpop.f32.mrb[69].mxu0 }
 0x17f   :  { %v7504_v61 = vpop.f32.mrb[70].mxu0 }
 0x180   :  { %v7506_v62 = vpop.f32.mrb[71].mxu0 }
 0x182   :  { %2080 = vmatmul.mubr.bf16.gmra.mrb[164].mxu0 %v6644_v56 }
 0x183   :  { %2087 = vmatprep.mubr.bf16.mxu0 %v6645_v58 }
 0x185   :  { %v7508_v63 = vpop.f32.mrb[72].mxu0 }
 0x186   :  { %v7513_v16 = vpop.f32.mrb[73].mxu0 }
 0x187   :  { %v7518_v24 = vpop.f32.mrb[74].mxu0 }
 0x188   :  { %v7520_v25 = vpop.f32.mrb[75].mxu0 }
 0x18a   :  { %2088 = vmatmul.mubr.bf16.gmra.mrb[168].mxu0 %v6647_v6  ;;  %v6674_v6 = vld [vmem:[%s11405_s0 + $0x260] ss:$16 sps:$4 sm:$0xff]  }
 0x18b   :  { %2095 = vmatprep.mubr.bf16.mxu0 %v6648_v17 }
 0x18d   :  { %v7522_v32 = vpop.f32.mrb[76].mxu0 }
 0x18e   :  { %v7527_v40 = vpop.f32.mrb[77].mxu0 }
 0x18f   :  { %v7532_v47 = vpop.f32.mrb[78].mxu0 }
 0x190   :  { %v7534_v48 = vpop.f32.mrb[79].mxu0 }
 0x192   :  { %2096 = vmatmul.mubr.bf16.gmra.mrb[172].mxu0 %v6650_v33  ;;  %v6675_v33 = vld [vmem:[%s11405_s0 + $0x284] ss:$16 sps:$4 sm:$0xff]  }
 0x193   :  { %2103 = vmatprep.mubr.bf16.mxu0 %v6651_v41 }
 0x195   :  { %v7536_v53 = vpop.f32.mrb[80].mxu0 }
 0x196   :  { %v7541_v59 = vpop.f32.mrb[81].mxu0 }
 0x197   :  { %v7546_v0 = vpop.f32.mrb[82].mxu0 }
 0x198   :  { %v7548_v1 = vpop.f32.mrb[83].mxu0 }
 0x19a   :  { %2104 = vmatmul.mubr.bf16.gmra.mrb[176].mxu0 %v6653_v54 }
 0x19b   :  { %2111 = vmatprep.mubr.bf16.mxu0 %v6654_v60 }
 0x19d   :  { %v7550_v2 = vpop.f32.mrb[84].mxu0 }
 0x19e   :  { %v7555_v4 = vpop.f32.mrb[85].mxu0 }
 0x19f   :  { %v7560_v7 = vpop.f32.mrb[86].mxu0 }
 0x1a0   :  { %v7562_v8 = vpop.f32.mrb[87].mxu0 }
 0x1a2   :  { %2112 = vmatmul.mubr.bf16.gmra.mrb[180].mxu0 %v6656_v3  ;;  %v6677_v3 = vld [vmem:[%s11405_s0 + $0x280] ss:$16 sps:$4 sm:$0xff]  }
 0x1a3   :  { %2119 = vmatprep.mubr.bf16.mxu0 %v6657_v5 }
 0x1a5   :  { %v7564_v9 = vpop.f32.mrb[88].mxu0 }
 0x1a6   :  { %v7569_v11 = vpop.f32.mrb[89].mxu0 }
 0x1a7   :  { %v7574_v13 = vpop.f32.mrb[90].mxu0 }
 0x1a8   :  { %v7576_v14 = vpop.f32.mrb[91].mxu0 }
 0x1aa   :  { %2120 = vmatmul.mubr.bf16.gmra.mrb[184].mxu0 %v6659_v10  ;;  %v6678_v10 = vld [vmem:[%s11405_s0 + $0x2a4] ss:$16 sps:$4 sm:$0xff]  }
 0x1ab   :  { %2127 = vmatprep.mubr.bf16.mxu0 %v6660_v12 }
 0x1ad   :  { %v7578_v15 = vpop.f32.mrb[92].mxu0 }
 0x1ae   :  { %v7583_v19 = vpop.f32.mrb[93].mxu0 }
 0x1af   :  { %v7588_v21 = vpop.f32.mrb[94].mxu0 }
 0x1b0   :  { %v7590_v22 = vpop.f32.mrb[95].mxu0 }
 0x1b2   :  { %2128 = vmatmul.mubr.bf16.gmra.mrb[188].mxu0 %v6662_v18 }
 0x1b3   :  { %2135 = vmatprep.mubr.bf16.mxu0 %v6663_v20 }
 0x1b5   :  { %v7592_v23 = vpop.f32.mrb[96].mxu0 }
 0x1b6   :  { %v7597_v27 = vpop.f32.mrb[97].mxu0 }
 0x1b7   :  { %v7602_v29 = vpop.f32.mrb[98].mxu0 }
 0x1b8   :  { %v7604_v30 = vpop.f32.mrb[99].mxu0 }
 0x1ba   :  { %2136 = vmatmul.mubr.bf16.gmra.mrb[192].mxu0 %v6665_v26  ;;  %v6680_v26 = vld [vmem:[%s11405_s0 + $0x2a0] ss:$16 sps:$4 sm:$0xff]  }
 0x1bb   :  { %2143 = vmatprep.mubr.bf16.mxu0 %v6666_v28 }
 0x1bd   :  { %v7606_v31 = vpop.f32.mrb[100].mxu0 }
 0x1be   :  { %v7611_v36 = vpop.f32.mrb[101].mxu0 }
 0x1bf   :  { %v7616_v38 = vpop.f32.mrb[102].mxu0 }
 0x1c0   :  { %v7618_v39 = vpop.f32.mrb[103].mxu0 }
 0x1c2   :  { %2144 = vmatmul.mubr.bf16.gmra.mrb[196].mxu0 %v6668_v35  ;;  %v6681_v35 = vld [vmem:[%s11405_s0 + $0x2c4] ss:$16 sps:$4 sm:$0xff]  }
 0x1c3   :  { %2151 = vmatprep.mubr.bf16.mxu0 %v6669_v37 }
 0x1c5   :  { %v7620_v42 = vpop.f32.mrb[104].mxu0 }
 0x1c6   :  { %v7625_v44 = vpop.f32.mrb[105].mxu0 }
 0x1c7   :  { %v7630_v50 = vpop.f32.mrb[106].mxu0 }
 0x1c8   :  { %v7632_v56 = vpop.f32.mrb[107].mxu0 }
 0x1ca   :  { %2152 = vmatmul.mubr.bf16.gmra.mrb[200].mxu0 %v6671_v43 }
 0x1cb   :  { %2159 = vmatprep.mubr.bf16.mxu0 %v6672_v46 }
 0x1cd   :  { %v7634_v58 = vpop.f32.mrb[108].mxu0 }
 0x1ce   :  { %v7639_v17 = vpop.f32.mrb[109].mxu0 }
 0x1cf   :  { %v7644_v41 = vpop.f32.mrb[110].mxu0 }
 0x1d0   :  { %v7646_v54 = vpop.f32.mrb[111].mxu0 }
 0x1d2   :  { %2160 = vmatmul.mubr.bf16.gmra.mrb[204].mxu0 %v6674_v6  ;;  %v6683_v6 = vld [vmem:[%s11405_s0 + $0x2c0] ss:$16 sps:$4 sm:$0xff]  }
 0x1d3   :  { %2167 = vmatprep.mubr.bf16.mxu0 %v6675_v33 }
 0x1d5   :  { %v7648_v60 = vpop.f32.mrb[112].mxu0 }
 0x1d6   :  { %11574 = vst [vmem:[#allocation2_spill] sm:$0xff] %v7648_v60  ;;  %v7653_v5 = vpop.f32.mrb[113].mxu0 }
 0x1d7   :  { %11575 = vst [vmem:[#allocation3_spill] sm:$0xff] %v7653_v5  ;;  %v7658_v12 = vpop.f32.mrb[114].mxu0 }
 0x1d8   :  { %11576 = vst [vmem:[#allocation4_spill] sm:$0xff] %v7658_v12  ;;  %v7660_v18 = vpop.f32.mrb[115].mxu0 }
 0x1d9   :  { %11577 = vst [vmem:[#allocation5_spill] sm:$0xff] %v7660_v18 }
 0x1da   :  { %2168 = vmatmul.mubr.bf16.gmra.mrb[208].mxu0 %v6677_v3  ;;  %v6684_v3 = vld [vmem:[%s11405_s0 + $0x2e4] ss:$16 sps:$4 sm:$0xff]  }
 0x1db   :  { %2175 = vmatprep.mubr.bf16.mxu0 %v6678_v10 }
 0x1dd   :  { %v7662_v20 = vpop.f32.mrb[116].mxu0 }
 0x1de   :  { %11578 = vst [vmem:[#allocation6_spill] sm:$0xff] %v7662_v20  ;;  %v7667_v28 = vpop.f32.mrb[117].mxu0 }
 0x1df   :  { %11579 = vst [vmem:[#allocation7_spill] sm:$0xff] %v7667_v28  ;;  %v7672_v37 = vpop.f32.mrb[118].mxu0 }
 0x1e0   :  { %11580 = vst [vmem:[#allocation8_spill] sm:$0xff] %v7672_v37  ;;  %v7674_v43 = vpop.f32.mrb[119].mxu0 }
 0x1e1   :  { %11581 = vst [vmem:[#allocation9_spill] sm:$0xff] %v7674_v43  ;;  %v6795_v43 = vld [vmem:[%s11405_s0 + $0x38c] ss:$16 sps:$4 sm:$0xff]  }
 0x1e2   :  { %2176 = vmatmul.mubr.bf16.gmra.mrb[212].mxu0 %v6680_v26 }
 0x1e3   :  { %2183 = vmatprep.mubr.bf16.mxu0 %v6681_v35  ;;  %v6686_v35 = vld [vmem:[%s11405_s0 + $0x2e0] ss:$16 sps:$4 sm:$0xff]  }
 0x1e5   :  { %v7676_v46 = vpop.f32.mrb[120].mxu0 }
 0x1e6   :  { %11582 = vst [vmem:[#allocation10_spill] sm:$0xff] %v7676_v46  ;;  %v7681_v33 = vpop.f32.mrb[121].mxu0 }
 0x1e7   :  { %11583 = vst [vmem:[#allocation11_spill] sm:$0xff] %v7681_v33  ;;  %v7686_v10 = vpop.f32.mrb[122].mxu0  ;;  %v6687_v33 = vld [vmem:[%s11405_s0 + $0x304] ss:$16 sps:$4 sm:$0xff]  }
 0x1e8   :  { %11584 = vst [vmem:[#allocation12_spill] sm:$0xff] %v7686_v10  ;;  %v7688_v34 = vpop.f32.mrb[123].mxu0 }
 0x1e9   :  { %11585 = vst [vmem:[#allocation13_spill] sm:$0xff] %v7688_v34  ;;  %v6794_v34 = vld [vmem:[%s11405_s0 + $0x368] ss:$16 sps:$4 sm:$0xff]  }
 0x1ea   :  { %2184 = vmatmul.mubr.bf16.gmra.mrb[216].mxu0 %v6683_v6  ;;  %v6689_v6 = vld [vmem:[%s11405_s0 + $0x300] ss:$16 sps:$4 sm:$0xff]  }
 0x1eb   :  { %2191 = vmatprep.mubr.bf16.mxu0 %v6684_v3  ;;  %v6690_v3 = vld [vmem:[%s11405_s0 + $0x324] ss:$16 sps:$4 sm:$0xff]  }
 0x1ed   :  { %v7690_v26 = vpop.f32.mrb[124].mxu0 }
 0x1ee   :  { %11586 = vst [vmem:[#allocation14_spill] sm:$0xff] %v7690_v26  ;;  %v7695_v46 = vpop.f32.mrb[125].mxu0  ;;  %v6692_v26 = vld [vmem:[%s11405_s0 + $0x320] ss:$16 sps:$4 sm:$0xff]  }
 0x1ef   :  { %11587 = vst [vmem:[#allocation15_spill] sm:$0xff] %v7695_v46  ;;  %v7700_v37 = vpop.f32.mrb[126].mxu0 }
 0x1f0   :  { %11588 = vst [vmem:[#allocation16_spill] sm:$0xff] %v7700_v37  ;;  %v7702_v20 = vpop.f32.mrb[127].mxu0  ;;  %v6693_v37 = vld [vmem:[%s11405_s0 + $0x344] ss:$16 sps:$4 sm:$0xff]  }
 0x1f1   :  { %11589 = vst [vmem:[#allocation17_spill] sm:$0xff] %v7702_v20  ;;  %v6702_v20 = vld [vmem:[%s11405_s0 + $0x3a4] ss:$16 sps:$4 sm:$0xff]  }
 0x1f2   :  { %2192 = vmatmul.mubr.bf16.gmra.mrb[220].mxu0 %v6686_v35  ;;  %v6696_v35 = vld [vmem:[%s11405_s0 + $0x364] ss:$16 sps:$4 sm:$0xff]  }
 0x1f3   :  { %2199 = vmatprep.mubr.bf16.mxu0 %v6687_v33  ;;  %v6695_v33 = vld [vmem:[%s11405_s0 + $0x340] ss:$16 sps:$4 sm:$0xff]  }
 0x1fa   :  { %2200 = vmatmul.mubr.bf16.gmra.mrb[224].mxu0 %v6689_v6  ;;  %v173_v6 = vld [vmem:[%s11406_s1] sm:$0xff] }
 0x1fb   :  { %2207 = vmatprep.mubr.bf16.mxu0 %v6690_v3  ;;  %v175_v3 = vld [vmem:[%s11406_s1 + $0x10] sm:$0xff]  ;;  %2555 = vperm.xlu0 %6597, %v173_v6   ;;  %v177_v6 = vld [vmem:[%s11406_s1 + $0x20] sm:$0xff] }
 0x1fc   :  { %2565 = vperm.xlu1 %6598, %v175_v3   ;;  %v178_v3 = vld [vmem:[%s11406_s1 + $0x28] sm:$0xff] }
 0x202   :  { %2208 = vmatmul.mubr.bf16.gmra.mrb[228].mxu0 %v6692_v26  ;;  %v6698_v26 = vld [vmem:[%s11405_s0 + $0x360] ss:$16 sps:$4 sm:$0xff]  }
 0x203   :  { %2215 = vmatprep.mubr.bf16.mxu0 %v6693_v37  ;;  %v174_v37 = vld [vmem:[%s11406_s1 + $0x8] sm:$0xff] }
 0x204   :  { %2560 = vperm.xlu0 %6597, %v174_v37   ;;  %v179_v37 = vld [vmem:[%s11406_s1 + $0x30] sm:$0xff] }
 0x208   :  { %2575 = vperm.xlu0 %6597, %v177_v6   ;;  %v182_v6 = vld [vmem:[%s11406_s1 + $0x48] sm:$0xff] }
 0x20a   :  { %2216 = vmatmul.mubr.bf16.gmra.mrb[232].mxu0 %v6695_v33  ;;  %v6699_v33 = vld [vmem:[%s11405_s0 + $0x384] ss:$16 sps:$4 sm:$0xff]  }
 0x20b   :  { %2223 = vmatprep.mubr.bf16.mxu0 %v6696_v35  ;;  %v176_v35 = vld [vmem:[%s11406_s1 + $0x18] sm:$0xff] }
 0x20c   :  { %2570 = vperm.xlu1 %6598, %v176_v35   ;;  %2585 = vperm.xlu0 %6597, %v179_v37   ;;  %v181_v35 = vld [vmem:[%s11406_s1 + $0x40] sm:$0xff] }
 0x20d   :  { %v6704_v37 = vld [vmem:[%s11405_s0 + $0x3a0] ss:$16 sps:$4 sm:$0xff]  }
 0x210   :  { %2580 = vperm.xlu1 %6598, %v178_v3   ;;  %2595 = vperm.xlu0 %6597, %v181_v35   ;;  %v183_v3 = vld [vmem:[%s11406_s1 + $0x50] sm:$0xff]  ;;  %v186_v35 = vld [vmem:[%s11406_s1 + $0x68] sm:$0xff] }
 0x212   :  { %2224 = vmatmul.mubr.bf16.gmra.mrb[236].mxu0 %v6698_v26  ;;  %v6701_v26 = vld [vmem:[%s11405_s0 + $0x380] ss:$16 sps:$4 sm:$0xff]  }
 0x213   :  { %2231 = vmatprep.mubr.bf16.mxu0 %v6699_v33  ;;  %v180_v33 = vld [vmem:[%s11406_s1 + $0x38] sm:$0xff] }
 0x214   :  { %2590 = vperm.xlu1 %6598, %v180_v33   ;;  %2605 = vperm.xlu0 %6597, %v183_v3   ;;  %v185_v33 = vld [vmem:[%s11406_s1 + $0x60] sm:$0xff] }
 0x215   :  { %v6707_v3 = vld [vmem:[%s11405_s0 + $0x3c0] ss:$16 sps:$4 sm:$0xff]  }
 0x218   :  { %2600 = vperm.xlu1 %6598, %v182_v6   ;;  %2615 = vperm.xlu0 %6597, %v185_v33   ;;  %v187_v6 = vld [vmem:[%s11406_s1 + $0x70] sm:$0xff]  ;;  %v190_v33 = vld [vmem:[%s11406_s1 + $0x88] sm:$0xff] }
 0x21a   :  { %2232 = vmatmul.mubr.bf16.gmra.mrb[240].mxu0 %v6701_v26  ;;  %v6705_v26 = vld [vmem:[%s11405_s0 + $0x3c4] ss:$16 sps:$4 sm:$0xff]  }
 0x21b   :  { %2239 = vmatprep.mubr.bf16.mxu0 %v6702_v20  ;;  %v184_v20 = vld [vmem:[%s11406_s1 + $0x58] sm:$0xff] }
 0x21c   :  { %2610 = vperm.xlu1 %6598, %v184_v20   ;;  %2625 = vperm.xlu0 %6597, %v187_v6   ;;  %v189_v20 = vld [vmem:[%s11406_s1 + $0x80] sm:$0xff] }
 0x21d   :  { %v6710_v6 = vld [vmem:[%s11405_s0 + $0x3e0] ss:$16 sps:$4 sm:$0xff]  }
 0x220   :  { %2620 = vperm.xlu1 %6598, %v186_v35   ;;  %2635 = vperm.xlu0 %6597, %v189_v20   ;;  %v191_v35 = vld [vmem:[%s11406_s1 + $0x90] sm:$0xff]  ;;  %v194_v20 = vld [vmem:[%s11406_s1 + $0xa8] sm:$0xff] }
 0x222   :  { %2240 = vmatmul.mubr.bf16.gmra.mrb[244].mxu0 %v6704_v37  ;;  %v6708_v37 = vld [vmem:[%s11405_s0 + $0x3e4] ss:$16 sps:$4 sm:$0xff]  }
 0x223   :  { %2247 = vmatprep.mubr.bf16.mxu0 %v6705_v26  ;;  %v188_v26 = vld [vmem:[%s11406_s1 + $0x78] sm:$0xff] }
 0x224   :  { %2630 = vperm.xlu1 %6598, %v188_v26   ;;  %2645 = vperm.xlu0 %6597, %v191_v35   ;;  %v193_v26 = vld [vmem:[%s11406_s1 + $0xa0] sm:$0xff]  ;;  %v6711_v35 = vld [vmem:[%s11405_s0 + $0x8] ss:$16 sps:$4 sm:$0xff]  }
 0x228   :  { %2640 = vperm.xlu1 %6598, %v190_v33   ;;  %2655 = vperm.xlu0 %6597, %v193_v26   ;;  %v195_v33 = vld [vmem:[%s11406_s1 + $0xb0] sm:$0xff]  ;;  %v198_v26 = vld [vmem:[%s11406_s1 + $0xc8] sm:$0xff] }
 0x22a   :  { %2248 = vmatmul.mubr.bf16.gmra.mrb[248].mxu0 %v6707_v3  ;;  %v6713_v3 = vld [vmem:[%s11405_s0 + $0xc] ss:$16 sps:$4 sm:$0xff]  }
 0x22b   :  { %2255 = vmatprep.mubr.bf16.mxu0 %v6708_v37  ;;  %v192_v37 = vld [vmem:[%s11406_s1 + $0x98] sm:$0xff] }
 0x22c   :  { %2650 = vperm.xlu1 %6598, %v192_v37   ;;  %2665 = vperm.xlu0 %6597, %v195_v33   ;;  %v197_v37 = vld [vmem:[%s11406_s1 + $0xc0] sm:$0xff]  ;;  %v6716_v33 = vld [vmem:[%s11405_s0 + $0x28] ss:$16 sps:$4 sm:$0xff]  }
 0x230   :  { %2660 = vperm.xlu1 %6598, %v194_v20   ;;  %2675 = vperm.xlu0 %6597, %v197_v37   ;;  %v199_v20 = vld [vmem:[%s11406_s1 + $0xd0] sm:$0xff]  ;;  %v202_v37 = vld [vmem:[%s11406_s1 + $0xe8] sm:$0xff] }
 0x232   :  { %2256 = vmatmul.mubr.bf16.gmra.mrb[252].mxu0 %v6710_v6  ;;  %v6714_v6 = vld [vmem:[%s11405_s0 + $0x2c] ss:$16 sps:$4 sm:$0xff]  }
 0x233   :  { %2296 = vmatprep.mubr.bf16.mxu0 %v6713_v3  ;;  %v196_v3 = vld [vmem:[%s11406_s1 + $0xb8] sm:$0xff] }
 0x234   :  { %2670 = vperm.xlu1 %6598, %v196_v3   ;;  %2685 = vperm.xlu0 %6597, %v199_v20   ;;  %v201_v3 = vld [vmem:[%s11406_s1 + $0xe0] sm:$0xff]  ;;  %v6719_v20 = vld [vmem:[%s11405_s0 + $0x48] ss:$16 sps:$4 sm:$0xff]  }
 0x238   :  { %2680 = vperm.xlu1 %6598, %v198_v26   ;;  %2695 = vperm.xlu0 %6597, %v201_v3   ;;  %v203_v26 = vld [vmem:[%s11406_s1 + $0xf0] sm:$0xff]  ;;  %v206_v3 = vld [vmem:[%s11406_s1 + $0x108] sm:$0xff] }
 0x23a   :  { %2297 = vmatmul.mubr.bf16.vlgmr.msra.gmra.mrb[128].mxu0 %v6711_v35  ;;  %v6717_v35 = vld [vmem:[%s11405_s0 + $0x4c] ss:$16 sps:$4 sm:$0xff]  }
 0x23b   :  { %2304 = vmatprep.mubr.bf16.mxu0 %v6714_v6  ;;  %v200_v6 = vld [vmem:[%s11406_s1 + $0xd8] sm:$0xff] }
 0x23c   :  { %2690 = vperm.xlu1 %6598, %v200_v6   ;;  %2705 = vperm.xlu0 %6597, %v203_v26   ;;  %v205_v6 = vld [vmem:[%s11406_s1 + $0x100] sm:$0xff]  ;;  %v6722_v26 = vld [vmem:[%s11405_s0 + $0x68] ss:$16 sps:$4 sm:$0xff]  }
 0x240   :  { %2700 = vperm.xlu1 %6598, %v202_v37   ;;  %2715 = vperm.xlu0 %6597, %v205_v6   ;;  %v207_v37 = vld [vmem:[%s11406_s1 + $0x110] sm:$0xff]  ;;  %v210_v6 = vld [vmem:[%s11406_s1 + $0x128] sm:$0xff] }
 0x242   :  { %2305 = vmatmul.mubr.bf16.gmra.mrb[132].mxu0 %v6716_v33  ;;  %v6720_v33 = vld [vmem:[%s11405_s0 + $0x6c] ss:$16 sps:$4 sm:$0xff]  }
 0x243   :  { %2312 = vmatprep.mubr.bf16.mxu0 %v6717_v35  ;;  %v204_v35 = vld [vmem:[%s11406_s1 + $0xf8] sm:$0xff] }
 0x244   :  { %2710 = vperm.xlu1 %6598, %v204_v35   ;;  %2725 = vperm.xlu0 %6597, %v207_v37   ;;  %v209_v35 = vld [vmem:[%s11406_s1 + $0x120] sm:$0xff]  ;;  %v6725_v37 = vld [vmem:[%s11405_s0 + $0x88] ss:$16 sps:$4 sm:$0xff]  }
 0x248   :  { %2720 = vperm.xlu1 %6598, %v206_v3   ;;  %2735 = vperm.xlu0 %6597, %v209_v35   ;;  %v211_v3 = vld [vmem:[%s11406_s1 + $0x130] sm:$0xff]  ;;  %v214_v35 = vld [vmem:[%s11406_s1 + $0x148] sm:$0xff] }
 0x24a   :  { %2313 = vmatmul.mubr.bf16.gmra.mrb[136].mxu0 %v6719_v20  ;;  %v6723_v20 = vld [vmem:[%s11405_s0 + $0x8c] ss:$16 sps:$4 sm:$0xff]  }
 0x24b   :  { %2320 = vmatprep.mubr.bf16.mxu0 %v6720_v33  ;;  %v208_v33 = vld [vmem:[%s11406_s1 + $0x118] sm:$0xff] }
 0x24c   :  { %2730 = vperm.xlu1 %6598, %v208_v33   ;;  %2745 = vperm.xlu0 %6597, %v211_v3   ;;  %v213_v33 = vld [vmem:[%s11406_s1 + $0x140] sm:$0xff]  ;;  %v6728_v3 = vld [vmem:[%s11405_s0 + $0xa8] ss:$16 sps:$4 sm:$0xff]  }
 0x250   :  { %2740 = vperm.xlu1 %6598, %v210_v6   ;;  %2755 = vperm.xlu0 %6597, %v213_v33   ;;  %v215_v6 = vld [vmem:[%s11406_s1 + $0x150] sm:$0xff]  ;;  %v218_v33 = vld [vmem:[%s11406_s1 + $0x168] sm:$0xff] }
 0x252   :  { %2321 = vmatmul.mubr.bf16.gmra.mrb[140].mxu0 %v6722_v26  ;;  %v6726_v26 = vld [vmem:[%s11405_s0 + $0xac] ss:$16 sps:$4 sm:$0xff]  }
 0x253   :  { %2328 = vmatprep.mubr.bf16.mxu0 %v6723_v20  ;;  %v212_v20 = vld [vmem:[%s11406_s1 + $0x138] sm:$0xff] }
 0x254   :  { %2750 = vperm.xlu1 %6598, %v212_v20   ;;  %2765 = vperm.xlu0 %6597, %v215_v6   ;;  %v217_v20 = vld [vmem:[%s11406_s1 + $0x160] sm:$0xff]  ;;  %v6731_v6 = vld [vmem:[%s11405_s0 + $0xc8] ss:$16 sps:$4 sm:$0xff]  }
 0x258   :  { %2760 = vperm.xlu1 %6598, %v214_v35   ;;  %2775 = vperm.xlu0 %6597, %v217_v20   ;;  %v219_v35 = vld [vmem:[%s11406_s1 + $0x170] sm:$0xff]  ;;  %v222_v20 = vld [vmem:[%s11406_s1 + $0x188] sm:$0xff] }
 0x25a   :  { %2329 = vmatmul.mubr.bf16.gmra.mrb[144].mxu0 %v6725_v37  ;;  %v6729_v37 = vld [vmem:[%s11405_s0 + $0xcc] ss:$16 sps:$4 sm:$0xff]  }
 0x25b   :  { %2336 = vmatprep.mubr.bf16.mxu0 %v6726_v26  ;;  %v216_v26 = vld [vmem:[%s11406_s1 + $0x158] sm:$0xff] }
 0x25c   :  { %2770 = vperm.xlu1 %6598, %v216_v26   ;;  %2785 = vperm.xlu0 %6597, %v219_v35   ;;  %v221_v26 = vld [vmem:[%s11406_s1 + $0x180] sm:$0xff]  ;;  %v6734_v35 = vld [vmem:[%s11405_s0 + $0xe8] ss:$16 sps:$4 sm:$0xff]  }
 0x260   :  { %2780 = vperm.xlu1 %6598, %v218_v33   ;;  %2795 = vperm.xlu0 %6597, %v221_v26   ;;  %v223_v33 = vld [vmem:[%s11406_s1 + $0x190] sm:$0xff]  ;;  %v226_v26 = vld [vmem:[%s11406_s1 + $0x1a8] sm:$0xff] }
 0x262   :  { %2337 = vmatmul.mubr.bf16.gmra.mrb[148].mxu0 %v6728_v3  ;;  %v6732_v3 = vld [vmem:[%s11405_s0 + $0xec] ss:$16 sps:$4 sm:$0xff]  }
 0x263   :  { %2344 = vmatprep.mubr.bf16.mxu0 %v6729_v37  ;;  %v220_v37 = vld [vmem:[%s11406_s1 + $0x178] sm:$0xff] }
 0x264   :  { %2790 = vperm.xlu1 %6598, %v220_v37   ;;  %2805 = vperm.xlu0 %6597, %v223_v33   ;;  %v225_v37 = vld [vmem:[%s11406_s1 + $0x1a0] sm:$0xff]  ;;  %v6737_v33 = vld [vmem:[%s11405_s0 + $0x108] ss:$16 sps:$4 sm:$0xff]  }
 0x268   :  { %2800 = vperm.xlu1 %6598, %v222_v20   ;;  %2815 = vperm.xlu0 %6597, %v225_v37   ;;  %v227_v20 = vld [vmem:[%s11406_s1 + $0x1b0] sm:$0xff]  ;;  %v230_v37 = vld [vmem:[%s11406_s1 + $0x1c8] sm:$0xff] }
 0x26a   :  { %2345 = vmatmul.mubr.bf16.gmra.mrb[152].mxu0 %v6731_v6  ;;  %v6735_v6 = vld [vmem:[%s11405_s0 + $0x10c] ss:$16 sps:$4 sm:$0xff]  }
 0x26b   :  { %2352 = vmatprep.mubr.bf16.mxu0 %v6732_v3  ;;  %v224_v3 = vld [vmem:[%s11406_s1 + $0x198] sm:$0xff] }
 0x26c   :  { %2810 = vperm.xlu1 %6598, %v224_v3   ;;  %2825 = vperm.xlu0 %6597, %v227_v20   ;;  %v229_v3 = vld [vmem:[%s11406_s1 + $0x1c0] sm:$0xff]  ;;  %v6740_v20 = vld [vmem:[%s11405_s0 + $0x128] ss:$16 sps:$4 sm:$0xff]  }
 0x270   :  { %2820 = vperm.xlu1 %6598, %v226_v26   ;;  %2835 = vperm.xlu0 %6597, %v229_v3   ;;  %v231_v26 = vld [vmem:[%s11406_s1 + $0x1d0] sm:$0xff]  ;;  %v234_v3 = vld [vmem:[%s11406_s1 + $0x1e8] sm:$0xff] }
 0x272   :  { %2353 = vmatmul.mubr.bf16.gmra.mrb[156].mxu0 %v6734_v35  ;;  %v6738_v35 = vld [vmem:[%s11405_s0 + $0x12c] ss:$16 sps:$4 sm:$0xff]  }
 0x273   :  { %2360 = vmatprep.mubr.bf16.mxu0 %v6735_v6  ;;  %v228_v6 = vld [vmem:[%s11406_s1 + $0x1b8] sm:$0xff] }
 0x274   :  { %2830 = vperm.xlu1 %6598, %v228_v6   ;;  %2845 = vperm.xlu0 %6597, %v231_v26   ;;  %v233_v6 = vld [vmem:[%s11406_s1 + $0x1e0] sm:$0xff]  ;;  %v6743_v26 = vld [vmem:[%s11405_s0 + $0x148] ss:$16 sps:$4 sm:$0xff]  }
 0x278   :  { %2840 = vperm.xlu1 %6598, %v230_v37   ;;  %2855 = vperm.xlu0 %6597, %v233_v6   ;;  %v235_v37 = vld [vmem:[%s11406_s1 + $0x1f0] sm:$0xff]  ;;  %v6747_v6 = vld [vmem:[%s11405_s0 + $0x18c] ss:$16 sps:$4 sm:$0xff]  }
 0x27a   :  { %2361 = vmatmul.mubr.bf16.gmra.mrb[160].mxu0 %v6737_v33  ;;  %v6741_v33 = vld [vmem:[%s11405_s0 + $0x14c] ss:$16 sps:$4 sm:$0xff]  }
 0x27b   :  { %2368 = vmatprep.mubr.bf16.mxu0 %v6738_v35  ;;  %v232_v35 = vld [vmem:[%s11406_s1 + $0x1d8] sm:$0xff]  ;;  %v8129_v60 = vpop.permute.xlu1 %2565 }
 0x27c   :  { %2850 = vperm.xlu1 %6598, %v232_v35   ;;  %2865 = vperm.xlu0 %6597, %v235_v37   ;;  %v6746_v35 = vld [vmem:[%s11405_s0 + $0x168] ss:$16 sps:$4 sm:$0xff]   ;;  %v6750_v37 = vld [vmem:[%s11405_s0 + $0x1ac] ss:$16 sps:$4 sm:$0xff]   ;;  %11592 = vst [vmem:[#allocation20_spill] sm:$0xff] %v8129_v60 }
 0x280   :  { %2860 = vperm.xlu1 %6598, %v234_v3   ;;  %v6749_v3 = vld [vmem:[%s11405_s0 + $0x188] ss:$16 sps:$4 sm:$0xff]  }
 0x282   :  { %2369 = vmatmul.mubr.bf16.gmra.mrb[164].mxu0 %v6740_v20  ;;  %v6744_v20 = vld [vmem:[%s11405_s0 + $0x16c] ss:$16 sps:$4 sm:$0xff]  }
 0x283   :  { %2376 = vmatprep.mubr.bf16.mxu0 %v6741_v33  ;;  %v236_v33 = vld [vmem:[%s11406_s1 + $0x1f8] sm:$0xff] }
 0x284   :  { %2870 = vperm.xlu1 %6598, %v236_v33   ;;  %v6755_v33 = vld [vmem:[%s11405_s0 + $0x1c8] ss:$16 sps:$4 sm:$0xff]  }
 0x28a   :  { %2377 = vmatmul.mubr.bf16.gmra.mrb[168].mxu0 %v6743_v26  ;;  %v6752_v26 = vld [vmem:[%s11405_s0 + $0x1a8] ss:$16 sps:$4 sm:$0xff]  }
 0x28b   :  { %2384 = vmatprep.mubr.bf16.mxu0 %v6744_v20  ;;  %v6753_v20 = vld [vmem:[%s11405_s0 + $0x1cc] ss:$16 sps:$4 sm:$0xff]  }
 0x292   :  { %2385 = vmatmul.mubr.bf16.gmra.mrb[172].mxu0 %v6746_v35  ;;  %v6756_v35 = vld [vmem:[%s11405_s0 + $0x1ec] ss:$16 sps:$4 sm:$0xff]  }
 0x293   :  { %2392 = vmatprep.mubr.bf16.mxu0 %v6747_v6  ;;  %v6758_v6 = vld [vmem:[%s11405_s0 + $0x1e8] ss:$16 sps:$4 sm:$0xff]  }
 0x29a   :  { %2393 = vmatmul.mubr.bf16.gmra.mrb[176].mxu0 %v6749_v3  ;;  %v6759_v3 = vld [vmem:[%s11405_s0 + $0x20c] ss:$16 sps:$4 sm:$0xff]  }
 0x29b   :  { %2400 = vmatprep.mubr.bf16.mxu0 %v6750_v37  ;;  %v6761_v37 = vld [vmem:[%s11405_s0 + $0x208] ss:$16 sps:$4 sm:$0xff]  }
 0x2a2   :  { %2401 = vmatmul.mubr.bf16.gmra.mrb[180].mxu0 %v6752_v26  ;;  %v6762_v26 = vld [vmem:[%s11405_s0 + $0x22c] ss:$16 sps:$4 sm:$0xff]  }
 0x2a3   :  { %2408 = vmatprep.mubr.bf16.mxu0 %v6753_v20  ;;  %v6764_v20 = vld [vmem:[%s11405_s0 + $0x228] ss:$16 sps:$4 sm:$0xff]  }
 0x2aa   :  { %2409 = vmatmul.mubr.bf16.gmra.mrb[184].mxu0 %v6755_v33  ;;  %v6765_v33 = vld [vmem:[%s11405_s0 + $0x24c] ss:$16 sps:$4 sm:$0xff]  }
 0x2ab   :  { %2416 = vmatprep.mubr.bf16.mxu0 %v6756_v35  ;;  %v6767_v35 = vld [vmem:[%s11405_s0 + $0x248] ss:$16 sps:$4 sm:$0xff]  }
 0x2b2   :  { %2417 = vmatmul.mubr.bf16.gmra.mrb[188].mxu0 %v6758_v6  ;;  %v6768_v6 = vld [vmem:[%s11405_s0 + $0x26c] ss:$16 sps:$4 sm:$0xff]  }
 0x2b3   :  { %2424 = vmatprep.mubr.bf16.mxu0 %v6759_v3  ;;  %v6770_v3 = vld [vmem:[%s11405_s0 + $0x268] ss:$16 sps:$4 sm:$0xff]  }
 0x2ba   :  { %2425 = vmatmul.mubr.bf16.gmra.mrb[192].mxu0 %v6761_v37  ;;  %v6771_v37 = vld [vmem:[%s11405_s0 + $0x28c] ss:$16 sps:$4 sm:$0xff]  }
 0x2bb   :  { %2432 = vmatprep.mubr.bf16.mxu0 %v6762_v26  ;;  %v6773_v26 = vld [vmem:[%s11405_s0 + $0x288] ss:$16 sps:$4 sm:$0xff]  }
 0x2c2   :  { %2433 = vmatmul.mubr.bf16.gmra.mrb[196].mxu0 %v6764_v20  ;;  %v6774_v20 = vld [vmem:[%s11405_s0 + $0x2ac] ss:$16 sps:$4 sm:$0xff]  }
 0x2c3   :  { %2440 = vmatprep.mubr.bf16.mxu0 %v6765_v33  ;;  %v6776_v33 = vld [vmem:[%s11405_s0 + $0x2a8] ss:$16 sps:$4 sm:$0xff]  }
 0x2ca   :  { %2441 = vmatmul.mubr.bf16.gmra.mrb[200].mxu0 %v6767_v35  ;;  %v6777_v35 = vld [vmem:[%s11405_s0 + $0x2cc] ss:$16 sps:$4 sm:$0xff]  }
 0x2cb   :  { %2448 = vmatprep.mubr.bf16.mxu0 %v6768_v6  ;;  %v6779_v6 = vld [vmem:[%s11405_s0 + $0x2c8] ss:$16 sps:$4 sm:$0xff]  }
 0x2d2   :  { %2449 = vmatmul.mubr.bf16.gmra.mrb[204].mxu0 %v6770_v3  ;;  %v6780_v3 = vld [vmem:[%s11405_s0 + $0x2ec] ss:$16 sps:$4 sm:$0xff]  }
 0x2d3   :  { %2456 = vmatprep.mubr.bf16.mxu0 %v6771_v37  ;;  %v6782_v37 = vld [vmem:[%s11405_s0 + $0x2e8] ss:$16 sps:$4 sm:$0xff]  }
 0x2da   :  { %2457 = vmatmul.mubr.bf16.gmra.mrb[208].mxu0 %v6773_v26  ;;  %v6783_v26 = vld [vmem:[%s11405_s0 + $0x30c] ss:$16 sps:$4 sm:$0xff]  }
 0x2db   :  { %2464 = vmatprep.mubr.bf16.mxu0 %v6774_v20  ;;  %v6785_v20 = vld [vmem:[%s11405_s0 + $0x308] ss:$16 sps:$4 sm:$0xff]  }
 0x2e2   :  { %2465 = vmatmul.mubr.bf16.gmra.mrb[212].mxu0 %v6776_v33  ;;  %v6786_v33 = vld [vmem:[%s11405_s0 + $0x32c] ss:$16 sps:$4 sm:$0xff]  }
 0x2e3   :  { %2472 = vmatprep.mubr.bf16.mxu0 %v6777_v35  ;;  %v6788_v35 = vld [vmem:[%s11405_s0 + $0x328] ss:$16 sps:$4 sm:$0xff]  }
 0x2ea   :  { %2473 = vmatmul.mubr.bf16.gmra.mrb[216].mxu0 %v6779_v6  ;;  %v6789_v6 = vld [vmem:[%s11405_s0 + $0x34c] ss:$16 sps:$4 sm:$0xff]  }
 0x2eb   :  { %2480 = vmatprep.mubr.bf16.mxu0 %v6780_v3  ;;  %v6791_v3 = vld [vmem:[%s11405_s0 + $0x348] ss:$16 sps:$4 sm:$0xff]  }
 0x2f2   :  { %2481 = vmatmul.mubr.bf16.gmra.mrb[220].mxu0 %v6782_v37  ;;  %v8103_v37 = vpop.permute.xlu0 %2555 }
 0x2f3   :  { %2488 = vmatprep.mubr.bf16.mxu0 %v6783_v26  ;;  %11590 = vst [vmem:[#allocation18_spill] sm:$0xff] %v8103_v37  ;;  %v6792_v26 = vld [vmem:[%s11405_s0 + $0x36c] ss:$16 sps:$4 sm:$0xff]  }
 0x2fa   :  { %2489 = vmatmul.mubr.bf16.gmra.mrb[224].mxu0 %v6785_v20  ;;  %v8111_v20 = vld [vmem:[%s11407_s5] ss:$0 sm:$0xff] }
 0x2fb   :  { %2496 = vmatprep.mubr.bf16.mxu0 %v6786_v33 }
 0x302   :  { %2497 = vmatmul.mubr.bf16.gmra.mrb[228].mxu0 %v6788_v35  ;;  %v8113_v35 = vpop.permute.xlu0 %2560 }
 0x303   :  { %2504 = vmatprep.mubr.bf16.mxu0 %v6789_v6  ;;  %11591 = vst [vmem:[#allocation19_spill] sm:$0xff] %v8113_v35  ;;  %v1049_v6 = vadd.f32 %v8111_v20, %v7485_v49 }
 0x30a   :  { %2505 = vmatmul.mubr.bf16.gmra.mrb[232].mxu0 %v6791_v3 }
 0x30b   :  { %2512 = vmatprep.mubr.bf16.mxu0 %v6792_v26  ;;  %v1052_v26 = vadd.f32 %v8111_v20, %v7492_v52  ;;  %v6797_v52 = vld [vmem:[%s11405_s0 + $0x388] ss:$16 sps:$4 sm:$0xff]  }
 0x30d   :  { %v2298_v33 = vpop.f32.mrb[128].mxu0 }
 0x30e   :  { %v2873_v46 = vmul.f32 %v8103_v37, %v2298_v33  ;;  %v2300_v10 = vpop.f32.mrb[129].mxu0  ;;  %v1057_v37 = vadd.f32 %v7480_v45, %v8111_v20 }
 0x30f   :  { %v2301_v3 = vpop.f32.mrb[130].mxu0 }
 0x310   :  { %v8126_v28 = vadd.f32 %v2873_v46, %v1049_v6  ;;  %v2874_v12 = vmul.f32 %v8113_v35, %v2301_v3  ;;  %v2303_v49 = vpop.f32.mrb[131].mxu0  ;;  %v8139_v46 = vpop.permute.xlu1 %2570 }
 0x311   :  { %11593 = vst [vmem:[#allocation21_spill] sm:$0xff] %v8139_v46 }
 0x312   :  { %v8131_v10 = vadd.f32 %v2874_v12, %v1052_v26  ;;  %2513 = vmatmul.mubr.bf16.gmra.mrb[236].mxu0 %v6794_v34  ;;  %v6798_v12 = vld [vmem:[%s11405_s0 + $0x3ac] ss:$16 sps:$4 sm:$0xff]   ;;  %v1060_v34 = vadd.f32 %v7490_v51, %v8111_v20  ;;  %v8151_v26 = vpop.permute.xlu0 %2575  ;;  %v6800_v51 = vld [vmem:[%s11405_s0 + $0x3a8] ss:$16 sps:$4 sm:$0xff]  }
 0x313   :  { %2520 = vmatprep.mubr.bf16.mxu0 %v6795_v43  ;;  %11594 = vst [vmem:[#allocation22_spill] sm:$0xff] %v8151_v26 }
 0x315   :  { %v2306_v33 = vpop.f32.mrb[132].mxu0 }
 0x316   :  { %v2875_v18 = vmul.f32 %v8129_v60, %v2306_v33  ;;  %v2308_v5 = vpop.f32.mrb[133].mxu0  ;;  %v1065_v33 = vadd.f32 %v8111_v20, %v7499_v57 }
 0x317   :  { %v2309_v6 = vpop.f32.mrb[134].mxu0 }
 0x318   :  { %v8146_v43 = vadd.f32 %v2875_v18, %v1057_v37  ;;  %v2876_v45 = vmul.f32 %v8139_v46, %v2309_v6  ;;  %v2311_v3 = vpop.f32.mrb[135].mxu0  ;;  %v8159_v18 = vpop.permute.xlu1 %2580  ;;  %v1068_v6 = vadd.f32 %v8111_v20, %v7506_v62  ;;  %v6803_v62 = vld [vmem:[%s11405_s0 + $0x3c8] ss:$16 sps:$4 sm:$0xff]  }
 0x319   :  { %11595 = vst [vmem:[#allocation23_spill] sm:$0xff] %v8159_v18 }
 0x31a   :  { %v8149_v5 = vadd.f32 %v2876_v45, %v1060_v34  ;;  %2521 = vmatmul.mubr.bf16.gmra.mrb[240].mxu0 %v6797_v52  ;;  %v6801_v52 = vld [vmem:[%s11405_s0 + $0x3cc] ss:$16 sps:$4 sm:$0xff]   ;;  %v8171_v45 = vpop.permute.xlu0 %2585 }
 0x31b   :  { %2528 = vmatprep.mubr.bf16.mxu0 %v6798_v12  ;;  %11596 = vst [vmem:[#allocation24_spill] sm:$0xff] %v8171_v45 }
 0x31d   :  { %v2314_v49 = vpop.f32.mrb[136].mxu0 }
 0x31e   :  { %v2877_v60 = vmul.f32 %v8151_v26, %v2314_v49  ;;  %v2316_v35 = vpop.f32.mrb[137].mxu0  ;;  %v1073_v49 = vadd.f32 %v7494_v55, %v8111_v20 }
 0x31f   :  { %v2317_v37 = vpop.f32.mrb[138].mxu0 }
 0x320   :  { %v8166_v12 = vadd.f32 %v2877_v60, %v1065_v33  ;;  %v2878_v57 = vmul.f32 %v8159_v18, %v2317_v37  ;;  %v2319_v34 = vpop.f32.mrb[139].mxu0  ;;  %v8179_v60 = vpop.permute.xlu1 %2590  ;;  %v1076_v37 = vadd.f32 %v7504_v61, %v8111_v20  ;;  %v6806_v61 = vld [vmem:[%s11405_s0 + $0x3e8] ss:$16 sps:$4 sm:$0xff]  }
 0x321   :  { %11597 = vst [vmem:[#allocation25_spill] sm:$0xff] %v8179_v60 }
 0x322   :  { %v8169_v35 = vadd.f32 %v2878_v57, %v1068_v6  ;;  %2529 = vmatmul.mubr.bf16.gmra.mrb[244].mxu0 %v6800_v51  ;;  %v6804_v51 = vld [vmem:[%s11405_s0 + $0x3ec] ss:$16 sps:$4 sm:$0xff]   ;;  %v8191_v57 = vpop.permute.xlu0 %2595 }
 0x323   :  { %2536 = vmatprep.mubr.bf16.mxu0 %v6801_v52  ;;  %11598 = vst [vmem:[#allocation26_spill] sm:$0xff] %v8191_v57 }
 0x325   :  { %v2322_v3 = vpop.f32.mrb[140].mxu0 }
 0x326   :  { %v2879_v26 = vmul.f32 %v8171_v45, %v2322_v3  ;;  %v2324_v46 = vpop.f32.mrb[141].mxu0  ;;  %v1081_v3 = vadd.f32 %v8111_v20, %v7513_v16  ;;  %v8208_v16 = vpop.permute.xlu0 %2605 }
 0x327   :  { %v2325_v33 = vpop.f32.mrb[142].mxu0  ;;  %11600 = vst [vmem:[#allocation28_spill] sm:$0xff] %v8208_v16 }
 0x328   :  { %v8186_v52 = vadd.f32 %v2879_v26, %v1073_v49  ;;  %v2880_v55 = vmul.f32 %v8179_v60, %v2325_v33  ;;  %v2327_v6 = vpop.f32.mrb[143].mxu0  ;;  %v8199_v26 = vpop.permute.xlu1 %2600 }
 0x329   :  { %11599 = vst [vmem:[#allocation27_spill] sm:$0xff] %v8199_v26  ;;  %v1089_v6 = vadd.f32 %v7508_v63, %v8111_v20  ;;  %v1097_v63 = vadd.f32 %v8111_v20, %v7527_v40  ;;  %v1105_v40 = vadd.f32 %v7522_v32, %v8111_v20  ;;  %v1113_v32 = vadd.f32 %v8111_v20, %v7541_v59 }
 0x32a   :  { %v8189_v46 = vadd.f32 %v2880_v55, %v1076_v37  ;;  %2537 = vmatmul.mubr.bf16.gmra.mrb[248].mxu0 %v6803_v62  ;;  %v1084_v62 = vadd.f32 %v8111_v20, %v7520_v25 }
 0x32b   :  { %2544 = vmatprep.mubr.bf16.mxu0 %v6804_v51 }
 0x32c   :  { %v8213_v60 = vpop.permute.xlu1 %2610 }
 0x32d   :  { %v2330_v34 = vpop.f32.mrb[144].mxu0  ;;  %11601 = vst [vmem:[#allocation29_spill] sm:$0xff] %v8213_v60 }
 0x32e   :  { %v2881_v45 = vmul.f32 %v8191_v57, %v2330_v34  ;;  %v2332_v18 = vpop.f32.mrb[145].mxu0 }
 0x32f   :  { %v2333_v49 = vpop.f32.mrb[146].mxu0 }
 0x330   :  { %v8203_v33 = vadd.f32 %v2881_v45, %v1081_v3  ;;  %v2882_v51 = vmul.f32 %v8199_v26, %v2333_v49  ;;  %v2335_v37 = vpop.f32.mrb[147].mxu0  ;;  %v1092_v45 = vadd.f32 %v7518_v24, %v8111_v20  ;;  %v1100_v24 = vadd.f32 %v8111_v20, %v7534_v48 }
 0x331   :  { %v1108_v48 = vadd.f32 %v7532_v47, %v8111_v20 }
 0x332   :  { %v8206_v55 = vadd.f32 %v2882_v51, %v1084_v62  ;;  %2545 = vmatmul.mubr.bf16.gmra.mrb[252].mxu0 %v6806_v61  ;;  %v8222_v51 = vpop.permute.xlu0 %2615 }
 0x333   :  { %11602 = vst [vmem:[#allocation30_spill] sm:$0xff] %v8222_v51 }
 0x335   :  { %v2338_v18 = vpop.f32.mrb[148].mxu0 }
 0x336   :  { %v2883_v34 = vmul.f32 %v8208_v16, %v2338_v18  ;;  %v2340_v57 = vpop.f32.mrb[149].mxu0  ;;  %v8227_v16 = vpop.permute.xlu1 %2620 }
 0x337   :  { %v2341_v25 = vpop.f32.mrb[150].mxu0  ;;  %11603 = vst [vmem:[#allocation31_spill] sm:$0xff] %v8227_v16 }
 0x338   :  { %v8217_v3 = vadd.f32 %v2883_v34, %v1089_v6  ;;  %v2884_v49 = vmul.f32 %v8213_v60, %v2341_v25  ;;  %v2343_v61 = vpop.f32.mrb[151].mxu0 }
 0x33a   :  { %v8220_v62 = vadd.f32 %v2884_v49, %v1092_v45  ;;  %v8236_v49 = vpop.permute.xlu0 %2625 }
 0x33b   :  { %11604 = vst [vmem:[#allocation32_spill] sm:$0xff] %v8236_v49 }
 0x33d   :  { %v2346_v37 = vpop.f32.mrb[152].mxu0 }
 0x33e   :  { %v2885_v57 = vmul.f32 %v8222_v51, %v2346_v37  ;;  %v2348_v18 = vpop.f32.mrb[153].mxu0  ;;  %v8241_v51 = vpop.permute.xlu1 %2630 }
 0x33f   :  { %v2349_v26 = vpop.f32.mrb[154].mxu0  ;;  %11605 = vst [vmem:[#allocation33_spill] sm:$0xff] %v8241_v51 }
 0x340   :  { %v8231_v6 = vadd.f32 %v2885_v57, %v1097_v63  ;;  %v2886_v34 = vmul.f32 %v8227_v16, %v2349_v26  ;;  %v2351_v25 = vpop.f32.mrb[155].mxu0 }
 0x342   :  { %v8234_v45 = vadd.f32 %v2886_v34, %v1100_v24  ;;  %v8250_v34 = vpop.permute.xlu0 %2635  ;;  %v8257_v47 = vpop.permute.xlu1 %2640 }
 0x343   :  { %11606 = vst [vmem:[#allocation34_spill] sm:$0xff] %v8250_v34  ;;  %11607 = vst [vmem:[#allocation35_spill] sm:$0xff] %v8257_v47 }
 0x345   :  { %v2354_v61 = vpop.f32.mrb[156].mxu0 }
 0x346   :  { %v2887_v37 = vmul.f32 %v8236_v49, %v2354_v61  ;;  %v2356_v18 = vpop.f32.mrb[157].mxu0  ;;  %v3067_v61 = vadd.f32 %v8131_v10, %v8126_v28  ;;  %v8268_v16 = vpop.permute.xlu0 %2645 }
 0x347   :  { %v2357_v60 = vpop.f32.mrb[158].mxu0  ;;  %11608 = vst [vmem:[#allocation36_spill] sm:$0xff] %v8268_v16 }
 0x348   :  { %v8245_v63 = vadd.f32 %v2887_v37, %v1105_v40  ;;  %v2888_v26 = vmul.f32 %v8241_v51, %v2357_v60  ;;  %v2359_v57 = vpop.f32.mrb[159].mxu0  ;;  %v1116_v60 = vadd.f32 %v8111_v20, %v7548_v1  ;;  %v3068_v37 = vadd.f32 %v3067_v61, %v8146_v43 }
 0x34a   :  { %v8248_v24 = vadd.f32 %v2888_v26, %v1108_v48  ;;  %v3069_v51 = vadd.f32 %v3068_v37, %v8149_v5 }
 0x34d   :  { %v2362_v25 = vpop.f32.mrb[160].mxu0 }
 0x34e   :  { %v2889_v18 = vmul.f32 %v8250_v34, %v2362_v25  ;;  %v2364_v49 = vpop.f32.mrb[161].mxu0  ;;  %v1121_v25 = vadd.f32 %v7536_v53, %v8111_v20  ;;  %v3070_v34 = vadd.f32 %v3069_v51, %v8166_v12  ;;  %v8285_v51 = vpop.permute.xlu0 %2655 }
 0x34f   :  { %v2365_v40 = vpop.f32.mrb[162].mxu0  ;;  %11610 = vst [vmem:[#allocation38_spill] sm:$0xff] %v8285_v51 }
 0x350   :  { %v8262_v48 = vadd.f32 %v2889_v18, %v1113_v32  ;;  %v2890_v26 = vmul.f32 %v8257_v47, %v2365_v40  ;;  %v2367_v57 = vpop.f32.mrb[163].mxu0  ;;  %v8274_v32 = vpop.permute.xlu1 %2650  ;;  %v1124_v40 = vadd.f32 %v7546_v0, %v8111_v20 }
 0x351   :  { %11609 = vst [vmem:[#allocation37_spill] sm:$0xff] %v8274_v32  ;;  %v3071_v57 = vadd.f32 %v3070_v34, %v8169_v35 }
 0x352   :  { %v8265_v59 = vadd.f32 %v2890_v26, %v1116_v60 }
 0x353   :  { %v3072_v53 = vadd.f32 %v3071_v57, %v8186_v52 }
 0x355   :  { %v2370_v49 = vpop.f32.mrb[164].mxu0  ;;  %v3073_v34 = vadd.f32 %v3072_v53, %v8189_v46 }
 0x356   :  { %v2891_v1 = vmul.f32 %v8268_v16, %v2370_v49  ;;  %v2372_v61 = vpop.f32.mrb[165].mxu0 }
 0x357   :  { %v2373_v18 = vpop.f32.mrb[166].mxu0  ;;  %v1129_v61 = vadd.f32 %v8111_v20, %v7555_v4  ;;  %v3074_v57 = vadd.f32 %v3073_v34, %v8203_v33  ;;  %v8301_v4 = vpop.permute.xlu0 %2665 }
 0x358   :  { %v8278_v60 = vadd.f32 %v2891_v1, %v1121_v25  ;;  %v2892_v37 = vmul.f32 %v8274_v32, %v2373_v18  ;;  %v2375_v26 = vpop.f32.mrb[167].mxu0  ;;  %v8290_v25 = vpop.permute.xlu1 %2660  ;;  %v1132_v18 = vadd.f32 %v8111_v20, %v7562_v8  ;;  %11612 = vst [vmem:[#allocation40_spill] sm:$0xff] %v8301_v4 }
 0x359   :  { %11611 = vst [vmem:[#allocation39_spill] sm:$0xff] %v8290_v25 }
 0x35a   :  { %v8282_v47 = vadd.f32 %v2892_v37, %v1124_v40 }
 0x35d   :  { %v2378_v49 = vpop.f32.mrb[168].mxu0 }
 0x35e   :  { %v2893_v16 = vmul.f32 %v8285_v51, %v2378_v49  ;;  %v2380_v0 = vpop.f32.mrb[169].mxu0  ;;  %v3075_v51 = vadd.f32 %v3074_v57, %v8206_v55  ;;  %v8318_v57 = vpop.permute.xlu0 %2675 }
 0x35f   :  { %v2381_v1 = vpop.f32.mrb[170].mxu0  ;;  %v1137_v0 = vadd.f32 %v7550_v2, %v8111_v20  ;;  %11614 = vst [vmem:[#allocation42_spill] sm:$0xff] %v8318_v57 }
 0x360   :  { %v8295_v40 = vadd.f32 %v2893_v16, %v1129_v61  ;;  %v2894_v37 = vmul.f32 %v8290_v25, %v2381_v1  ;;  %v2383_v26 = vpop.f32.mrb[171].mxu0  ;;  %v8307_v16 = vpop.permute.xlu1 %2670  ;;  %v1140_v1 = vadd.f32 %v7560_v7, %v8111_v20 }
 0x361   :  { %11613 = vst [vmem:[#allocation41_spill] sm:$0xff] %v8307_v16 }
 0x362   :  { %v8299_v32 = vadd.f32 %v2894_v37, %v1132_v18  ;;  %v3076_v18 = vadd.f32 %v3075_v51, %v8217_v3 }
 0x364   :  { %v3077_v2 = vadd.f32 %v3076_v18, %v8220_v62 }
 0x365   :  { %v2386_v49 = vpop.f32.mrb[172].mxu0 }
 0x366   :  { %v2895_v8 = vmul.f32 %v8301_v4, %v2386_v49  ;;  %v2388_v53 = vpop.f32.mrb[173].mxu0  ;;  %v3078_v4 = vadd.f32 %v3077_v2, %v8231_v6  ;;  %v8335_v2 = vpop.permute.xlu0 %2685 }
 0x367   :  { %v2389_v61 = vpop.f32.mrb[174].mxu0  ;;  %v1145_v53 = vadd.f32 %v8111_v20, %v7569_v11  ;;  %11616 = vst [vmem:[#allocation44_spill] sm:$0xff] %v8335_v2 }
 0x368   :  { %v8312_v34 = vadd.f32 %v2895_v8, %v1137_v0  ;;  %v2896_v37 = vmul.f32 %v8307_v16, %v2389_v61  ;;  %v2391_v26 = vpop.f32.mrb[175].mxu0  ;;  %v8324_v0 = vpop.permute.xlu1 %2680  ;;  %v1148_v61 = vadd.f32 %v8111_v20, %v7576_v14 }
 0x369   :  { %11615 = vst [vmem:[#allocation43_spill] sm:$0xff] %v8324_v0  ;;  %v3079_v26 = vadd.f32 %v3078_v4, %v8234_v45 }
 0x36a   :  { %v8315_v25 = vadd.f32 %v2896_v37, %v1140_v1 }
 0x36b   :  { %v3080_v11 = vadd.f32 %v3079_v26, %v8245_v63 }
 0x36d   :  { %v2394_v49 = vpop.f32.mrb[176].mxu0  ;;  %v3081_v4 = vadd.f32 %v3080_v11, %v8248_v24 }
 0x36e   :  { %v2897_v7 = vmul.f32 %v8318_v57, %v2394_v49  ;;  %v2396_v51 = vpop.f32.mrb[177].mxu0 }
 0x36f   :  { %v2397_v8 = vpop.f32.mrb[178].mxu0  ;;  %v1153_v51 = vadd.f32 %v7564_v9, %v8111_v20  ;;  %v3082_v26 = vadd.f32 %v3081_v4, %v8262_v48  ;;  %v8351_v9 = vpop.permute.xlu0 %2695 }
 0x370   :  { %v8328_v1 = vadd.f32 %v2897_v7, %v1145_v53  ;;  %v2898_v18 = vmul.f32 %v8324_v0, %v2397_v8  ;;  %v2399_v37 = vpop.f32.mrb[179].mxu0  ;;  %v8340_v53 = vpop.permute.xlu1 %2690  ;;  %v1156_v8 = vadd.f32 %v7574_v13, %v8111_v20  ;;  %11618 = vst [vmem:[#allocation46_spill] sm:$0xff] %v8351_v9 }
 0x371   :  { %11617 = vst [vmem:[#allocation45_spill] sm:$0xff] %v8340_v53 }
 0x372   :  { %v8332_v16 = vadd.f32 %v2898_v18, %v1148_v61 }
 0x375   :  { %v2402_v49 = vpop.f32.mrb[180].mxu0 }
 0x376   :  { %v2899_v57 = vmul.f32 %v8335_v2, %v2402_v49  ;;  %v2404_v14 = vpop.f32.mrb[181].mxu0  ;;  %v3083_v2 = vadd.f32 %v3082_v26, %v8265_v59  ;;  %v8368_v26 = vpop.permute.xlu0 %2705 }
 0x377   :  { %v2405_v7 = vpop.f32.mrb[182].mxu0  ;;  %v1161_v14 = vadd.f32 %v8111_v20, %v7583_v19  ;;  %11620 = vst [vmem:[#allocation48_spill] sm:$0xff] %v8368_v26 }
 0x378   :  { %v8345_v61 = vadd.f32 %v2899_v57, %v1153_v51  ;;  %v2900_v18 = vmul.f32 %v8340_v53, %v2405_v7  ;;  %v2407_v37 = vpop.f32.mrb[183].mxu0  ;;  %v8357_v57 = vpop.permute.xlu1 %2700  ;;  %v1164_v7 = vadd.f32 %v8111_v20, %v7590_v22 }
 0x379   :  { %11619 = vst [vmem:[#allocation47_spill] sm:$0xff] %v8357_v57 }
 0x37a   :  { %v8349_v0 = vadd.f32 %v2900_v18, %v1156_v8  ;;  %v3084_v8 = vadd.f32 %v3083_v2, %v8278_v60 }
 0x37c   :  { %v3085_v19 = vadd.f32 %v3084_v8, %v8282_v47 }
 0x37d   :  { %v2410_v49 = vpop.f32.mrb[184].mxu0 }
 0x37e   :  { %v2901_v13 = vmul.f32 %v8351_v9, %v2410_v49  ;;  %v2412_v11 = vpop.f32.mrb[185].mxu0  ;;  %v3086_v9 = vadd.f32 %v3085_v19, %v8295_v40  ;;  %v8385_v19 = vpop.permute.xlu0 %2715 }
 0x37f   :  { %v2413_v51 = vpop.f32.mrb[186].mxu0  ;;  %v1169_v11 = vadd.f32 %v7578_v15, %v8111_v20  ;;  %11622 = vst [vmem:[#allocation50_spill] sm:$0xff] %v8385_v19 }
 0x380   :  { %v8362_v4 = vadd.f32 %v2901_v13, %v1161_v14  ;;  %v2902_v18 = vmul.f32 %v8357_v57, %v2413_v51  ;;  %v2415_v37 = vpop.f32.mrb[187].mxu0  ;;  %v8374_v14 = vpop.permute.xlu1 %2710  ;;  %v1172_v51 = vadd.f32 %v7588_v21, %v8111_v20 }
 0x381   :  { %11621 = vst [vmem:[#allocation49_spill] sm:$0xff] %v8374_v14  ;;  %v3087_v37 = vadd.f32 %v3086_v9, %v8299_v32 }
 0x382   :  { %v8365_v53 = vadd.f32 %v2902_v18, %v1164_v7 }
 0x383   :  { %v3088_v15 = vadd.f32 %v3087_v37, %v8312_v34 }
 0x385   :  { %v2418_v49 = vpop.f32.mrb[188].mxu0  ;;  %v3089_v9 = vadd.f32 %v3088_v15, %v8315_v25 }
 0x386   :  { %v2903_v22 = vmul.f32 %v8368_v26, %v2418_v49  ;;  %v2420_v2 = vpop.f32.mrb[189].mxu0 }
 0x387   :  { %v2421_v13 = vpop.f32.mrb[190].mxu0  ;;  %v1177_v2 = vadd.f32 %v8111_v20, %v7597_v27  ;;  %v3090_v37 = vadd.f32 %v3089_v9, %v8328_v1  ;;  %v8401_v27 = vpop.permute.xlu0 %2725 }
 0x388   :  { %v8378_v7 = vadd.f32 %v2903_v22, %v1169_v11  ;;  %v2904_v8 = vmul.f32 %v8374_v14, %v2421_v13  ;;  %v2423_v18 = vpop.f32.mrb[191].mxu0  ;;  %v8390_v11 = vpop.permute.xlu1 %2720  ;;  %v1180_v13 = vadd.f32 %v8111_v20, %v7604_v30  ;;  %11625 = vst [vmem:[#allocation53_spill] sm:$0xff] %v8401_v27 }
 0x389   :  { %11623 = vst [vmem:[#allocation51_spill] sm:$0xff] %v8390_v11 }
 0x38a   :  { %v8382_v57 = vadd.f32 %v2904_v8, %v1172_v51 }
 0x38d   :  { %v2426_v49 = vpop.f32.mrb[192].mxu0 }
 0x38e   :  { %v2905_v26 = vmul.f32 %v8385_v19, %v2426_v49  ;;  %v2428_v21 = vpop.f32.mrb[193].mxu0  ;;  %v3091_v19 = vadd.f32 %v3090_v37, %v8332_v16  ;;  %v8418_v37 = vpop.permute.xlu0 %2735 }
 0x38f   :  { %v2429_v22 = vpop.f32.mrb[194].mxu0  ;;  %v1185_v21 = vadd.f32 %v7592_v23, %v8111_v20  ;;  %11629 = vst [vmem:[#allocation57_spill] sm:$0xff] %v8418_v37 }
 0x390   :  { %v8395_v51 = vadd.f32 %v2905_v26, %v1177_v2  ;;  %v2906_v8 = vmul.f32 %v8390_v11, %v2429_v22  ;;  %v2431_v18 = vpop.f32.mrb[195].mxu0  ;;  %v8407_v26 = vpop.permute.xlu1 %2730  ;;  %v1188_v22 = vadd.f32 %v7602_v29, %v8111_v20 }
 0x391   :  { %11626 = vst [vmem:[#allocation54_spill] sm:$0xff] %v8407_v26 }
 0x392   :  { %v8399_v14 = vadd.f32 %v2906_v8, %v1180_v13  ;;  %v3092_v13 = vadd.f32 %v3091_v19, %v8345_v61 }
 0x394   :  { %11624 = vst [vmem:[#allocation52_spill] sm:$0xff] %v8399_v14  ;;  %v3093_v23 = vadd.f32 %v3092_v13, %v8349_v0 }
 0x395   :  { %v2434_v49 = vpop.f32.mrb[196].mxu0 }
 0x396   :  { %v2907_v30 = vmul.f32 %v8401_v27, %v2434_v49  ;;  %v2436_v15 = vpop.f32.mrb[197].mxu0  ;;  %v3094_v27 = vadd.f32 %v3093_v23, %v8362_v4  ;;  %v8435_v23 = vpop.permute.xlu0 %2745 }
 0x397   :  { %v2437_v2 = vpop.f32.mrb[198].mxu0  ;;  %v1193_v15 = vadd.f32 %v8111_v20, %v7611_v36  ;;  %11633 = vst [vmem:[#allocation61_spill] sm:$0xff] %v8435_v23 }
 0x398   :  { %v8412_v9 = vadd.f32 %v2907_v30, %v1185_v21  ;;  %v2908_v8 = vmul.f32 %v8407_v26, %v2437_v2  ;;  %v2439_v18 = vpop.f32.mrb[199].mxu0  ;;  %v8424_v21 = vpop.permute.xlu1 %2740  ;;  %v1196_v2 = vadd.f32 %v8111_v20, %v7618_v39 }
 0x399   :  { %11630 = vst [vmem:[#allocation58_spill] sm:$0xff] %v8424_v21  ;;  %v3095_v18 = vadd.f32 %v3094_v27, %v8365_v53 }
 0x39a   :  { %11627 = vst [vmem:[#allocation55_spill] sm:$0xff] %v8412_v9  ;;  %v8415_v11 = vadd.f32 %v2908_v8, %v1188_v22 }
 0x39b   :  { %v3096_v36 = vadd.f32 %v3095_v18, %v8378_v7 }
 0x39c   :  { %11628 = vst [vmem:[#allocation56_spill] sm:$0xff] %v8415_v11 }
 0x39d   :  { %v2442_v49 = vpop.f32.mrb[200].mxu0  ;;  %v3097_v27 = vadd.f32 %v3096_v36, %v8382_v57 }
 0x39e   :  { %v2909_v29 = vmul.f32 %v8418_v37, %v2442_v49  ;;  %v2444_v19 = vpop.f32.mrb[201].mxu0 }
 0x39f   :  { %v2445_v30 = vpop.f32.mrb[202].mxu0  ;;  %v1201_v19 = vadd.f32 %v7606_v31, %v8111_v20  ;;  %v3098_v18 = vadd.f32 %v3097_v27, %v8395_v51  ;;  %v8451_v31 = vpop.permute.xlu0 %2755 }
 0x3a0   :  { %v8428_v22 = vadd.f32 %v2909_v29, %v1193_v15  ;;  %v2910_v13 = vmul.f32 %v8424_v21, %v2445_v30  ;;  %v2447_v8 = vpop.f32.mrb[203].mxu0  ;;  %v8440_v15 = vpop.permute.xlu1 %2750  ;;  %v1204_v30 = vadd.f32 %v7616_v38, %v8111_v20  ;;  %11637 = vst [vmem:[#allocation65_spill] sm:$0xff] %v8451_v31 }
 0x3a1   :  { %11634 = vst [vmem:[#allocation62_spill] sm:$0xff] %v8440_v15 }
 0x3a2   :  { %11631 = vst [vmem:[#allocation59_spill] sm:$0xff] %v8428_v22  ;;  %v8432_v26 = vadd.f32 %v2910_v13, %v1196_v2 }
 0x3a4   :  { %11632 = vst [vmem:[#allocation60_spill] sm:$0xff] %v8432_v26 }
 0x3a5   :  { %v2450_v49 = vpop.f32.mrb[204].mxu0 }
 0x3a6   :  { %v2911_v37 = vmul.f32 %v8435_v23, %v2450_v49  ;;  %v2452_v39 = vpop.f32.mrb[205].mxu0  ;;  %v3099_v23 = vadd.f32 %v3098_v18, %v8399_v14  ;;  %v8468_v18 = vpop.permute.xlu0 %2765 }
 0x3a7   :  { %v2453_v29 = vpop.f32.mrb[206].mxu0  ;;  %v1209_v39 = vadd.f32 %v8111_v20, %v7625_v44  ;;  %11641 = vst [vmem:[#allocation69_spill] sm:$0xff] %v8468_v18 }
 0x3a8   :  { %v8445_v2 = vadd.f32 %v2911_v37, %v1201_v19  ;;  %v2912_v13 = vmul.f32 %v8440_v15, %v2453_v29  ;;  %v2455_v8 = vpop.f32.mrb[207].mxu0  ;;  %v8457_v37 = vpop.permute.xlu1 %2760  ;;  %v1212_v29 = vadd.f32 %v8111_v20, %v7632_v56 }
 0x3a9   :  { %11638 = vst [vmem:[#allocation66_spill] sm:$0xff] %v8457_v37 }
 0x3aa   :  { %11635 = vst [vmem:[#allocation63_spill] sm:$0xff] %v8445_v2  ;;  %v8449_v21 = vadd.f32 %v2912_v13, %v1204_v30  ;;  %v3100_v30 = vadd.f32 %v3099_v23, %v8412_v9 }
 0x3ac   :  { %11636 = vst [vmem:[#allocation64_spill] sm:$0xff] %v8449_v21  ;;  %v3101_v44 = vadd.f32 %v3100_v30, %v8415_v11 }
 0x3ad   :  { %v2458_v49 = vpop.f32.mrb[208].mxu0 }
 0x3ae   :  { %v2913_v38 = vmul.f32 %v8451_v31, %v2458_v49  ;;  %v2460_v36 = vpop.f32.mrb[209].mxu0  ;;  %v3102_v31 = vadd.f32 %v3101_v44, %v8428_v22  ;;  %v8485_v44 = vpop.permute.xlu0 %2775 }
 0x3af   :  { %v2461_v19 = vpop.f32.mrb[210].mxu0  ;;  %v1217_v36 = vadd.f32 %v7620_v42, %v8111_v20  ;;  %11645 = vst [vmem:[#allocation73_spill] sm:$0xff] %v8485_v44 }
 0x3b0   :  { %v8462_v27 = vadd.f32 %v2913_v38, %v1209_v39  ;;  %v2914_v13 = vmul.f32 %v8457_v37, %v2461_v19  ;;  %v2463_v8 = vpop.f32.mrb[211].mxu0  ;;  %v8474_v39 = vpop.permute.xlu1 %2770  ;;  %v1220_v19 = vadd.f32 %v7630_v50, %v8111_v20 }
 0x3b1   :  { %11642 = vst [vmem:[#allocation70_spill] sm:$0xff] %v8474_v39  ;;  %v3103_v8 = vadd.f32 %v3102_v31, %v8432_v26 }
 0x3b2   :  { %11639 = vst [vmem:[#allocation67_spill] sm:$0xff] %v8462_v27  ;;  %v8465_v15 = vadd.f32 %v2914_v13, %v1212_v29 }
 0x3b3   :  { %v3104_v42 = vadd.f32 %v3103_v8, %v8445_v2 }
 0x3b4   :  { %11640 = vst [vmem:[#allocation68_spill] sm:$0xff] %v8465_v15 }
 0x3b5   :  { %v2466_v49 = vpop.f32.mrb[212].mxu0  ;;  %v3105_v31 = vadd.f32 %v3104_v42, %v8449_v21 }
 0x3b6   :  { %v2915_v56 = vmul.f32 %v8468_v18, %v2466_v49  ;;  %v2468_v23 = vpop.f32.mrb[213].mxu0 }
 0x3b7   :  { %v2469_v38 = vpop.f32.mrb[214].mxu0  ;;  %v1225_v23 = vadd.f32 %v8111_v20, %v7639_v17  ;;  %v3106_v8 = vadd.f32 %v3105_v31, %v8462_v27  ;;  %v8501_v17 = vpop.permute.xlu0 %2785 }
 0x3b8   :  { %v8478_v29 = vadd.f32 %v2915_v56, %v1217_v36  ;;  %v2916_v30 = vmul.f32 %v8474_v39, %v2469_v38  ;;  %v2471_v13 = vpop.f32.mrb[215].mxu0  ;;  %v8490_v36 = vpop.permute.xlu1 %2780  ;;  %v1228_v38 = vadd.f32 %v8111_v20, %v7646_v54  ;;  %11649 = vst [vmem:[#allocation77_spill] sm:$0xff] %v8501_v17 }
 0x3b9   :  { %11646 = vst [vmem:[#allocation74_spill] sm:$0xff] %v8490_v36 }
 0x3ba   :  { %11643 = vst [vmem:[#allocation71_spill] sm:$0xff] %v8478_v29  ;;  %v8482_v37 = vadd.f32 %v2916_v30, %v1220_v19 }
 0x3bc   :  { %11644 = vst [vmem:[#allocation72_spill] sm:$0xff] %v8482_v37 }
 0x3bd   :  { %v2474_v49 = vpop.f32.mrb[216].mxu0 }
 0x3be   :  { %v2917_v18 = vmul.f32 %v8485_v44, %v2474_v49  ;;  %v2476_v50 = vpop.f32.mrb[217].mxu0  ;;  %v3107_v44 = vadd.f32 %v3106_v8, %v8465_v15  ;;  %v8518_v8 = vpop.permute.xlu0 %2795 }
 0x3bf   :  { %v2477_v56 = vpop.f32.mrb[218].mxu0  ;;  %v1233_v50 = vadd.f32 %v7634_v58, %v8111_v20  ;;  %11653 = vst [vmem:[#allocation81_spill] sm:$0xff] %v8518_v8 }
 0x3c0   :  { %v8495_v19 = vadd.f32 %v2917_v18, %v1225_v23  ;;  %v2918_v30 = vmul.f32 %v8490_v36, %v2477_v56  ;;  %v2479_v13 = vpop.f32.mrb[219].mxu0  ;;  %v8507_v18 = vpop.permute.xlu1 %2790  ;;  %v1236_v56 = vadd.f32 %v7644_v41, %v8111_v20 }
 0x3c1   :  { %11650 = vst [vmem:[#allocation78_spill] sm:$0xff] %v8507_v18 }
 0x3c2   :  { %11647 = vst [vmem:[#allocation75_spill] sm:$0xff] %v8495_v19  ;;  %v8499_v39 = vadd.f32 %v2918_v30, %v1228_v38  ;;  %v3108_v38 = vadd.f32 %v3107_v44, %v8478_v29 }
 0x3c4   :  { %11648 = vst [vmem:[#allocation76_spill] sm:$0xff] %v8499_v39  ;;  %v3109_v58 = vadd.f32 %v3108_v38, %v8482_v37 }
 0x3c5   :  { %v2482_v49 = vpop.f32.mrb[220].mxu0 }
 0x3c6   :  { %v2919_v54 = vmul.f32 %v8501_v17, %v2482_v49  ;;  %v2484_v42 = vpop.f32.mrb[221].mxu0  ;;  %v3110_v15 = vadd.f32 %v3109_v58, %v8495_v19 }
 0x3c7   :  { %v2485_v23 = vpop.f32.mrb[222].mxu0  ;;  %v11654_v42 = vld [vmem:[#allocation3_spill] sm:$0xff] }
 0x3c8   :  { %v8512_v31 = vadd.f32 %v2919_v54, %v1233_v50  ;;  %v2920_v30 = vmul.f32 %v8507_v18, %v2485_v23  ;;  %v2487_v13 = vpop.f32.mrb[223].mxu0  ;;  %v1241_v17 = vadd.f32 %v8111_v20, %v11654_v42  ;;  %v8524_v50 = vpop.permute.xlu1 %2800  ;;  %v11656_v23 = vld [vmem:[#allocation5_spill] sm:$0xff]  ;;  %v3111_v18 = vadd.f32 %v3110_v15, %v8499_v39 }
 0x3c9   :  { %11655 = vst [vmem:[#allocation3_spill] sm:$0xff] %v8524_v50  ;;  %v8535_v42 = vpop.permute.xlu0 %2805 }
 0x3ca   :  { %11651 = vst [vmem:[#allocation79_spill] sm:$0xff] %v8512_v31  ;;  %v8515_v36 = vadd.f32 %v2920_v30, %v1236_v56  ;;  %v1244_v56 = vadd.f32 %v8111_v20, %v11656_v23  ;;  %v3112_v58 = vadd.f32 %v3111_v18, %v8512_v31  ;;  %11659 = vst [vmem:[#allocation83_spill] sm:$0xff] %v8535_v42 }
 0x3cc   :  { %11652 = vst [vmem:[#allocation80_spill] sm:$0xff] %v8515_v36  ;;  %v3113_v15 = vadd.f32 %v3112_v58, %v8515_v36 }
 0x3cd   :  { %v2490_v49 = vpop.f32.mrb[224].mxu0 }
 0x3ce   :  { %v2921_v41 = vmul.f32 %v8518_v8, %v2490_v49  ;;  %v2492_v44 = vpop.f32.mrb[225].mxu0 }
 0x3cf   :  { %v2493_v54 = vpop.f32.mrb[226].mxu0  ;;  %v11660_v44 = vld [vmem:[#allocation2_spill] sm:$0xff] }
 0x3d0   :  { %v8528_v30 = vadd.f32 %v2921_v41, %v1241_v17  ;;  %v2922_v38 = vmul.f32 %v8524_v50, %v2493_v54  ;;  %v2495_v13 = vpop.f32.mrb[227].mxu0  ;;  %v1249_v8 = vadd.f32 %v11660_v44, %v8111_v20  ;;  %v8540_v17 = vpop.permute.xlu1 %2810  ;;  %v11662_v54 = vld [vmem:[#allocation4_spill] sm:$0xff] }
 0x3d1   :  { %11661 = vst [vmem:[#allocation2_spill] sm:$0xff] %v8540_v17  ;;  %v1252_v13 = vadd.f32 %v11662_v54, %v8111_v20  ;;  %v8551_v44 = vpop.permute.xlu0 %2815 }
 0x3d2   :  { %11657 = vst [vmem:[#allocation5_spill] sm:$0xff] %v8528_v30  ;;  %v8532_v37 = vadd.f32 %v2922_v38, %v1244_v56  ;;  %v3114_v50 = vadd.f32 %v3113_v15, %v8528_v30  ;;  %11665 = vst [vmem:[#allocation85_spill] sm:$0xff] %v8551_v44 }
 0x3d4   :  { %11658 = vst [vmem:[#allocation82_spill] sm:$0xff] %v8532_v37  ;;  %v3115_v39 = vadd.f32 %v3114_v50, %v8532_v37 }
 0x3d5   :  { %v2498_v49 = vpop.f32.mrb[228].mxu0 }
 0x3d6   :  { %v2923_v19 = vmul.f32 %v8535_v42, %v2498_v49  ;;  %v2500_v23 = vpop.f32.mrb[229].mxu0 }
 0x3d7   :  { %v2501_v41 = vpop.f32.mrb[230].mxu0  ;;  %v11666_v23 = vld [vmem:[#allocation7_spill] sm:$0xff] }
 0x3d8   :  { %v8545_v56 = vadd.f32 %v2923_v19, %v1249_v8  ;;  %v2924_v18 = vmul.f32 %v8540_v17, %v2501_v41  ;;  %v2503_v38 = vpop.f32.mrb[231].mxu0  ;;  %v1257_v42 = vadd.f32 %v8111_v20, %v11666_v23  ;;  %v8557_v19 = vpop.permute.xlu1 %2820  ;;  %v11668_v41 = vld [vmem:[#allocation9_spill] sm:$0xff] }
 0x3d9   :  { %11667 = vst [vmem:[#allocation7_spill] sm:$0xff] %v8557_v19  ;;  %v1260_v38 = vadd.f32 %v8111_v20, %v11668_v41  ;;  %v8568_v23 = vpop.permute.xlu0 %2825 }
 0x3da   :  { %11663 = vst [vmem:[#allocation4_spill] sm:$0xff] %v8545_v56  ;;  %v8549_v31 = vadd.f32 %v2924_v18, %v1252_v13  ;;  %v3116_v13 = vadd.f32 %v3115_v39, %v8545_v56  ;;  %11671 = vst [vmem:[#allocation87_spill] sm:$0xff] %v8568_v23 }
 0x3dc   :  { %11664 = vst [vmem:[#allocation84_spill] sm:$0xff] %v8549_v31  ;;  %v3117_v50 = vadd.f32 %v3116_v13, %v8549_v31 }
 0x3dd   :  { %v2506_v49 = vpop.f32.mrb[232].mxu0 }
 0x3de   :  { %v2925_v54 = vmul.f32 %v8551_v44, %v2506_v49  ;;  %v2508_v58 = vpop.f32.mrb[233].mxu0 }
 0x3df   :  { %v2509_v8 = vpop.f32.mrb[234].mxu0  ;;  %v11672_v58 = vld [vmem:[#allocation6_spill] sm:$0xff] }
 0x3e0   :  { %v8562_v15 = vadd.f32 %v2925_v54, %v1257_v42  ;;  %v2926_v18 = vmul.f32 %v8557_v19, %v2509_v8  ;;  %v2511_v17 = vpop.f32.mrb[235].mxu0  ;;  %v1265_v44 = vadd.f32 %v11672_v58, %v8111_v20  ;;  %v8574_v42 = vpop.permute.xlu1 %2830 }
 0x3e1   :  { %11673 = vst [vmem:[#allocation6_spill] sm:$0xff] %v8574_v42  ;;  %v11674_v17 = vld [vmem:[#allocation8_spill] sm:$0xff]  ;;  %v8585_v58 = vpop.permute.xlu0 %2835 }
 0x3e2   :  { %11669 = vst [vmem:[#allocation9_spill] sm:$0xff] %v8562_v15  ;;  %v8565_v30 = vadd.f32 %v2926_v18, %v1260_v38  ;;  %v3118_v37 = vadd.f32 %v3117_v50, %v8562_v15  ;;  %v1268_v8 = vadd.f32 %v11674_v17, %v8111_v20  ;;  %11676 = vst [vmem:[#allocation88_spill] sm:$0xff] %v8585_v58 }
 0x3e4   :  { %11670 = vst [vmem:[#allocation86_spill] sm:$0xff] %v8565_v30  ;;  %v3119_v19 = vadd.f32 %v3118_v37, %v8565_v30 }
 0x3e5   :  { %v2514_v49 = vpop.f32.mrb[236].mxu0  ;;  %v8599_v30 = vpop.permute.xlu0 %2845 }
 0x3e6   :  { %v2927_v41 = vmul.f32 %v8568_v23, %v2514_v49  ;;  %v2516_v39 = vpop.f32.mrb[237].mxu0 }
 0x3e7   :  { %v2517_v54 = vpop.f32.mrb[238].mxu0  ;;  %v11677_v39 = vld [vmem:[#allocation11_spill] sm:$0xff] }
 0x3e8   :  { %v8578_v38 = vadd.f32 %v2927_v41, %v1265_v44  ;;  %v2928_v13 = vmul.f32 %v8574_v42, %v2517_v54  ;;  %v2519_v18 = vpop.f32.mrb[239].mxu0  ;;  %v1273_v23 = vadd.f32 %v8111_v20, %v11677_v39  ;;  %v8590_v44 = vpop.permute.xlu1 %2840  ;;  %v11679_v54 = vld [vmem:[#allocation13_spill] sm:$0xff] }
 0x3e9   :  { %11678 = vst [vmem:[#allocation11_spill] sm:$0xff] %v8590_v44  ;;  %v1276_v18 = vadd.f32 %v8111_v20, %v11679_v54  ;;  %11680 = vst [vmem:[#allocation13_spill] sm:$0xff] %v8599_v30 }
 0x3ea   :  { %11675 = vst [vmem:[#allocation8_spill] sm:$0xff] %v8578_v38  ;;  %v8582_v31 = vadd.f32 %v2928_v13, %v1268_v8  ;;  %v3120_v50 = vadd.f32 %v3119_v19, %v8578_v38 }
 0x3ec   :  { %v3121_v37 = vadd.f32 %v3120_v50, %v8582_v31  ;;  %v8604_v36 = vpop.permute.xlu1 %2850 }
 0x3ed   :  { %v2522_v49 = vpop.f32.mrb[240].mxu0 }
 0x3ee   :  { %v2929_v15 = vmul.f32 %v8585_v58, %v2522_v49  ;;  %v2524_v17 = vpop.f32.mrb[241].mxu0 }
 0x3ef   :  { %v2525_v41 = vpop.f32.mrb[242].mxu0  ;;  %v11681_v17 = vld [vmem:[#allocation10_spill] sm:$0xff] }
 0x3f0   :  { %v8595_v8 = vadd.f32 %v2929_v15, %v1273_v23  ;;  %v2930_v19 = vmul.f32 %v8590_v44, %v2525_v41  ;;  %v2527_v13 = vpop.f32.mrb[243].mxu0  ;;  %v1281_v58 = vadd.f32 %v11681_v17, %v8111_v20  ;;  %11682 = vst [vmem:[#allocation10_spill] sm:$0xff] %v8604_v36  ;;  %v11683_v23 = vld [vmem:[#allocation12_spill] sm:$0xff]  ;;  %v8611_v17 = vpop.permute.xlu0 %2855 }
 0x3f1   :  { %v1284_v50 = vadd.f32 %v11683_v23, %v8111_v20  ;;  %11685 = vst [vmem:[#allocation89_spill] sm:$0xff] %v8611_v17  ;;  %v8616_v23 = vpop.permute.xlu1 %2860 }
 0x3f2   :  { %v3122_v42 = vadd.f32 %v3121_v37, %v8595_v8  ;;  %v2994_v38 = vadd.f32 %v2930_v19, %v1276_v18 }
 0x3f4   :  { %v3123_v39 = vadd.f32 %v3122_v42, %v2994_v38  ;;  %v237_v42 = vlaneseq }
 0x3f5   :  { %v2530_v49 = vpop.f32.mrb[244].mxu0 }
 0x3f6   :  { %v2931_v56 = vmul.f32 %v8599_v30, %v2530_v49  ;;  %v2532_v54 = vpop.f32.mrb[245].mxu0  ;;  %v8609_v29 = vshrl.u32 %v237_v42, 7 }
 0x3f7   :  { %v2533_v15 = vpop.f32.mrb[246].mxu0  ;;  %v11686_v54 = vld [vmem:[#allocation15_spill] sm:$0xff] }
 0x3f8   :  { %v2995_v41 = vadd.f32 %v2931_v56, %v1281_v58  ;;  %v2932_v37 = vmul.f32 %v8604_v36, %v2533_v15  ;;  %v2535_v18 = vpop.f32.mrb[247].mxu0  ;;  %11684 = vst [vmem:[#allocation12_spill] sm:$0xff] %v8609_v29  ;;  %v1289_v30 = vadd.f32 %v8111_v20, %v11686_v54  ;;  %11687 = vst [vmem:[#allocation15_spill] sm:$0xff] %v8616_v23  ;;  %v11688_v58 = vld [vmem:[#allocation17_spill] sm:$0xff]  ;;  %v8622_v54 = vpop.permute.xlu0 %2865 }
 0x3f9   :  { %v1292_v15 = vadd.f32 %v8111_v20, %v11688_v58  ;;  %v300_v18 = vadd.s32 496, %v8609_v29  ;;  %11689 = vst [vmem:[#allocation17_spill] sm:$0xff] %v8622_v54  ;;  %v8627_v58 = vpop.permute.xlu1 %2870 }
 0x3fa   :  { %v3124_v19 = vadd.f32 %v3123_v39, %v2995_v41  ;;  %v2996_v13 = vadd.f32 %v2932_v37, %v1284_v50 }
 0x3fb   :  { %vm364_vm0 = vcmp.lt.s32.totalorder %v300_v18, 500 }
 0x3fc   :  { %v3125_v44 = vadd.f32 %v3124_v19, %v2996_v13 }
 0x3fd   :  { %v2538_v49 = vpop.f32.mrb[248].mxu0 }
 0x3fe   :  { %v2933_v27 = vmul.f32 %v8611_v17, %v2538_v49  ;;  %v2540_v21 = vpop.f32.mrb[249].mxu0 }
 0x3ff   :  { %v2541_v56 = vpop.f32.mrb[250].mxu0  ;;  %v11690_v21 = vld [vmem:[#allocation14_spill] sm:$0xff] }
 0x400   :  { %v2997_v39 = vadd.f32 %v2933_v27, %v1289_v30  ;;  %v2934_v50 = vmul.f32 %v8616_v23, %v2541_v56  ;;  %v2543_v37 = vpop.f32.mrb[251].mxu0  ;;  %v1297_v17 = vadd.f32 %v11690_v21, %v8111_v20  ;;  %11691 = vst [vmem:[#allocation14_spill] sm:$0xff] %v8627_v58  ;;  %v6956_v27 = vmov 0.0  }
 0x401   :  { %v8629_v30 = vsel %vm364_vm0, 1.0, %v6956_v27 }
 0x402   :  { %v3126_v42 = vadd.f32 %v3125_v44, %v2997_v39  ;;  %v2998_v19 = vadd.f32 %v2934_v50, %v1292_v15  ;;  %11692 = vst [vmem:[#allocation90_spill] sm:$0xff] %v8629_v30  ;;  %v11693_v44 = vld [vmem:[#allocation16_spill] sm:$0xff] }
 0x403   :  { %v1300_v15 = vadd.f32 %v11693_v44, %v8111_v20 }
 0x404   :  { %v3127_v36 = vadd.f32 %v3126_v42, %v2998_v19 }
 0x405   :  { %v2546_v49 = vpop.f32.mrb[252].mxu0 }
 0x406   :  { %v2935_v2 = vmul.f32 %v8622_v54, %v2546_v49  ;;  %v2548_v26 = vpop.f32.mrb[253].mxu0 }
 0x407   :  { %v2549_v56 = vpop.f32.mrb[254].mxu0 }
 0x408   :  { %v2999_v50 = vadd.f32 %v2935_v2, %v1297_v17  ;;  %v2936_v37 = vmul.f32 %v8627_v58, %v2549_v56  ;;  %v2551_v18 = vpop.f32.mrb[255].mxu0 }
 0x40a   :  { %v3065_v42 = vmul.f32 %v8629_v30, %v2999_v50  ;;  %v3000_v23 = vadd.f32 %v2936_v37, %v1300_v15 }
 0x40c   :  { %v3128_v21 = vadd.f32 %v3127_v36, %v3065_v42  ;;  %v3066_v29 = vmul.f32 0.0, %v3000_v23 }
 0x40e   :  { %v3129_v49 = vadd.f32 %v3128_v21, %v3066_v29 }
 0x410   :  { %v3130_v26 = vrot.slane %v3129_v49, 4 }
 0x412   :  { %v3131_v54 = vadd.f32 %v3130_v26, %v3129_v49 }
 0x414   :  { %v3132_v22 = vrot.slane %v3131_v54, 2 }
 0x416   :  { %v3133_v11 = vadd.f32 %v3132_v22, %v3131_v54 }
 0x418   :  { %v3134_v27 = vrot.slane %v3133_v11, 1 }
 0x41a   :  { %v3135_v9 = vadd.f32 %v3134_v27, %v3133_v11 }
 0x41c   :  { %v8635_v14 = vmul.f32 0.002, %v3135_v9 }
 0x41e   :  { %v8639_v20 = vsub.f32 %v8582_v31, %v8635_v14  ;;  %v8643_v2 = vsub.f32 %v8595_v8, %v8635_v14  ;;  %v8646_v36 = vsub.f32 %v2994_v38, %v8635_v14  ;;  %v8649_v29 = vsub.f32 %v2995_v41, %v8635_v14 }
 0x41f   :  { %v8652_v22 = vsub.f32 %v2996_v13, %v8635_v14  ;;  %v8655_v11 = vsub.f32 %v2997_v39, %v8635_v14  ;;  %v8658_v9 = vsub.f32 %v2998_v19, %v8635_v14  ;;  %v8661_v31 = vsub.f32 %v2999_v50, %v8635_v14 }
 0x420   :  { %11694 = vst [vmem:[#allocation16_spill] sm:$0xff] %v8639_v20  ;;  %11695 = vst [vmem:[#allocation91_spill] sm:$0xff] %v8643_v2  ;;  %v8664_v8 = vsub.f32 %v3000_v23, %v8635_v14  ;;  %v8668_v38 = vsub.f32 %v8126_v28, %v8635_v14  ;;  %v8672_v41 = vsub.f32 %v8131_v10, %v8635_v14 }
 0x421   :  { %11696 = vst [vmem:[#allocation92_spill] sm:$0xff] %v8646_v36  ;;  %11697 = vst [vmem:[#allocation93_spill] sm:$0xff] %v8649_v29  ;;  %v8676_v13 = vsub.f32 %v8146_v43, %v8635_v14  ;;  %v8684_v23 = vsub.f32 %v8149_v5, %v8635_v14  ;;  %v8688_v28 = vsub.f32 %v8166_v12, %v8635_v14 }
 0x422   :  { %11698 = vst [vmem:[#allocation94_spill] sm:$0xff] %v8652_v22  ;;  %11699 = vst [vmem:[#allocation95_spill] sm:$0xff] %v8655_v11  ;;  %v3265_v17 = vmul.f32 %v8668_v38, %v8668_v38  ;;  %v3266_v39 = vmul.f32 %v8672_v41, %v8672_v41  ;;  %v8694_v43 = vsub.f32 %v8169_v35, %v8635_v14 }
 0x423   :  { %11700 = vst [vmem:[#allocation96_spill] sm:$0xff] %v8661_v31  ;;  %v3267_v10 = vmul.f32 %v8676_v13, %v8676_v13  ;;  %v3268_v54 = vmul.f32 %v8684_v23, %v8684_v23  ;;  %v8700_v5 = vsub.f32 %v8186_v52, %v8635_v14  ;;  %v3269_v12 = vmul.f32 %v8688_v28, %v8688_v28 }
 0x424   :  { %v3329_v19 = vadd.f32 %v3266_v39, %v3265_v17  ;;  %v8706_v15 = vsub.f32 %v8189_v46, %v8635_v14  ;;  %v3270_v35 = vmul.f32 %v8694_v43, %v8694_v43  ;;  %v8712_v37 = vsub.f32 %v8203_v33, %v8635_v14 }
 0x425   :  { %v3271_v52 = vmul.f32 %v8700_v5, %v8700_v5  ;;  %v8718_v42 = vsub.f32 %v8206_v55, %v8635_v14  ;;  %v8724_v49 = vsub.f32 %v8217_v3, %v8635_v14  ;;  %v8730_v27 = vsub.f32 %v8220_v62, %v8635_v14 }
 0x426   :  { %v3330_v56 = vadd.f32 %v3329_v19, %v3267_v10  ;;  %v3272_v46 = vmul.f32 %v8706_v15, %v8706_v15  ;;  %v3273_v33 = vmul.f32 %v8712_v37, %v8712_v37  ;;  %v8736_v39 = vsub.f32 %v8231_v6, %v8635_v14 }
 0x427   :  { %v3274_v55 = vmul.f32 %v8718_v42, %v8718_v42  ;;  %v3275_v3 = vmul.f32 %v8724_v49, %v8724_v49  ;;  %v8742_v19 = vsub.f32 %v8234_v45, %v8635_v14  ;;  %v3276_v62 = vmul.f32 %v8730_v27, %v8730_v27 }
 0x428   :  { %v3331_v44 = vadd.f32 %v3330_v56, %v3268_v54  ;;  %v6807_v56 = vld [vmem:[%s11408_s8] sm:$0xff]   ;;  %v8751_v6 = vsub.f32 %v8245_v63, %v8635_v14  ;;  %v8757_v45 = vsub.f32 %v8248_v24, %v8635_v14  ;;  %v8766_v63 = vsub.f32 %v8262_v48, %v8635_v14 }
 0x429   :  { %6179 = vmatprep.subr.bf16.mxu1 %v6807_v56  ;;  %v8772_v24 = vsub.f32 %v8265_v59, %v8635_v14  ;;  %v8781_v48 = vsub.f32 %v8278_v60, %v8635_v14  ;;  %v8787_v59 = vsub.f32 %v8282_v47, %v8635_v14  ;;  %v8796_v60 = vsub.f32 %v8295_v40, %v8635_v14 }
 0x42a   :  { %v3332_v50 = vadd.f32 %v3331_v44, %v3269_v12  ;;  %v3277_v12 = vmul.f32 %v8736_v39, %v8736_v39  ;;  %6180 = vmatpush3.bf16.msra.mxu1 %v6807_v56  ;;  %v8802_v47 = vsub.f32 %v8299_v32, %v8635_v14  ;;  %v8811_v40 = vsub.f32 %v8312_v34, %v8635_v14 }
 0x42b   :  { %v8817_v32 = vsub.f32 %v8315_v25, %v8635_v14  ;;  %v8826_v34 = vsub.f32 %v8328_v1, %v8635_v14  ;;  %v8832_v25 = vsub.f32 %v8332_v16, %v8635_v14  ;;  %v8841_v1 = vsub.f32 %v8345_v61, %v8635_v14  ;;  %v6814_v16 = vld [vmem:[%s11408_s8 + $0x38] sm:$0xff]  }
 0x42c   :  { %v3333_v18 = vadd.f32 %v3332_v50, %v3270_v35  ;;  %v3278_v35 = vmul.f32 %v8742_v19, %v8742_v19  ;;  %v8856_v61 = vsub.f32 %v8362_v4, %v8635_v14 }
 0x42d   :  { %11701 = vst [vmem:[#allocation97_spill] sm:$0xff] %v8841_v1 }
 0x42e   :  { %v3334_v21 = vadd.f32 %v3333_v18, %v3271_v52  ;;  %v6808_v52 = vld [vmem:[%s11408_s8 + $0x8] sm:$0xff]   ;;  %v3279_v18 = vmul.f32 %v8751_v6, %v8751_v6  ;;  %11703 = vst [vmem:[#allocation99_spill] sm:$0xff] %v8856_v61  ;;  %v3293_v4 = vmul.f32 %v8856_v61, %v8856_v61 }
 0x42f   :  { %6181 = vmatprep.subr.bf16.mxu1 %v6808_v52 }
 0x430   :  { %v3335_v26 = vadd.f32 %v3334_v21, %v3272_v46  ;;  %v3280_v21 = vmul.f32 %v8757_v45, %v8757_v45  ;;  %6182 = vmatpush3.bf16.msra.mxu1 %v6808_v52 }
 0x432   :  { %v3336_v17 = vadd.f32 %v3335_v26, %v3273_v33  ;;  %v6809_v26 = vld [vmem:[%s11408_s8 + $0x10] sm:$0xff]  }
 0x433   :  { %6183 = vmatprep.subr.bf16.mxu1 %v6809_v26 }
 0x434   :  { %v3337_v10 = vadd.f32 %v3336_v17, %v3274_v55  ;;  %v3281_v55 = vmul.f32 %v8766_v63, %v8766_v63  ;;  %6184 = vmatpush3.bf16.msra.mxu1 %v6809_v26 }
 0x436   :  { %v3338_v54 = vadd.f32 %v3337_v10, %v3275_v3  ;;  %v3282_v3 = vmul.f32 %v8772_v24, %v8772_v24 }
 0x438   :  { %v3339_v44 = vadd.f32 %v3338_v54, %v3276_v62  ;;  %v6810_v62 = vld [vmem:[%s11408_s8 + $0x18] sm:$0xff]   ;;  %v3283_v54 = vmul.f32 %v8781_v48, %v8781_v48 }
 0x439   :  { %6185 = vmatprep.subr.bf16.mxu1 %v6810_v62 }
 0x43a   :  { %v3340_v50 = vadd.f32 %v3339_v44, %v3277_v12  ;;  %v3284_v12 = vmul.f32 %v8787_v59, %v8787_v59  ;;  %6186 = vmatpush3.bf16.msra.mxu1 %v6810_v62 }
 0x43c   :  { %v3341_v46 = vadd.f32 %v3340_v50, %v3278_v35  ;;  %v6811_v35 = vld [vmem:[%s11408_s8 + $0x20] sm:$0xff]   ;;  %v3285_v50 = vmul.f32 %v8796_v60, %v8796_v60 }
 0x43d   :  { %6187 = vmatprep.subr.bf16.mxu1 %v6811_v35 }
 0x43e   :  { %v3342_v33 = vadd.f32 %v3341_v46, %v3279_v18  ;;  %v3286_v18 = vmul.f32 %v8802_v47, %v8802_v47  ;;  %6188 = vmatpush3.bf16.msra.mxu1 %v6811_v35 }
 0x440   :  { %v3343_v17 = vadd.f32 %v3342_v33, %v3280_v21  ;;  %v6812_v21 = vld [vmem:[%s11408_s8 + $0x28] sm:$0xff]   ;;  %v3287_v33 = vmul.f32 %v8811_v40, %v8811_v40 }
 0x441   :  { %6189 = vmatprep.subr.bf16.mxu1 %v6812_v21 }
 0x442   :  { %v3344_v10 = vadd.f32 %v3343_v17, %v3281_v55  ;;  %v3288_v55 = vmul.f32 %v8817_v32, %v8817_v32  ;;  %6190 = vmatpush3.bf16.msra.mxu1 %v6812_v21  ;;  %v8874_v21 = vsub.f32 %v8382_v57, %v8635_v14 }
 0x444   :  { %v3345_v56 = vadd.f32 %v3344_v10, %v3282_v3  ;;  %v6813_v3 = vld [vmem:[%s11408_s8 + $0x30] sm:$0xff]   ;;  %v3289_v10 = vmul.f32 %v8826_v34, %v8826_v34  ;;  %11706 = vst [vmem:[#allocation102_spill] sm:$0xff] %v8874_v21  ;;  %v3296_v57 = vmul.f32 %v8874_v21, %v8874_v21 }
 0x445   :  { %6191 = vmatprep.subr.bf16.mxu1 %v6813_v3 }
 0x446   :  { %v3346_v44 = vadd.f32 %v3345_v56, %v3283_v54  ;;  %v8850_v54 = vsub.f32 %v8349_v0, %v8635_v14  ;;  %v3290_v56 = vmul.f32 %v8832_v25, %v8832_v25  ;;  %6192 = vmatpush3.bf16.msra.mxu1 %v6813_v3 }
 0x447   :  { %6193 = vmatprep.subr.bf16.mxu1 %v6814_v16 }
 0x448   :  { %v3347_v52 = vadd.f32 %v3346_v44, %v3284_v12  ;;  %11702 = vst [vmem:[#allocation98_spill] sm:$0xff] %v8850_v54  ;;  %v3291_v44 = vmul.f32 %v8841_v1, %v8841_v1  ;;  %v3292_v0 = vmul.f32 %v8850_v54, %v8850_v54 }
 0x44a   :  { %v3348_v46 = vadd.f32 %v3347_v52, %v3285_v50  ;;  %v8862_v50 = vsub.f32 %v8365_v53, %v8635_v14  ;;  %6194 = vmatpush3.bf16.msra.mxu1 %v6814_v16 }
 0x44c   :  { %v3349_v26 = vadd.f32 %v3348_v46, %v3286_v18  ;;  %11704 = vst [vmem:[#allocation100_spill] sm:$0xff] %v8862_v50  ;;  %v8868_v18 = vsub.f32 %v8378_v7, %v8635_v14  ;;  %v3294_v53 = vmul.f32 %v8862_v50, %v8862_v50 }
 0x44e   :  { %v3350_v17 = vadd.f32 %v3349_v26, %v3287_v33  ;;  %11705 = vst [vmem:[#allocation101_spill] sm:$0xff] %v8868_v18  ;;  %v8880_v26 = vsub.f32 %v8395_v51, %v8635_v14  ;;  %v3295_v7 = vmul.f32 %v8868_v18, %v8868_v18 }
 0x450   :  { %v3351_v62 = vadd.f32 %v3350_v17, %v3288_v55  ;;  %11707 = vst [vmem:[#allocation103_spill] sm:$0xff] %v8880_v26  ;;  %v11708_v17 = vld [vmem:[#allocation52_spill] sm:$0xff]  ;;  %v3297_v51 = vmul.f32 %v8880_v26, %v8880_v26 }
 0x451   :  { %v8886_v3 = vsub.f32 %v11708_v17, %v8635_v14 }
 0x452   :  { %v3352_v12 = vadd.f32 %v3351_v62, %v3289_v10  ;;  %v11710_v62 = vld [vmem:[#allocation55_spill] sm:$0xff] }
 0x453   :  { %11709 = vst [vmem:[#allocation52_spill] sm:$0xff] %v8886_v3  ;;  %v8892_v16 = vsub.f32 %v11710_v62, %v8635_v14 }
 0x454   :  { %v3353_v35 = vadd.f32 %v3352_v12, %v3290_v56  ;;  %v11711_v12 = vld [vmem:[#allocation56_spill] sm:$0xff] }
 0x456   :  { %v3354_v52 = vadd.f32 %v3353_v35, %v3291_v44  ;;  %v8898_v44 = vsub.f32 %v11711_v12, %v8635_v14  ;;  %v3298_v35 = vmul.f32 %v8886_v3, %v8886_v3 }
 0x458   :  { %v3355_v46 = vadd.f32 %v3354_v52, %v3292_v0  ;;  %v11712_v52 = vld [vmem:[#allocation59_spill] sm:$0xff] }
 0x45a   :  { %v3356_v33 = vadd.f32 %v3355_v46, %v3293_v4  ;;  %v8904_v4 = vsub.f32 %v11712_v52, %v8635_v14  ;;  %v3299_v46 = vmul.f32 %v8892_v16, %v8892_v16  ;;  %v11716_v52 = vld [vmem:[#allocation67_spill] sm:$0xff] }
 0x45c   :  { %v3357_v55 = vadd.f32 %v3356_v33, %v3294_v53  ;;  %v11713_v33 = vld [vmem:[#allocation60_spill] sm:$0xff]  ;;  %v3301_v62 = vmul.f32 %v8904_v4, %v8904_v4 }
 0x45e   :  { %v3358_v10 = vadd.f32 %v3357_v55, %v3295_v7  ;;  %v8910_v7 = vsub.f32 %v11713_v33, %v8635_v14  ;;  %v3300_v55 = vmul.f32 %v8898_v44, %v8898_v44  ;;  %v8928_v33 = vsub.f32 %v11716_v52, %v8635_v14  ;;  %v11719_v52 = vld [vmem:[#allocation72_spill] sm:$0xff] }
 0x45f   :  { %v8946_v26 = vsub.f32 %v11719_v52, %v8635_v14  ;;  %v11723_v52 = vld [vmem:[#allocation79_spill] sm:$0xff] }
 0x460   :  { %v3359_v56 = vadd.f32 %v3358_v10, %v3296_v57  ;;  %v11714_v57 = vld [vmem:[#allocation63_spill] sm:$0xff]  ;;  %v8964_v50 = vsub.f32 %v11723_v52, %v8635_v14  ;;  %v11729_v52 = vld [vmem:[#allocation82_spill] sm:$0xff] }
 0x461   :  { %v8916_v10 = vsub.f32 %v11714_v57, %v8635_v14  ;;  %v11717_v57 = vld [vmem:[#allocation68_spill] sm:$0xff]  ;;  %v8982_v1 = vsub.f32 %v11729_v52, %v8635_v14  ;;  %v11734_v52 = vld [vmem:[#allocation9_spill] sm:$0xff] }
 0x462   :  { %v3360_v0 = vadd.f32 %v3359_v56, %v3297_v51  ;;  %v11715_v56 = vld [vmem:[#allocation64_spill] sm:$0xff]  ;;  %v8934_v58 = vsub.f32 %v11717_v57, %v8635_v14  ;;  %v11720_v57 = vld [vmem:[#allocation75_spill] sm:$0xff]  ;;  %11724 = vst [vmem:[#allocation56_spill] sm:$0xff] %v8964_v50 }
 0x463   :  { %v8922_v12 = vsub.f32 %v11715_v56, %v8635_v14  ;;  %v11718_v56 = vld [vmem:[#allocation71_spill] sm:$0xff]  ;;  %v8952_v21 = vsub.f32 %v11720_v57, %v8635_v14  ;;  %v11725_v57 = vld [vmem:[#allocation80_spill] sm:$0xff]  ;;  %11730 = vst [vmem:[#allocation63_spill] sm:$0xff] %v8982_v1 }
 0x464   :  { %v3361_v53 = vadd.f32 %v3360_v0, %v3298_v35  ;;  %v3302_v35 = vmul.f32 %v8910_v7, %v8910_v7  ;;  %v8940_v3 = vsub.f32 %v11718_v56, %v8635_v14  ;;  %v11721_v56 = vld [vmem:[#allocation76_spill] sm:$0xff]  ;;  %v8970_v61 = vsub.f32 %v11725_v57, %v8635_v14 }
 0x465   :  { %v8958_v18 = vsub.f32 %v11721_v56, %v8635_v14  ;;  %v11727_v56 = vld [vmem:[#allocation5_spill] sm:$0xff]  ;;  %v11731_v57 = vld [vmem:[#allocation4_spill] sm:$0xff] }
 0x466   :  { %v3362_v17 = vadd.f32 %v3361_v53, %v3299_v46  ;;  %v3303_v46 = vmul.f32 %v8916_v10, %v8916_v10  ;;  %11726 = vst [vmem:[#allocation59_spill] sm:$0xff] %v8970_v61  ;;  %v8976_v54 = vsub.f32 %v11727_v56, %v8635_v14  ;;  %v11732_v56 = vld [vmem:[#allocation84_spill] sm:$0xff] }
 0x467   :  { %11722 = vst [vmem:[#allocation55_spill] sm:$0xff] %v8958_v18 }
 0x468   :  { %v3363_v51 = vadd.f32 %v3362_v17, %v3300_v55  ;;  %v3304_v55 = vmul.f32 %v8922_v12, %v8922_v12  ;;  %11728 = vst [vmem:[#allocation60_spill] sm:$0xff] %v8976_v54 }
 0x46a   :  { %v3364_v0 = vadd.f32 %v3363_v51, %v3301_v62  ;;  %v3305_v62 = vmul.f32 %v8928_v33, %v8928_v33 }
 0x46c   :  { %v3365_v53 = vadd.f32 %v3364_v0, %v3302_v35  ;;  %v3306_v35 = vmul.f32 %v8934_v58, %v8934_v58 }
 0x46e   :  { %v3366_v17 = vadd.f32 %v3365_v53, %v3303_v46  ;;  %v3307_v46 = vmul.f32 %v8940_v3, %v8940_v3 }
 0x470   :  { %v3367_v51 = vadd.f32 %v3366_v17, %v3304_v55  ;;  %v3308_v55 = vmul.f32 %v8946_v26, %v8946_v26 }
 0x472   :  { %v3368_v0 = vadd.f32 %v3367_v51, %v3305_v62  ;;  %v3309_v62 = vmul.f32 %v8952_v21, %v8952_v21 }
 0x474   :  { %v3369_v53 = vadd.f32 %v3368_v0, %v3306_v35  ;;  %v3310_v35 = vmul.f32 %v8958_v18, %v8958_v18  ;;  %v8988_v18 = vsub.f32 %v11731_v57, %v8635_v14  ;;  %v11735_v57 = vld [vmem:[#allocation86_spill] sm:$0xff] }
 0x476   :  { %v3370_v17 = vadd.f32 %v3369_v53, %v3307_v46  ;;  %v3311_v46 = vmul.f32 %v8964_v50, %v8964_v50  ;;  %v8994_v50 = vsub.f32 %v11732_v56, %v8635_v14  ;;  %v11736_v56 = vld [vmem:[#allocation8_spill] sm:$0xff] }
 0x478   :  { %v3371_v51 = vadd.f32 %v3370_v17, %v3308_v55  ;;  %v3312_v55 = vmul.f32 %v8970_v61, %v8970_v61  ;;  %11733 = vst [vmem:[#allocation64_spill] sm:$0xff] %v8994_v50  ;;  %v9000_v61 = vsub.f32 %v11734_v52, %v8635_v14 }
 0x47a   :  { %v3372_v0 = vadd.f32 %v3371_v51, %v3309_v62  ;;  %v3313_v62 = vmul.f32 %v8976_v54, %v8976_v54  ;;  %v9006_v54 = vsub.f32 %v11735_v57, %v8635_v14 }
 0x47c   :  { %v3373_v53 = vadd.f32 %v3372_v0, %v3310_v35  ;;  %v3314_v35 = vmul.f32 %v8982_v1, %v8982_v1  ;;  %v9012_v1 = vsub.f32 %v11736_v56, %v8635_v14  ;;  %v3318_v52 = vmul.f32 %v9006_v54, %v9006_v54 }
 0x47d   :  { %v3321_v14 = vmul.f32 %v8643_v2, %v8643_v2  ;;  %v3322_v56 = vmul.f32 %v8646_v36, %v8646_v36 }
 0x47e   :  { %v3374_v17 = vadd.f32 %v3373_v53, %v3311_v46  ;;  %v3315_v46 = vmul.f32 %v8988_v18, %v8988_v18 }
 0x480   :  { %v3375_v51 = vadd.f32 %v3374_v17, %v3312_v55  ;;  %v3316_v55 = vmul.f32 %v8994_v50, %v8994_v50  ;;  %v3320_v50 = vmul.f32 %v8639_v20, %v8639_v20 }
 0x482   :  { %v3376_v0 = vadd.f32 %v3375_v51, %v3313_v62  ;;  %v3317_v62 = vmul.f32 %v9000_v61, %v9000_v61 }
 0x484   :  { %v3377_v53 = vadd.f32 %v3376_v0, %v3314_v35  ;;  %v3319_v0 = vmul.f32 %v9012_v1, %v9012_v1 }
 0x486   :  { %v3378_v17 = vadd.f32 %v3377_v53, %v3315_v46 }
 0x488   :  { %v3379_v51 = vadd.f32 %v3378_v17, %v3316_v55  ;;  %v3323_v17 = vmul.f32 %v8649_v29, %v8649_v29 }
 0x48a   :  { %v3380_v35 = vadd.f32 %v3379_v51, %v3317_v62  ;;  %v3324_v51 = vmul.f32 %v8652_v22, %v8652_v22 }
 0x48c   :  { %v3381_v57 = vadd.f32 %v3380_v35, %v3318_v52  ;;  %v3263_v35 = vmul.f32 %v8629_v30, %v8661_v31 }
 0x48e   :  { %v3382_v46 = vadd.f32 %v3381_v57, %v3319_v0  ;;  %v3325_v0 = vmul.f32 %v8655_v11, %v8655_v11 }
 0x490   :  { %v3383_v53 = vadd.f32 %v3382_v46, %v3320_v50  ;;  %v3264_v50 = vmul.f32 0.0, %v8664_v8  ;;  %v3326_v46 = vmul.f32 %v8658_v9, %v8658_v9 }
 0x492   :  { %v3384_v55 = vadd.f32 %v3383_v53, %v3321_v14  ;;  %v3327_v53 = vmul.f32 %v3263_v35, %v3263_v35 }
 0x494   :  { %v3385_v62 = vadd.f32 %v3384_v55, %v3322_v56  ;;  %v3328_v56 = vmul.f32 %v3264_v50, %v3264_v50 }
 0x496   :  { %v3386_v52 = vadd.f32 %v3385_v62, %v3323_v17 }
 0x498   :  { %v3387_v57 = vadd.f32 %v3386_v52, %v3324_v51  ;;  %v9040_v51 = vld [vmem:[%s11409_s9] sm:$0xff]  }
 0x499   :  { %6259 = vmatprep.subr.bf16.mxu1 %v9040_v51 }
 0x49a   :  { %v3388_v14 = vadd.f32 %v3387_v57, %v3325_v0 }
 0x49c   :  { %v3389_v29 = vadd.f32 %v3388_v14, %v3326_v46 }
 0x49e   :  { %v3390_v55 = vadd.f32 %v3389_v29, %v3327_v53  ;;  %v3001_v29 = vld [vmem:[%s11410_s6] sm:$0x1] }
 0x4a0   :  { %v3391_v36 = vadd.f32 %v3390_v55, %v3328_v56 }
 0x4a2   :  { %v3392_v22 = vrot.slane %v3391_v36, 4 }
 0x4a4   :  { %v3393_v17 = vadd.f32 %v3392_v22, %v3391_v36  ;;  %v11737_v36 = vld [vmem:[#allocation12_spill] sm:$0xff] }
 0x4a5   :  { %v11529_v22 = vsub.s32 0, %v11737_v36  ;;  %v11747_v36 = vld [vmem:[#allocation93_spill] sm:$0xff] }
 0x4a6   :  { %v3394_v62 = vrot.slane %v3393_v17, 2 }
 0x4a8   :  { %v3395_v2 = vadd.f32 %v3394_v62, %v3393_v17 }
 0x4aa   :  { %v3396_v30 = vrot.slane %v3395_v2, 1 }
 0x4ac   :  { %v3397_v31 = vadd.f32 %v3396_v30, %v3395_v2 }
 0x4ae   :  { %v3398_v20 = vmul.f32 0.002, %v3397_v31 }
 0x4b0   :  { %v3399_v11 = vadd.f32 1e-05, %v3398_v20 }
 0x4b2   :  { %6823 = vrsqrt.f32 %v3399_v11 }
 0x4bc   :  { %v6824_v52 = vpop.eup %6823 }
 0x4bd   :  { %v3401_v35 = vmul.f32 %v6824_v52, %v3001_v29 }
 0x4bf   :  { %v9049_v30 = vrot.slane %v3401_v35, %v11529_v22 }
 0x4c1   :  { %v9053_v20 = vmul.f32 %v9049_v30, %v8664_v8  ;;  %v3408_v2 = vmul.f32 %v9049_v30, %v8676_v13  ;;  %v3409_v11 = vmul.f32 %v9049_v30, %v8684_v23  ;;  %v3410_v31 = vmul.f32 %v9049_v30, %v8688_v28 }
 0x4c2   :  { %v3411_v0 = vmul.f32 %v9049_v30, %v8694_v43  ;;  %v3412_v57 = vmul.f32 %v9049_v30, %v8700_v5  ;;  %v3413_v50 = vmul.f32 %v9049_v30, %v8706_v15  ;;  %v3414_v8 = vmul.f32 %v9049_v30, %v8712_v37 }
 0x4c3   :  { %v3415_v13 = vmul.f32 %v9049_v30, %v8718_v42  ;;  %v9073_v23 = vmul.f32 %v9049_v30, %v8724_v49  ;;  %v9077_v28 = vmul.f32 %v9049_v30, %v8730_v27  ;;  %v9081_v43 = vmul.f32 %v9049_v30, %v8736_v39 }
 0x4c4   :  { %v9085_v5 = vmul.f32 %v9049_v30, %v8742_v19  ;;  %v9089_v15 = vmul.f32 %v9049_v30, %v8751_v6  ;;  %v9093_v37 = vmul.f32 %v9049_v30, %v8757_v45  ;;  %v9097_v42 = vmul.f32 %v9049_v30, %v8766_v63  ;;  %v9122_v45 = vld [vmem:[%s11411_s7] ss:$0 sm:$0xff] }
 0x4c5   :  { %v9101_v49 = vmul.f32 %v9049_v30, %v8772_v24  ;;  %v9105_v27 = vmul.f32 %v9049_v30, %v8781_v48  ;;  %v9109_v39 = vmul.f32 %v9049_v30, %v8787_v59  ;;  %v9113_v19 = vmul.f32 %v9049_v30, %v8796_v60 }
 0x4c6   :  { %v9117_v6 = vmul.f32 %v9049_v30, %v8802_v47  ;;  %v9126_v63 = vmul.f32 %v9049_v30, %v8811_v40  ;;  %v9130_v24 = vmul.f32 %v9049_v30, %v8817_v32  ;;  %v9134_v48 = vmul.f32 %v9049_v30, %v8826_v34 }
 0x4c7   :  { %v9138_v59 = vmul.f32 %v9049_v30, %v8832_v25  ;;  %v9142_v60 = vmul.f32 %v9049_v30, %v8892_v16  ;;  %v9146_v47 = vmul.f32 %v9049_v30, %v8898_v44  ;;  %v3406_v40 = vmul.f32 %v9049_v30, %v8668_v38 }
 0x4c8   :  { %v3407_v32 = vmul.f32 %v9049_v30, %v8672_v41  ;;  %v3478_v34 = vadd.f32 %v9122_v45, %v3408_v2  ;;  %v3479_v46 = vadd.f32 %v9122_v45, %v3409_v11  ;;  %v3480_v25 = vadd.f32 %v9122_v45, %v3410_v31 }
 0x4c9   :  { %v3481_v14 = vadd.f32 %v9122_v45, %v3411_v0  ;;  %v9158_v16 = vmul.f32 %v9049_v30, %v8904_v4  ;;  %v9162_v44 = vmul.f32 %v9049_v30, %v8910_v7  ;;  %v3476_v38 = vadd.f32 %v9122_v45, %v3406_v40  ;;  %v11738_v0 = vld [vmem:[#allocation55_spill] sm:$0xff]  ;;  %v11739_v40 = vld [vmem:[#allocation56_spill] sm:$0xff] }
 0x4ca   :  { %v3477_v41 = vadd.f32 %v9122_v45, %v3407_v32  ;;  %v9168_v53 = vmul.f32 %v9049_v30, %v8916_v10  ;;  %v9172_v56 = vmul.f32 %v9049_v30, %v8922_v12  ;;  %v3542_v55 = vmax.f32 %v3478_v34, 0.0 }
 0x4cb   :  { %v3543_v17 = vmax.f32 %v3479_v46, 0.0  ;;  %v3540_v4 = vmax.f32 %v3476_v38, 0.0  ;;  %v3544_v52 = vmax.f32 %v3480_v25, 0.0  ;;  %v3545_v29 = vmax.f32 %v3481_v14, 0.0  ;;  %v11742_v38 = vld [vmem:[#allocation63_spill] sm:$0xff] }
 0x4cc   :  { %v3541_v62 = vmax.f32 %v3477_v41, 0.0  ;;  %v9176_v7 = vmul.f32 %v9049_v30, %v8928_v33  ;;  %v9180_v35 = vmul.f32 %v9049_v30, %v8934_v58  ;;  %v9184_v10 = vmul.f32 %v9049_v30, %v8940_v3 }
 0x4cd   :  { %v9186_v12 = vpack.c.bf16 %v3543_v17, %v3542_v55  ;;  %v9190_v2 = vmul.f32 %v9049_v30, %v8946_v26  ;;  %v3482_v31 = vadd.f32 %v9122_v45, %v3412_v57  ;;  %v3483_v33 = vadd.f32 %v9122_v45, %v3413_v50  ;;  %v11740_v26 = vld [vmem:[#allocation59_spill] sm:$0xff]  ;;  %v11741_v50 = vld [vmem:[#allocation60_spill] sm:$0xff] }
 0x4ce   :  { %v9192_v11 = vpack.c.bf16 %v3541_v62, %v3540_v4  ;;  %v9198_v58 = vmul.f32 %v9049_v30, %v8952_v21  ;;  %v9202_v3 = vmul.f32 %v9049_v30, %v11738_v0  ;;  %v9206_v32 = vmul.f32 %v9049_v30, %v11739_v40  ;;  %v6816_v57 = vld [vmem:[%s11409_s9 + $0x8] sm:$0xff]   ;;  %v11743_v17 = vld [vmem:[#allocation64_spill] sm:$0xff] }
 0x4cf   :  { %v9210_v34 = vmul.f32 %v9049_v30, %v11740_v26  ;;  %v9217_v21 = vmul.f32 %v9049_v30, %v11741_v50  ;;  %v9220_v46 = vpack.c.bf16 %v3545_v29, %v3544_v52  ;;  %v3484_v25 = vadd.f32 %v9122_v45, %v3414_v8  ;;  %v11746_v50 = vld [vmem:[#allocation92_spill] sm:$0xff] }
 0x4d0   :  { %6195 = vmatprep.mubr.bf16.mxu1 %v9192_v11  ;;  %v3485_v14 = vadd.f32 %v9122_v45, %v3415_v13  ;;  %v9226_v41 = vmul.f32 %v9049_v30, %v11742_v38  ;;  %v9230_v55 = vmul.f32 %v9049_v30, %v8988_v18  ;;  %v9234_v4 = vmul.f32 %v9049_v30, %v11743_v17 }
 0x4d1   :  { %v9238_v62 = vmul.f32 %v9049_v30, %v9000_v61  ;;  %6196 = vmatmul.mubr.bf16.vlgmr.msra.gmra.mrb[0].mxu1 %v9186_v12  ;;  %v3546_v8 = vmax.f32 %v3482_v31, 0.0  ;;  %v3547_v13 = vmax.f32 %v3483_v33, 0.0  ;;  %v3486_v52 = vadd.f32 %v9122_v45, %v9073_v23  ;;  %v6817_v23 = vld [vmem:[%s11409_s9 + $0x10] sm:$0xff]  }
 0x4d2   :  { %6199 = vmatprep.mubr.bf16.mxu1 %v9220_v46  ;;  %v3487_v18 = vadd.f32 %v9122_v45, %v9077_v28  ;;  %6260 = vmatpush3.bf16.msra.mxu1 %v9040_v51  ;;  %v3488_v29 = vadd.f32 %v9122_v45, %v9081_v43  ;;  %v3489_v61 = vadd.f32 %v9122_v45, %v9085_v5  ;;  %v3548_v43 = vmax.f32 %v3484_v25, 0.0  ;;  %v11744_v33 = vld [vmem:[#allocation16_spill] sm:$0xff] }
 0x4d3   :  { %v3490_v0 = vadd.f32 %v9122_v45, %v9089_v15  ;;  %v3491_v31 = vadd.f32 %v9122_v45, %v9093_v37  ;;  %6261 = vmatprep.subr.bf16.mxu1 %v6816_v57  ;;  %v9260_v51 = vmul.f32 %v9049_v30, %v9006_v54  ;;  %v9264_v28 = vmul.f32 %v9049_v30, %v9012_v1  ;;  %v11745_v37 = vld [vmem:[#allocation91_spill] sm:$0xff] }
 0x4d4   :  { %v3549_v5 = vmax.f32 %v3485_v14, 0.0  ;;  %v9268_v15 = vmul.f32 %v9049_v30, %v11744_v33  ;;  %v9272_v40 = vmul.f32 %v9049_v30, %v11745_v37  ;;  %v3492_v26 = vadd.f32 %v9122_v45, %v9097_v42  ;;  %v6818_v42 = vld [vmem:[%s11409_s9 + $0x18] sm:$0xff]  }
 0x4d5   :  { %v3493_v54 = vadd.f32 %v9122_v45, %v9101_v49  ;;  %v9280_v1 = vmul.f32 %v9049_v30, %v11746_v50  ;;  %v9282_v25 = vpack.c.bf16 %v3547_v13, %v3546_v8  ;;  %v3550_v14 = vmax.f32 %v3486_v52, 0.0  ;;  %v11748_v13 = vld [vmem:[#allocation94_spill] sm:$0xff] }
 0x4d6   :  { %v3551_v38 = vmax.f32 %v3487_v18, 0.0  ;;  %6262 = vmatpush3.bf16.msra.mxu1 %v6816_v57  ;;  %v3552_v17 = vmax.f32 %v3488_v29, 0.0  ;;  %v3553_v33 = vmax.f32 %v3489_v61, 0.0  ;;  %v3554_v22 = vmax.f32 %v3490_v0, 0.0  ;;  %v11749_v61 = vld [vmem:[#allocation95_spill] sm:$0xff] }
 0x4d7   :  { %v3555_v37 = vmax.f32 %v3491_v31, 0.0  ;;  %6263 = vmatprep.subr.bf16.mxu1 %v6817_v23  ;;  %v9289_v49 = vmul.f32 %v9049_v30, %v11747_v36  ;;  %v9291_v50 = vpack.c.bf16 %v3549_v5, %v3548_v43  ;;  %v3494_v8 = vadd.f32 %v9122_v45, %v9105_v27  ;;  %v11750_v31 = vld [vmem:[#allocation96_spill] sm:$0xff] }
 0x4d8   :  { %v3495_v57 = vadd.f32 %v9122_v45, %v9109_v39  ;;  %v9299_v52 = vmul.f32 %v9049_v30, %v11748_v13  ;;  %v3556_v18 = vmax.f32 %v3492_v26, 0.0  ;;  %v3557_v29 = vmax.f32 %v3493_v54, 0.0 }
 0x4d9   :  { %6200 = vmatmul.mubr.bf16.gmra.mrb[4].mxu1 %v9282_v25  ;;  %v9304_v36 = vadd.f32 %v9122_v45, %v9113_v19  ;;  %v9308_v0 = vmul.f32 %v9049_v30, %v11749_v61  ;;  %v9312_v27 = vmul.f32 %v9049_v30, %v8658_v9  ;;  %v9317_v39 = vadd.f32 %v9122_v45, %v9117_v6  ;;  %v6819_v9 = vld [vmem:[%s11409_s9 + $0x20] sm:$0xff]  }
 0x4da   :  { %6203 = vmatprep.mubr.bf16.mxu1 %v9291_v50  ;;  %6264 = vmatpush3.bf16.msra.mxu1 %v6817_v23  ;;  %v9321_v43 = vmul.f32 %v9049_v30, %v11750_v31  ;;  %v9323_v19 = vpack.c.bf16 %v3551_v38, %v3550_v14  ;;  %v9325_v5 = vpack.c.bf16 %v3553_v33, %v3552_v17  ;;  %v3558_v54 = vmax.f32 %v3494_v8, 0.0 }
 0x4db   :  { %v9327_v26 = vpack.c.bf16 %v3555_v37, %v3554_v22  ;;  %6265 = vmatprep.subr.bf16.mxu1 %v6818_v42  ;;  %v3559_v13 = vmax.f32 %v3495_v57, 0.0  ;;  %v9334_v6 = vadd.f32 %v9122_v45, %v9126_v63  ;;  %v9338_v23 = vadd.f32 %v9122_v45, %v9130_v24 }
 0x4dc   :  { %v9340_v14 = vpack.c.bf16 %v3557_v29, %v3556_v18  ;;  %v3560_v22 = vmax.f32 %v9304_v36, 0.0  ;;  %v3510_v38 = vadd.f32 %v9122_v45, %v9142_v60  ;;  %v3511_v17 = vadd.f32 %v9122_v45, %v9146_v47  ;;  %v11753_v36 = vld [vmem:[#allocation98_spill] sm:$0xff] }
 0x4dd   :  { %v3561_v33 = vmax.f32 %v9317_v39, 0.0  ;;  %v9350_v63 = vadd.f32 %v9122_v45, %v9134_v48  ;;  %v3512_v24 = vadd.f32 %v9122_v45, %v9158_v16  ;;  %v3513_v37 = vadd.f32 %v9122_v45, %v9162_v44  ;;  %v6820_v48 = vld [vmem:[%s11409_s9 + $0x28] sm:$0xff]  }
 0x4de   :  { %6266 = vmatpush3.bf16.msra.mxu1 %v6818_v42  ;;  %v3574_v8 = vmax.f32 %v3510_v38, 0.0  ;;  %v3575_v57 = vmax.f32 %v3511_v17, 0.0  ;;  %v3514_v60 = vadd.f32 %v9122_v45, %v9168_v53  ;;  %v3515_v47 = vadd.f32 %v9122_v45, %v9172_v56 }
 0x4df   :  { %6267 = vmatprep.subr.bf16.mxu1 %v6819_v9  ;;  %v9363_v18 = vpack.c.bf16 %v3559_v13, %v3558_v54  ;;  %v3576_v16 = vmax.f32 %v3512_v24, 0.0  ;;  %v3577_v29 = vmax.f32 %v3513_v37, 0.0  ;;  %v3516_v44 = vadd.f32 %v9122_v45, %v9176_v7  ;;  %v6821_v37 = vld [vmem:[%s11409_s9 + $0x30] sm:$0xff]  }
 0x4e0   :  { %v9368_v42 = vpack.c.bf16 %v3575_v57, %v3574_v8  ;;  %v3578_v53 = vmax.f32 %v3514_v60, 0.0  ;;  %v3579_v61 = vmax.f32 %v3515_v47, 0.0  ;;  %v3517_v56 = vadd.f32 %v9122_v45, %v9180_v35 }
 0x4e1   :  { %6204 = vmatmul.mubr.bf16.gmra.mrb[8].mxu1 %v9323_v19  ;;  %v9373_v31 = vpack.c.bf16 %v3577_v29, %v3576_v16  ;;  %v3580_v54 = vmax.f32 %v3516_v44, 0.0  ;;  %v3518_v13 = vadd.f32 %v9122_v45, %v9184_v10  ;;  %v3519_v7 = vadd.f32 %v9122_v45, %v9190_v2 }
 0x4e2   :  { %6207 = vmatprep.mubr.bf16.mxu1 %v9325_v5  ;;  %6268 = vmatpush3.bf16.msra.mxu1 %v6819_v9  ;;  %v9379_v38 = vpack.c.bf16 %v3579_v61, %v3578_v53  ;;  %v3581_v17 = vmax.f32 %v3517_v56, 0.0  ;;  %v3520_v24 = vadd.f32 %v9122_v45, %v9198_v58  ;;  %v3521_v35 = vadd.f32 %v9122_v45, %v9202_v3 }
 0x4e3   :  { %6269 = vmatprep.subr.bf16.mxu1 %v6820_v48  ;;  %v3582_v8 = vmax.f32 %v3518_v13, 0.0  ;;  %v3583_v10 = vmax.f32 %v3519_v7, 0.0  ;;  %v3522_v2 = vadd.f32 %v9122_v45, %v9206_v32  ;;  %v3523_v9 = vadd.f32 %v9122_v45, %v9210_v34 }
 0x4e4   :  { %v9392_v57 = vpack.c.bf16 %v3581_v17, %v3580_v54  ;;  %v3584_v60 = vmax.f32 %v3520_v24, 0.0  ;;  %v3585_v58 = vmax.f32 %v3521_v35, 0.0  ;;  %v3524_v3 = vadd.f32 %v9122_v45, %v9217_v21  ;;  %v6822_v21 = vld [vmem:[%s11409_s9 + $0x38] sm:$0xff]  }
 0x4e5   :  { %v9396_v47 = vpack.c.bf16 %v3583_v10, %v3582_v8  ;;  %v3586_v16 = vmax.f32 %v3522_v2, 0.0  ;;  %v3587_v29 = vmax.f32 %v3523_v9, 0.0  ;;  %v3525_v44 = vadd.f32 %v9122_v45, %v9226_v41 }
 0x4e6   :  { %6270 = vmatpush3.bf16.msra.mxu1 %v6820_v48  ;;  %v9400_v53 = vpack.c.bf16 %v3585_v58, %v3584_v60  ;;  %v3588_v32 = vmax.f32 %v3524_v3, 0.0  ;;  %v3526_v34 = vadd.f32 %v9122_v45, %v9230_v55  ;;  %v3527_v61 = vadd.f32 %v9122_v45, %v9234_v4 }
 0x4e7   :  { %6271 = vmatprep.subr.bf16.mxu1 %v6821_v37  ;;  %v9409_v56 = vpack.c.bf16 %v3587_v29, %v3586_v16  ;;  %v3589_v54 = vmax.f32 %v3525_v44, 0.0  ;;  %v3528_v41 = vadd.f32 %v9122_v45, %v9238_v62  ;;  %v3529_v48 = vadd.f32 %v9122_v45, %v9260_v51 }
 0x4e8   :  { %v3590_v55 = vmax.f32 %v3526_v34, 0.0  ;;  %v3591_v13 = vmax.f32 %v3527_v61, 0.0  ;;  %v3530_v4 = vadd.f32 %v9122_v45, %v9264_v28  ;;  %v3531_v7 = vadd.f32 %v9122_v45, %v9268_v15 }
 0x4e9   :  { %6208 = vmatmul.mubr.bf16.gmra.mrb[12].mxu1 %v9327_v26  ;;  %v9421_v17 = vpack.c.bf16 %v3589_v54, %v3588_v32  ;;  %v3592_v24 = vmax.f32 %v3528_v41, 0.0  ;;  %v3593_v35 = vmax.f32 %v3529_v48, 0.0  ;;  %v3532_v62 = vadd.f32 %v9122_v45, %v9272_v40  ;;  %v11752_v54 = vld [vmem:[#allocation97_spill] sm:$0xff]  ;;  %v11754_v48 = vld [vmem:[#allocation99_spill] sm:$0xff] }
 0x4ea   :  { %6211 = vmatprep.mubr.bf16.mxu1 %v9340_v14  ;;  %6272 = vmatpush3.bf16.msra.mxu1 %v6821_v37  ;;  %v9425_v51 = vpack.c.bf16 %v3591_v13, %v3590_v55  ;;  %v3594_v8 = vmax.f32 %v3530_v4, 0.0  ;;  %v3595_v10 = vmax.f32 %v3531_v7, 0.0  ;;  %v3533_v28 = vadd.f32 %v9122_v45, %v9280_v1  ;;  %v11755_v13 = vld [vmem:[#allocation100_spill] sm:$0xff] }
 0x4eb   :  { %6273 = vmatprep.subr.bf16.mxu1 %v6822_v21  ;;  %v9429_v2 = vpack.c.bf16 %v3593_v35, %v3592_v24  ;;  %v3596_v15 = vmax.f32 %v3532_v62, 0.0  ;;  %v3534_v9 = vadd.f32 %v9122_v45, %v9289_v49  ;;  %v3535_v60 = vadd.f32 %v9122_v45, %v9299_v52 }
 0x4ec   :  { %v9435_v58 = vpack.c.bf16 %v3595_v10, %v3594_v8  ;;  %v3597_v40 = vmax.f32 %v3533_v28, 0.0  ;;  %v3536_v37 = vadd.f32 %v9122_v45, %v9308_v0  ;;  %v3537_v3 = vadd.f32 %v9122_v45, %v9312_v27 }
 0x4ed   :  { %v3598_v1 = vmax.f32 %v3534_v9, 0.0  ;;  %v3599_v16 = vmax.f32 %v3535_v60, 0.0  ;;  %v3538_v29 = vadd.f32 %v9122_v45, %v9321_v43  ;;  %v3539_v49 = vadd.f32 %v9122_v45, %v9053_v20  ;;  %v11757_v9 = vld [vmem:[#allocation102_spill] sm:$0xff] }
 0x4ee   :  { %6274 = vmatpush3.bf16.msra.mxu1 %v6822_v21  ;;  %v3501_v52 = vadd.f32 %v9122_v45, %v9138_v59  ;;  %v9447_v44 = vpack.c.bf16 %v3597_v40, %v3596_v15  ;;  %v3600_v32 = vmax.f32 %v3536_v37, 0.0  ;;  %v3601_v34 = vmax.f32 %v3537_v3, 0.0  ;;  %v11758_v37 = vld [vmem:[#allocation103_spill] sm:$0xff] }
 0x4ef   :  { %v11751_v0 = vmov 0   ;;  %v9454_v27 = vpack.c.bf16 %v3561_v33, %v3560_v22  ;;  %v9456_v43 = vpack.c.bf16 %v3599_v16, %v3598_v1  ;;  %v3602_v61 = vmax.f32 %v3538_v29, 0.0  ;;  %v11759_v1 = vld [vmem:[#allocation52_spill] sm:$0xff] }
 0x4f0   :  { %4381 = vmatprep.subr.bf16.mxu1 %v11751_v0  ;;  %v3603_v20 = vmax.f32 %v3539_v49, 0.0  ;;  %v9459_v21 = vpack.c.bf16 %v3601_v34, %v3600_v32  ;;  %v3432_v41 = vmul.f32 %v9049_v30, %v11752_v54  ;;  %v3433_v39 = vmul.f32 %v9049_v30, %v11753_v36 }
 0x4f1   :  { %6212 = vmatmul.mubr.bf16.gmra.mrb[16].mxu1 %v9363_v18  ;;  %v3562_v22 = vmax.f32 %v9334_v6, 0.0  ;;  %v3563_v33 = vmax.f32 %v9338_v23, 0.0  ;;  %v3434_v55 = vmul.f32 %v9049_v30, %v11754_v48  ;;  %v3435_v4 = vmul.f32 %v9049_v30, %v11755_v13  ;;  %v11756_v23 = vld [vmem:[#allocation101_spill] sm:$0xff] }
 0x4f2   :  { %6215 = vmatprep.mubr.bf16.mxu1 %v9454_v27  ;;  %v9462_v59 = vpack.c.bf16 %v3603_v20, %v3602_v61  ;;  %v3564_v7 = vmax.f32 %v9350_v63, 0.0  ;;  %v3565_v24 = vmax.f32 %v3501_v52, 0.0  ;;  %v3502_v62 = vadd.f32 %v9122_v45, %v3432_v41 }
 0x4f3   :  { %v3615_v35 = vpack.c.bf16 %v3563_v33, %v3562_v22  ;;  %v3503_v8 = vadd.f32 %v9122_v45, %v3433_v39  ;;  %v3504_v28 = vadd.f32 %v9122_v45, %v3434_v55  ;;  %v3505_v6 = vadd.f32 %v9122_v45, %v3435_v4 }
 0x4f4   :  { %v3616_v10 = vpack.c.bf16 %v3565_v24, %v3564_v7  ;;  %v3436_v15 = vmul.f32 %v9049_v30, %v11756_v23  ;;  %v3437_v60 = vmul.f32 %v9049_v30, %v11757_v9  ;;  %v3566_v63 = vmax.f32 %v3502_v62, 0.0 }
 0x4f5   :  { %v3567_v40 = vmax.f32 %v3503_v8, 0.0  ;;  %v3438_v3 = vmul.f32 %v9049_v30, %v11758_v37  ;;  %v3439_v16 = vmul.f32 %v9049_v30, %v11759_v1  ;;  %v3568_v29 = vmax.f32 %v3504_v28, 0.0 }
 0x4f6   :  { %v3569_v49 = vmax.f32 %v3505_v6, 0.0  ;;  %v3506_v32 = vadd.f32 %v9122_v45, %v3436_v15  ;;  %v3507_v34 = vadd.f32 %v9122_v45, %v3437_v60 }
 0x4f7   :  { %v3617_v52 = vpack.c.bf16 %v3567_v40, %v3566_v63  ;;  %v3508_v20 = vadd.f32 %v9122_v45, %v3438_v3  ;;  %v3509_v54 = vadd.f32 %v9122_v45, %v3439_v16 }
 0x4f8   :  { %v3618_v61 = vpack.c.bf16 %v3569_v49, %v3568_v29  ;;  %v3570_v41 = vmax.f32 %v3506_v32, 0.0  ;;  %v3571_v36 = vmax.f32 %v3507_v34, 0.0 }
 0x4f9   :  { %6216 = vmatmul.mubr.bf16.gmra.mrb[20].mxu1 %v3615_v35  ;;  %v3572_v39 = vmax.f32 %v3508_v20, 0.0  ;;  %v3573_v22 = vmax.f32 %v3509_v54, 0.0  ;;  %v6828_v20 = vld [vmem:[%s11405_s0] ss:$16 sps:$4 sm:$0xff]   ;;  %v6829_v54 = vld [vmem:[%s11405_s0 + $0x24] ss:$16 sps:$4 sm:$0xff]  }
 0x4fa   :  { %6219 = vmatprep.mubr.bf16.mxu1 %v3616_v10  ;;  %v3619_v33 = vpack.c.bf16 %v3571_v36, %v3570_v41 }
 0x4fb   :  { %v3620_v30 = vpack.c.bf16 %v3573_v22, %v3572_v39 }
 0x501   :  { %6220 = vmatmul.mubr.bf16.gmra.mrb[24].mxu1 %v3617_v52 }
 0x502   :  { %6223 = vmatprep.mubr.bf16.mxu1 %v3618_v61 }
 0x509   :  { %6224 = vmatmul.mubr.bf16.gmra.mrb[28].mxu1 %v3619_v33 }
 0x50a   :  { %6227 = vmatprep.mubr.bf16.mxu1 %v3620_v30 }
 0x511   :  { %6228 = vmatmul.mubr.bf16.gmra.mrb[32].mxu1 %v9368_v42 }
 0x512   :  { %6231 = vmatprep.mubr.bf16.mxu1 %v9373_v31 }
 0x519   :  { %6232 = vmatmul.mubr.bf16.gmra.mrb[36].mxu1 %v9379_v38 }
 0x51a   :  { %6235 = vmatprep.mubr.bf16.mxu1 %v9392_v57 }
 0x521   :  { %6236 = vmatmul.mubr.bf16.gmra.mrb[40].mxu1 %v9396_v47 }
 0x522   :  { %6239 = vmatprep.mubr.bf16.mxu1 %v9400_v53 }
 0x529   :  { %6240 = vmatmul.mubr.bf16.gmra.mrb[44].mxu1 %v9409_v56 }
 0x52a   :  { %6243 = vmatprep.mubr.bf16.mxu1 %v9421_v17 }
 0x531   :  { %6244 = vmatmul.mubr.bf16.gmra.mrb[48].mxu1 %v9425_v51 }
 0x532   :  { %6247 = vmatprep.mubr.bf16.mxu1 %v9429_v2 }
 0x539   :  { %6248 = vmatmul.mubr.bf16.gmra.mrb[52].mxu1 %v9435_v58 }
 0x53a   :  { %6251 = vmatprep.mubr.bf16.mxu1 %v9447_v44 }
 0x541   :  { %6252 = vmatmul.mubr.bf16.gmra.mrb[56].mxu1 %v9456_v43 }
 0x542   :  { %6255 = vmatprep.mubr.bf16.mxu1 %v9459_v21 }
 0x549   :  { %6256 = vmatmul.mubr.bf16.gmra.mrb[60].mxu1 %v9462_v59 }
 0x54a   :  { %6275 = vmatprep.mubr.bf16.mxu1 %v9192_v11 }
 0x551   :  { %6276 = vmatmul.mubr.bf16.vlgmr.msra.gmra.mrb[64].mxu1 %v9186_v12 }
 0x552   :  { %6279 = vmatprep.mubr.bf16.mxu1 %v9220_v46 }
 0x559   :  { %6280 = vmatmul.mubr.bf16.gmra.mrb[68].mxu1 %v9282_v25 }
 0x55a   :  { %6283 = vmatprep.mubr.bf16.mxu1 %v9291_v50 }
 0x561   :  { %6284 = vmatmul.mubr.bf16.gmra.mrb[72].mxu1 %v9323_v19 }
 0x562   :  { %6287 = vmatprep.mubr.bf16.mxu1 %v9325_v5 }
 0x569   :  { %6288 = vmatmul.mubr.bf16.gmra.mrb[76].mxu1 %v9327_v26 }
 0x56a   :  { %6291 = vmatprep.mubr.bf16.mxu1 %v9340_v14 }
 0x571   :  { %6292 = vmatmul.mubr.bf16.gmra.mrb[80].mxu1 %v9363_v18 }
 0x572   :  { %6295 = vmatprep.mubr.bf16.mxu1 %v9454_v27 }
 0x579   :  { %6296 = vmatmul.mubr.bf16.gmra.mrb[84].mxu1 %v3615_v35 }
 0x57a   :  { %6299 = vmatprep.mubr.bf16.mxu1 %v3616_v10 }
 0x581   :  { %6300 = vmatmul.mubr.bf16.gmra.mrb[88].mxu1 %v3617_v52 }
 0x582   :  { %6303 = vmatprep.mubr.bf16.mxu1 %v3618_v61 }
 0x589   :  { %6304 = vmatmul.mubr.bf16.gmra.mrb[92].mxu1 %v3619_v33 }
 0x58a   :  { %6307 = vmatprep.mubr.bf16.mxu1 %v3620_v30 }
 0x591   :  { %6308 = vmatmul.mubr.bf16.gmra.mrb[96].mxu1 %v9368_v42 }
 0x592   :  { %6311 = vmatprep.mubr.bf16.mxu1 %v9373_v31 }
 0x599   :  { %6312 = vmatmul.mubr.bf16.gmra.mrb[100].mxu1 %v9379_v38 }
 0x59a   :  { %6315 = vmatprep.mubr.bf16.mxu1 %v9392_v57 }
 0x5a1   :  { %6316 = vmatmul.mubr.bf16.gmra.mrb[104].mxu1 %v9396_v47 }
 0x5a2   :  { %6319 = vmatprep.mubr.bf16.mxu1 %v9400_v53 }
 0x5a4   :  { %v6197_v45 = vpop.f32.mrb[0].mxu1 }
 0x5a5   :  { %v3751_v12 = vpop.f32.mrb[1].mxu1 }
 0x5a6   :  { %v6198_v11 = vpop.f32.mrb[2].mxu1 }
 0x5a7   :  { %v4350_v46 = vpack.c.bf16 %v6198_v11, %v6197_v45  ;;  %v3754_v25 = vpop.f32.mrb[3].mxu1  ;;  %v6830_v45 = vld [vmem:[%s11405_s0 + $0x20] ss:$16 sps:$4 sm:$0xff]  }
 0x5a8   :  { %v4349_v50 = vpack.c.bf16 %v3754_v25, %v3751_v12  ;;  %v6831_v12 = vld [vmem:[%s11405_s0 + $0x44] ss:$16 sps:$4 sm:$0xff]  }
 0x5a9   :  { %6320 = vmatmul.mubr.bf16.gmra.mrb[108].mxu1 %v9409_v56 }
 0x5aa   :  { %6323 = vmatprep.mubr.bf16.mxu1 %v9421_v17  ;;  %4382 = vmatpush1.bf16.msra.mxu1 %v4349_v50 }
 0x5ab   :  { %4383 = vmatprep.subr.bf16.mxu1 %v11751_v0 }
 0x5ac   :  { %v6201_v19 = vpop.f32.mrb[4].mxu1 }
 0x5ad   :  { %v3767_v5 = vpop.f32.mrb[5].mxu1 }
 0x5ae   :  { %v6202_v26 = vpop.f32.mrb[6].mxu1  ;;  %4384 = vmatpush1.bf16.msra.mxu1 %v4350_v46 }
 0x5af   :  { %v4352_v14 = vpack.c.bf16 %v6202_v26, %v6201_v19  ;;  %v3770_v18 = vpop.f32.mrb[7].mxu1  ;;  %4385 = vmatprep.subr.bf16.mxu1 %v11751_v0  ;;  %v6832_v26 = vld [vmem:[%s11405_s0 + $0x40] ss:$16 sps:$4 sm:$0xff]  }
 0x5b0   :  { %v4351_v42 = vpack.c.bf16 %v3770_v18, %v3767_v5 }
 0x5b1   :  { %6324 = vmatmul.mubr.bf16.gmra.mrb[112].mxu1 %v9425_v51 }
 0x5b2   :  { %6327 = vmatprep.mubr.bf16.mxu1 %v9429_v2  ;;  %4386 = vmatpush1.bf16.msra.mxu1 %v4351_v42 }
 0x5b3   :  { %4387 = vmatprep.subr.bf16.mxu1 %v11751_v0 }
 0x5b4   :  { %v6205_v31 = vpop.f32.mrb[8].mxu1 }
 0x5b5   :  { %v3783_v38 = vpop.f32.mrb[9].mxu1 }
 0x5b6   :  { %v6206_v57 = vpop.f32.mrb[10].mxu1  ;;  %4388 = vmatpush1.bf16.msra.mxu1 %v4352_v14  ;;  %v6833_v14 = vld [vmem:[%s11405_s0 + $0x64] ss:$16 sps:$4 sm:$0xff]  }
 0x5b7   :  { %v4354_v47 = vpack.c.bf16 %v6206_v57, %v6205_v31  ;;  %v3786_v53 = vpop.f32.mrb[11].mxu1  ;;  %4389 = vmatprep.subr.bf16.mxu1 %v11751_v0 }
 0x5b8   :  { %v4353_v56 = vpack.c.bf16 %v3786_v53, %v3783_v38  ;;  %v6834_v53 = vld [vmem:[%s11405_s0 + $0x60] ss:$16 sps:$4 sm:$0xff]  }
 0x5b9   :  { %6328 = vmatmul.mubr.bf16.gmra.mrb[116].mxu1 %v9435_v58 }
 0x5ba   :  { %6331 = vmatprep.mubr.bf16.mxu1 %v9447_v44  ;;  %4390 = vmatpush1.bf16.msra.mxu1 %v4353_v56  ;;  %v6835_v56 = vld [vmem:[%s11405_s0 + $0x84] ss:$16 sps:$4 sm:$0xff]  }
 0x5bb   :  { %4391 = vmatprep.subr.bf16.mxu1 %v11751_v0 }
 0x5bc   :  { %v6209_v17 = vpop.f32.mrb[12].mxu1 }
 0x5bd   :  { %v3799_v51 = vpop.f32.mrb[13].mxu1 }
 0x5be   :  { %v6210_v2 = vpop.f32.mrb[14].mxu1  ;;  %4392 = vmatpush1.bf16.msra.mxu1 %v4354_v47 }
 0x5bf   :  { %v4356_v27 = vpack.c.bf16 %v6210_v2, %v6209_v17  ;;  %v3802_v48 = vpop.f32.mrb[15].mxu1  ;;  %4393 = vmatprep.subr.bf16.mxu1 %v11751_v0 }
 0x5c0   :  { %v4355_v55 = vpack.c.bf16 %v3802_v48, %v3799_v51 }
 0x5c1   :  { %6332 = vmatmul.mubr.bf16.gmra.mrb[120].mxu1 %v9456_v43  ;;  %v6827_v43 = vld [vmem:[%s11405_s0 + $0x4] ss:$16 sps:$4 sm:$0xff]  }
 0x5c2   :  { %6335 = vmatprep.mubr.bf16.mxu1 %v9459_v21  ;;  %4394 = vmatpush1.bf16.msra.mxu1 %v4355_v55 }
 0x5c3   :  { %4395 = vmatprep.subr.bf16.mxu1 %v11751_v0 }
 0x5c4   :  { %v6213_v58 = vpop.f32.mrb[16].mxu1 }
 0x5c5   :  { %v3815_v44 = vpop.f32.mrb[17].mxu1 }
 0x5c6   :  { %v6214_v13 = vpop.f32.mrb[18].mxu1  ;;  %4396 = vmatpush1.bf16.msra.mxu1 %v4356_v27 }
 0x5c7   :  { %v4358_v4 = vpack.c.bf16 %v6214_v13, %v6213_v58  ;;  %v3818_v7 = vpop.f32.mrb[19].mxu1  ;;  %4397 = vmatprep.subr.bf16.mxu1 %v11751_v0  ;;  %v6836_v58 = vld [vmem:[%s11405_s0 + $0x80] ss:$16 sps:$4 sm:$0xff]  }
 0x5c8   :  { %v4357_v24 = vpack.c.bf16 %v3818_v7, %v3815_v44  ;;  %v6837_v44 = vld [vmem:[%s11405_s0 + $0xa4] ss:$16 sps:$4 sm:$0xff]  }
 0x5c9   :  { %6336 = vmatmul.mubr.bf16.gmra.mrb[124].mxu1 %v9462_v59 }
 0x5ca   :  { %4398 = vmatpush1.bf16.msra.mxu1 %v4357_v24  ;;  %4413 = vmatprep.mubr.bf16.mxu1 %v6827_v43 }
 0x5cb   :  { %4399 = vmatprep.subr.bf16.mxu1 %v11751_v0 }
 0x5cc   :  { %v6217_v21 = vpop.f32.mrb[20].mxu1 }
 0x5cd   :  { %v3831_v35 = vpop.f32.mrb[21].mxu1 }
 0x5ce   :  { %v6218_v62 = vpop.f32.mrb[22].mxu1  ;;  %4400 = vmatpush1.bf16.msra.mxu1 %v4358_v4 }
 0x5cf   :  { %v4360_v8 = vpack.c.bf16 %v6218_v62, %v6217_v21  ;;  %v3834_v10 = vpop.f32.mrb[23].mxu1  ;;  %4401 = vmatprep.subr.bf16.mxu1 %v11751_v0  ;;  %v6839_v62 = vld [vmem:[%s11405_s0 + $0xc4] ss:$16 sps:$4 sm:$0xff]  }
 0x5d0   :  { %v4359_v28 = vpack.c.bf16 %v3834_v10, %v3831_v35  ;;  %v6838_v35 = vld [vmem:[%s11405_s0 + $0xa0] ss:$16 sps:$4 sm:$0xff]  }
 0x5d2   :  { %4402 = vmatpush1.bf16.msra.mxu1 %v4359_v28 }
 0x5d3   :  { %4403 = vmatprep.subr.bf16.mxu1 %v11751_v0 }
 0x5d4   :  { %v6221_v59 = vpop.f32.mrb[24].mxu1 }
 0x5d5   :  { %v3847_v6 = vpop.f32.mrb[25].mxu1 }
 0x5d6   :  { %v6222_v23 = vpop.f32.mrb[26].mxu1  ;;  %4404 = vmatpush1.bf16.msra.mxu1 %v4360_v8 }
 0x5d7   :  { %v4362_v15 = vpack.c.bf16 %v6222_v23, %v6221_v59  ;;  %v3850_v9 = vpop.f32.mrb[27].mxu1  ;;  %4405 = vmatprep.subr.bf16.mxu1 %v11751_v0 }
 0x5d8   :  { %v4361_v60 = vpack.c.bf16 %v3850_v9, %v3847_v6  ;;  %v6841_v9 = vld [vmem:[%s11405_s0 + $0xe4] ss:$16 sps:$4 sm:$0xff]  }
 0x5da   :  { %4406 = vmatpush1.bf16.msra.mxu1 %v4361_v60 }
 0x5db   :  { %4407 = vmatprep.subr.bf16.mxu1 %v11751_v0 }
 0x5dc   :  { %v6225_v63 = vpop.f32.mrb[28].mxu1 }
 0x5dd   :  { %v3863_v40 = vpop.f32.mrb[29].mxu1 }
 0x5de   :  { %v6226_v37 = vpop.f32.mrb[30].mxu1  ;;  %4408 = vmatpush1.bf16.msra.mxu1 %v4362_v15  ;;  %v6840_v15 = vld [vmem:[%s11405_s0 + $0xc0] ss:$16 sps:$4 sm:$0xff]  }
 0x5df   :  { %v4364_v3 = vpack.c.bf16 %v6226_v37, %v6225_v63  ;;  %v3866_v1 = vpop.f32.mrb[31].mxu1  ;;  %4409 = vmatprep.subr.bf16.mxu1 %v11751_v0 }
 0x5e0   :  { %v4363_v16 = vpack.c.bf16 %v3866_v1, %v3863_v40 }
 0x5e2   :  { %4410 = vmatpush1.bf16.msra.mxu1 %v4363_v16  ;;  %v6842_v16 = vld [vmem:[%s11405_s0 + $0xe0] ss:$16 sps:$4 sm:$0xff]  }
 0x5e3   :  { %4411 = vmatprep.subr.bf16.mxu1 %v11751_v0 }
 0x5e4   :  { %v6229_v29 = vpop.f32.mrb[32].mxu1 }
 0x5e5   :  { %v3879_v49 = vpop.f32.mrb[33].mxu1 }
 0x5e6   :  { %v6230_v52 = vpop.f32.mrb[34].mxu1  ;;  %4412 = vmatpush1.bf16.msra.mxu1 %v4364_v3 }
 0x5e7   :  { %v4366_v32 = vpack.c.bf16 %v6230_v52, %v6229_v29  ;;  %v3882_v34 = vpop.f32.mrb[35].mxu1  ;;  %4670 = vmatprep.subr.bf16.mxu1 %v11751_v0  ;;  %v6843_v29 = vld [vmem:[%s11405_s0 + $0x104] ss:$16 sps:$4 sm:$0xff]  }
 0x5e8   :  { %v4365_v61 = vpack.c.bf16 %v3882_v34, %v3879_v49 }
 0x5e9   :  { %4414 = vmatmul.mubr.bf16.vlgmr.msra.gmra.mrb[128].mxu1 %v6828_v20  ;;  %v6845_v20 = vld [vmem:[%s11405_s0 + $0x124] ss:$16 sps:$4 sm:$0xff]  }
 0x5ea   :  { %4671 = vmatpush1.bf16.msra.mxu1 %v4365_v61  ;;  %4421 = vmatprep.mubr.bf16.mxu1 %v6829_v54  ;;  %v6844_v61 = vld [vmem:[%s11405_s0 + $0x100] ss:$16 sps:$4 sm:$0xff]  }
 0x5eb   :  { %4672 = vmatprep.subr.bf16.mxu1 %v11751_v0 }
 0x5ec   :  { %v6233_v41 = vpop.f32.mrb[36].mxu1 }
 0x5ed   :  { %v3895_v36 = vpop.f32.mrb[37].mxu1 }
 0x5ee   :  { %v6234_v39 = vpop.f32.mrb[38].mxu1  ;;  %4673 = vmatpush1.bf16.msra.mxu1 %v4366_v32 }
 0x5ef   :  { %v4368_v22 = vpack.c.bf16 %v6234_v39, %v6233_v41  ;;  %v3898_v33 = vpop.f32.mrb[39].mxu1  ;;  %4674 = vmatprep.subr.bf16.mxu1 %v11751_v0  ;;  %v6846_v39 = vld [vmem:[%s11405_s0 + $0x120] ss:$16 sps:$4 sm:$0xff]  }
 0x5f0   :  { %v4367_v30 = vpack.c.bf16 %v3898_v33, %v3895_v36 }
 0x5f1   :  { %4422 = vmatmul.mubr.bf16.gmra.mrb[132].mxu1 %v6830_v45 }
 0x5f2   :  { %4675 = vmatpush1.bf16.msra.mxu1 %v4367_v30  ;;  %4429 = vmatprep.mubr.bf16.mxu1 %v6831_v12 }
 0x5f3   :  { %4676 = vmatprep.subr.bf16.mxu1 %v11751_v0 }
 0x5f4   :  { %v6237_v11 = vpop.f32.mrb[40].mxu1 }
 0x5f5   :  { %v3911_v46 = vpop.f32.mrb[41].mxu1 }
 0x5f6   :  { %v6238_v25 = vpop.f32.mrb[42].mxu1  ;;  %4677 = vmatpush1.bf16.msra.mxu1 %v4368_v22  ;;  %v6847_v22 = vld [vmem:[%s11405_s0 + $0x144] ss:$16 sps:$4 sm:$0xff]  }
 0x5f7   :  { %v4370_v50 = vpack.c.bf16 %v6238_v25, %v6237_v11  ;;  %v3914_v19 = vpop.f32.mrb[43].mxu1  ;;  %4678 = vmatprep.subr.bf16.mxu1 %v11751_v0  ;;  %v6848_v11 = vld [vmem:[%s11405_s0 + $0x140] ss:$16 sps:$4 sm:$0xff]  }
 0x5f8   :  { %v4369_v5 = vpack.c.bf16 %v3914_v19, %v3911_v46  ;;  %v6849_v46 = vld [vmem:[%s11405_s0 + $0x164] ss:$16 sps:$4 sm:$0xff]  }
 0x5f9   :  { %4430 = vmatmul.mubr.bf16.gmra.mrb[136].mxu1 %v6832_v26  ;;  %v6850_v26 = vld [vmem:[%s11405_s0 + $0x160] ss:$16 sps:$4 sm:$0xff]  }
 0x5fa   :  { %4679 = vmatpush1.bf16.msra.mxu1 %v4369_v5  ;;  %4437 = vmatprep.mubr.bf16.mxu1 %v6833_v14  ;;  %v6851_v14 = vld [vmem:[%s11405_s0 + $0x184] ss:$16 sps:$4 sm:$0xff]  }
 0x5fb   :  { %4680 = vmatprep.subr.bf16.mxu1 %v11751_v0 }
 0x5fc   :  { %v6241_v18 = vpop.f32.mrb[44].mxu1 }
 0x5fd   :  { %v3927_v42 = vpop.f32.mrb[45].mxu1 }
 0x5fe   :  { %v6242_v31 = vpop.f32.mrb[46].mxu1  ;;  %4681 = vmatpush1.bf16.msra.mxu1 %v4370_v50 }
 0x5ff   :  { %v4372_v38 = vpack.c.bf16 %v6242_v31, %v6241_v18  ;;  %v3930_v57 = vpop.f32.mrb[47].mxu1  ;;  %4682 = vmatprep.subr.bf16.mxu1 %v11751_v0 }
 0x600   :  { %v4371_v47 = vpack.c.bf16 %v3930_v57, %v3927_v42  ;;  %v6852_v57 = vld [vmem:[%s11405_s0 + $0x180] ss:$16 sps:$4 sm:$0xff]  }
 0x601   :  { %4438 = vmatmul.mubr.bf16.gmra.mrb[140].mxu1 %v6834_v53 }
 0x602   :  { %4683 = vmatpush1.bf16.msra.mxu1 %v4371_v47  ;;  %4445 = vmatprep.mubr.bf16.mxu1 %v6835_v56  ;;  %v6853_v47 = vld [vmem:[%s11405_s0 + $0x1a4] ss:$16 sps:$4 sm:$0xff]  }
 0x603   :  { %4684 = vmatprep.subr.bf16.mxu1 %v11751_v0 }
 0x604   :  { %v6245_v17 = vpop.f32.mrb[48].mxu1 }
 0x605   :  { %v3943_v51 = vpop.f32.mrb[49].mxu1 }
 0x606   :  { %v6246_v2 = vpop.f32.mrb[50].mxu1  ;;  %4685 = vmatpush1.bf16.msra.mxu1 %v4372_v38 }
 0x607   :  { %v4374_v27 = vpack.c.bf16 %v6246_v2, %v6245_v17  ;;  %v3946_v48 = vpop.f32.mrb[51].mxu1  ;;  %4686 = vmatprep.subr.bf16.mxu1 %v11751_v0  ;;  %v6854_v2 = vld [vmem:[%s11405_s0 + $0x1a0] ss:$16 sps:$4 sm:$0xff]  }
 0x608   :  { %v4373_v55 = vpack.c.bf16 %v3946_v48, %v3943_v51 }
 0x609   :  { %4446 = vmatmul.mubr.bf16.gmra.mrb[144].mxu1 %v6836_v58 }
 0x60a   :  { %4687 = vmatpush1.bf16.msra.mxu1 %v4373_v55  ;;  %4453 = vmatprep.mubr.bf16.mxu1 %v6837_v44 }
 0x60b   :  { %4688 = vmatprep.subr.bf16.mxu1 %v11751_v0 }
 0x60c   :  { %v6249_v13 = vpop.f32.mrb[52].mxu1 }
 0x60d   :  { %v3959_v4 = vpop.f32.mrb[53].mxu1 }
 0x60e   :  { %v6250_v7 = vpop.f32.mrb[54].mxu1  ;;  %4689 = vmatpush1.bf16.msra.mxu1 %v4374_v27  ;;  %v6855_v27 = vld [vmem:[%s11405_s0 + $0x1c4] ss:$16 sps:$4 sm:$0xff]  }
 0x60f   :  { %v4376_v24 = vpack.c.bf16 %v6250_v7, %v6249_v13  ;;  %v3962_v43 = vpop.f32.mrb[55].mxu1  ;;  %4690 = vmatprep.subr.bf16.mxu1 %v11751_v0  ;;  %v6856_v13 = vld [vmem:[%s11405_s0 + $0x1c0] ss:$16 sps:$4 sm:$0xff]  }
 0x610   :  { %v4375_v21 = vpack.c.bf16 %v3962_v43, %v3959_v4  ;;  %v6857_v4 = vld [vmem:[%s11405_s0 + $0x1e4] ss:$16 sps:$4 sm:$0xff]  }
 0x611   :  { %4454 = vmatmul.mubr.bf16.gmra.mrb[148].mxu1 %v6838_v35  ;;  %v6858_v35 = vld [vmem:[%s11405_s0 + $0x1e0] ss:$16 sps:$4 sm:$0xff]  }
 0x612   :  { %4691 = vmatpush1.bf16.msra.mxu1 %v4375_v21  ;;  %4461 = vmatprep.mubr.bf16.mxu1 %v6839_v62  ;;  %v6859_v62 = vld [vmem:[%s11405_s0 + $0x204] ss:$16 sps:$4 sm:$0xff]  }
 0x613   :  { %4692 = vmatprep.subr.bf16.mxu1 %v11751_v0 }
 0x614   :  { %v6253_v8 = vpop.f32.mrb[56].mxu1 }
 0x615   :  { %v3975_v10 = vpop.f32.mrb[57].mxu1 }
 0x616   :  { %v6254_v28 = vpop.f32.mrb[58].mxu1  ;;  %4693 = vmatpush1.bf16.msra.mxu1 %v4376_v24 }
 0x617   :  { %v4378_v59 = vpack.c.bf16 %v6254_v28, %v6253_v8  ;;  %v3978_v6 = vpop.f32.mrb[59].mxu1  ;;  %4694 = vmatprep.subr.bf16.mxu1 %v11751_v0 }
 0x618   :  { %v4377_v23 = vpack.c.bf16 %v3978_v6, %v3975_v10  ;;  %v6860_v6 = vld [vmem:[%s11405_s0 + $0x200] ss:$16 sps:$4 sm:$0xff]  }
 0x619   :  { %4462 = vmatmul.mubr.bf16.gmra.mrb[152].mxu1 %v6840_v15 }
 0x61a   :  { %4695 = vmatpush1.bf16.msra.mxu1 %v4377_v23  ;;  %4469 = vmatprep.mubr.bf16.mxu1 %v6841_v9  ;;  %v6861_v23 = vld [vmem:[%s11405_s0 + $0x224] ss:$16 sps:$4 sm:$0xff]  }
 0x61b   :  { %4696 = vmatprep.subr.bf16.mxu1 %v11751_v0 }
 0x61c   :  { %v6257_v60 = vpop.f32.mrb[60].mxu1 }
 0x61d   :  { %v3991_v63 = vpop.f32.mrb[61].mxu1 }
 0x61e   :  { %v6258_v40 = vpop.f32.mrb[62].mxu1  ;;  %4697 = vmatpush1.bf16.msra.mxu1 %v4378_v59 }
 0x61f   :  { %v4380_v37 = vpack.c.bf16 %v6258_v40, %v6257_v60  ;;  %v3994_v3 = vpop.f32.mrb[63].mxu1  ;;  %4698 = vmatprep.subr.bf16.mxu1 %v11751_v0  ;;  %v6862_v40 = vld [vmem:[%s11405_s0 + $0x220] ss:$16 sps:$4 sm:$0xff]  }
 0x620   :  { %v4379_v1 = vpack.c.bf16 %v3994_v3, %v3991_v63 }
 0x621   :  { %4470 = vmatmul.mubr.bf16.gmra.mrb[156].mxu1 %v6842_v16 }
 0x622   :  { %4699 = vmatpush1.bf16.msra.mxu1 %v4379_v1  ;;  %4477 = vmatprep.mubr.bf16.mxu1 %v6843_v29 }
 0x623   :  { %4700 = vmatprep.subr.bf16.mxu1 %v11751_v0 }
 0x624   :  { %v9614_v49 = vpop.f32.mrb[64].mxu1 }
 0x625   :  { %v9616_v52 = vpop.f32.mrb[65].mxu1 }
 0x626   :  { %v9618_v32 = vpop.f32.mrb[66].mxu1  ;;  %4701 = vmatpush1.bf16.msra.mxu1 %v4380_v37  ;;  %v6863_v37 = vld [vmem:[%s11405_s0 + $0x244] ss:$16 sps:$4 sm:$0xff]  }
 0x627   :  { %v9620_v34 = vpop.f32.mrb[67].mxu1 }
 0x629   :  { %4478 = vmatmul.mubr.bf16.gmra.mrb[160].mxu1 %v6844_v61  ;;  %v6864_v61 = vld [vmem:[%s11405_s0 + $0x240] ss:$16 sps:$4 sm:$0xff]  }
 0x62a   :  { %4485 = vmatprep.mubr.bf16.mxu1 %v6845_v20  ;;  %v6865_v20 = vld [vmem:[%s11405_s0 + $0x264] ss:$16 sps:$4 sm:$0xff]  }
 0x62c   :  { %v9628_v0 = vpop.f32.mrb[68].mxu1 }
 0x62d   :  { %v9630_v54 = vpop.f32.mrb[69].mxu1 }
 0x62e   :  { %v9632_v41 = vpop.f32.mrb[70].mxu1 }
 0x62f   :  { %v9634_v36 = vpop.f32.mrb[71].mxu1 }
 0x631   :  { %4486 = vmatmul.mubr.bf16.gmra.mrb[164].mxu1 %v6846_v39 }
 0x632   :  { %4493 = vmatprep.mubr.bf16.mxu1 %v6847_v22 }
 0x634   :  { %v9642_v33 = vpop.f32.mrb[72].mxu1 }
 0x635   :  { %v9644_v30 = vpop.f32.mrb[73].mxu1 }
 0x636   :  { %v9646_v45 = vpop.f32.mrb[74].mxu1 }
 0x637   :  { %v9648_v12 = vpop.f32.mrb[75].mxu1 }
 0x639   :  { %4494 = vmatmul.mubr.bf16.gmra.mrb[168].mxu1 %v6848_v11 }
 0x63a   :  { %4501 = vmatprep.mubr.bf16.mxu1 %v6849_v46 }
 0x63c   :  { %v9656_v25 = vpop.f32.mrb[76].mxu1 }
 0x63d   :  { %v9658_v50 = vpop.f32.mrb[77].mxu1 }
 0x63e   :  { %v9660_v19 = vpop.f32.mrb[78].mxu1 }
 0x63f   :  { %v9662_v5 = vpop.f32.mrb[79].mxu1 }
 0x641   :  { %4502 = vmatmul.mubr.bf16.gmra.mrb[172].mxu1 %v6850_v26  ;;  %v6866_v26 = vld [vmem:[%s11405_s0 + $0x260] ss:$16 sps:$4 sm:$0xff]  }
 0x642   :  { %4509 = vmatprep.mubr.bf16.mxu1 %v6851_v14  ;;  %v6867_v14 = vld [vmem:[%s11405_s0 + $0x284] ss:$16 sps:$4 sm:$0xff]  }
 0x644   :  { %v9670_v18 = vpop.f32.mrb[80].mxu1 }
 0x645   :  { %v9672_v42 = vpop.f32.mrb[81].mxu1 }
 0x646   :  { %v9674_v31 = vpop.f32.mrb[82].mxu1 }
 0x647   :  { %v9676_v38 = vpop.f32.mrb[83].mxu1 }
 0x649   :  { %4510 = vmatmul.mubr.bf16.gmra.mrb[176].mxu1 %v6852_v57 }
 0x64a   :  { %4517 = vmatprep.mubr.bf16.mxu1 %v6853_v47 }
 0x64c   :  { %v9684_v53 = vpop.f32.mrb[84].mxu1 }
 0x64d   :  { %v9686_v56 = vpop.f32.mrb[85].mxu1 }
 0x64e   :  { %v9688_v17 = vpop.f32.mrb[86].mxu1 }
 0x64f   :  { %v9690_v51 = vpop.f32.mrb[87].mxu1 }
 0x651   :  { %4518 = vmatmul.mubr.bf16.gmra.mrb[180].mxu1 %v6854_v2 }
 0x652   :  { %4525 = vmatprep.mubr.bf16.mxu1 %v6855_v27 }
 0x654   :  { %v9698_v48 = vpop.f32.mrb[88].mxu1 }
 0x655   :  { %v9700_v55 = vpop.f32.mrb[89].mxu1 }
 0x656   :  { %v9702_v58 = vpop.f32.mrb[90].mxu1 }
 0x657   :  { %v9704_v44 = vpop.f32.mrb[91].mxu1 }
 0x659   :  { %4526 = vmatmul.mubr.bf16.gmra.mrb[184].mxu1 %v6856_v13  ;;  %v6868_v13 = vld [vmem:[%s11405_s0 + $0x280] ss:$16 sps:$4 sm:$0xff]  }
 0x65a   :  { %4533 = vmatprep.mubr.bf16.mxu1 %v6857_v4  ;;  %v6869_v4 = vld [vmem:[%s11405_s0 + $0x2a4] ss:$16 sps:$4 sm:$0xff]  }
 0x65c   :  { %v9712_v7 = vpop.f32.mrb[92].mxu1 }
 0x65d   :  { %v9714_v24 = vpop.f32.mrb[93].mxu1 }
 0x65e   :  { %v9716_v43 = vpop.f32.mrb[94].mxu1 }
 0x65f   :  { %v9718_v21 = vpop.f32.mrb[95].mxu1 }
 0x661   :  { %4534 = vmatmul.mubr.bf16.gmra.mrb[188].mxu1 %v6858_v35 }
 0x662   :  { %4541 = vmatprep.mubr.bf16.mxu1 %v6859_v62 }
 0x664   :  { %v9726_v8 = vpop.f32.mrb[96].mxu1 }
 0x665   :  { %v9728_v10 = vpop.f32.mrb[97].mxu1 }
 0x666   :  { %v9730_v28 = vpop.f32.mrb[98].mxu1 }
 0x667   :  { %v9732_v59 = vpop.f32.mrb[99].mxu1 }
 0x669   :  { %4542 = vmatmul.mubr.bf16.gmra.mrb[192].mxu1 %v6860_v6 }
 0x66a   :  { %4549 = vmatprep.mubr.bf16.mxu1 %v6861_v23 }
 0x66c   :  { %v9740_v15 = vpop.f32.mrb[100].mxu1 }
 0x66d   :  { %v9742_v9 = vpop.f32.mrb[101].mxu1 }
 0x66e   :  { %v9744_v60 = vpop.f32.mrb[102].mxu1 }
 0x66f   :  { %v9746_v63 = vpop.f32.mrb[103].mxu1 }
 0x671   :  { %4550 = vmatmul.mubr.bf16.gmra.mrb[196].mxu1 %v6862_v40  ;;  %v6870_v40 = vld [vmem:[%s11405_s0 + $0x2a0] ss:$16 sps:$4 sm:$0xff]  }
 0x672   :  { %4557 = vmatprep.mubr.bf16.mxu1 %v6863_v37  ;;  %v6871_v37 = vld [vmem:[%s11405_s0 + $0x2c4] ss:$16 sps:$4 sm:$0xff]  }
 0x674   :  { %v9754_v3 = vpop.f32.mrb[104].mxu1 }
 0x675   :  { %v9756_v1 = vpop.f32.mrb[105].mxu1 }
 0x676   :  { %v9758_v16 = vpop.f32.mrb[106].mxu1 }
 0x677   :  { %v9760_v29 = vpop.f32.mrb[107].mxu1 }
 0x679   :  { %4558 = vmatmul.mubr.bf16.gmra.mrb[200].mxu1 %v6864_v61 }
 0x67a   :  { %4565 = vmatprep.mubr.bf16.mxu1 %v6865_v20 }
 0x67c   :  { %v9768_v39 = vpop.f32.mrb[108].mxu1 }
 0x67d   :  { %v9770_v22 = vpop.f32.mrb[109].mxu1 }
 0x67e   :  { %v9772_v11 = vpop.f32.mrb[110].mxu1 }
 0x67f   :  { %11760 = vst [vmem:[#allocation67_spill] sm:$0xff] %v9772_v11  ;;  %v9774_v46 = vpop.f32.mrb[111].mxu1 }
 0x681   :  { %4566 = vmatmul.mubr.bf16.gmra.mrb[204].mxu1 %v6866_v26 }
 0x682   :  { %4573 = vmatprep.mubr.bf16.mxu1 %v6867_v14 }
 0x684   :  { %v9782_v57 = vpop.f32.mrb[112].mxu1 }
 0x685   :  { %11761 = vst [vmem:[#allocation68_spill] sm:$0xff] %v9782_v57  ;;  %v9784_v47 = vpop.f32.mrb[113].mxu1 }
 0x686   :  { %11762 = vst [vmem:[#allocation71_spill] sm:$0xff] %v9784_v47  ;;  %v9786_v2 = vpop.f32.mrb[114].mxu1  ;;  %v11790_v47 = vld [vmem:[#allocation30_spill] sm:$0xff] }
 0x687   :  { %11763 = vst [vmem:[#allocation72_spill] sm:$0xff] %v9786_v2  ;;  %v9788_v27 = vpop.f32.mrb[115].mxu1 }
 0x688   :  { %11764 = vst [vmem:[#allocation75_spill] sm:$0xff] %v9788_v27 }
 0x689   :  { %4574 = vmatmul.mubr.bf16.gmra.mrb[208].mxu1 %v6868_v13  ;;  %v6872_v13 = vld [vmem:[%s11405_s0 + $0x2c0] ss:$16 sps:$4 sm:$0xff]  }
 0x68a   :  { %4581 = vmatprep.mubr.bf16.mxu1 %v6869_v4  ;;  %v6873_v4 = vld [vmem:[%s11405_s0 + $0x2e4] ss:$16 sps:$4 sm:$0xff]  }
 0x68c   :  { %v9796_v35 = vpop.f32.mrb[116].mxu1 }
 0x68d   :  { %11765 = vst [vmem:[#allocation76_spill] sm:$0xff] %v9796_v35  ;;  %v9798_v62 = vpop.f32.mrb[117].mxu1 }
 0x68e   :  { %11766 = vst [vmem:[#allocation79_spill] sm:$0xff] %v9798_v62  ;;  %v9800_v6 = vpop.f32.mrb[118].mxu1 }
 0x68f   :  { %11767 = vst [vmem:[#allocation80_spill] sm:$0xff] %v9800_v6  ;;  %v9802_v23 = vpop.f32.mrb[119].mxu1 }
 0x690   :  { %11768 = vst [vmem:[#allocation5_spill] sm:$0xff] %v9802_v23  ;;  %v11778_v23 = vld [vmem:[#allocation19_spill] sm:$0xff] }
 0x691   :  { %4582 = vmatmul.mubr.bf16.gmra.mrb[212].mxu1 %v6870_v40 }
 0x692   :  { %4589 = vmatprep.mubr.bf16.mxu1 %v6871_v37 }
 0x694   :  { %v9810_v61 = vpop.f32.mrb[120].mxu1 }
 0x695   :  { %11769 = vst [vmem:[#allocation82_spill] sm:$0xff] %v9810_v61  ;;  %v9812_v20 = vpop.f32.mrb[121].mxu1 }
 0x696   :  { %11770 = vst [vmem:[#allocation4_spill] sm:$0xff] %v9812_v20  ;;  %v9814_v26 = vpop.f32.mrb[122].mxu1 }
 0x697   :  { %11771 = vst [vmem:[#allocation84_spill] sm:$0xff] %v9814_v26  ;;  %v9816_v14 = vpop.f32.mrb[123].mxu1  ;;  %v6874_v26 = vld [vmem:[%s11405_s0 + $0x2e0] ss:$16 sps:$4 sm:$0xff]  }
 0x698   :  { %11772 = vst [vmem:[#allocation9_spill] sm:$0xff] %v9816_v14 }
 0x699   :  { %4590 = vmatmul.mubr.bf16.gmra.mrb[216].mxu1 %v6872_v13  ;;  %v6875_v13 = vld [vmem:[%s11405_s0 + $0x304] ss:$16 sps:$4 sm:$0xff]  }
 0x69a   :  { %4597 = vmatprep.mubr.bf16.mxu1 %v6873_v4  ;;  %v6876_v4 = vld [vmem:[%s11405_s0 + $0x300] ss:$16 sps:$4 sm:$0xff]  }
 0x69c   :  { %v9824_v40 = vpop.f32.mrb[124].mxu1 }
 0x69d   :  { %11773 = vst [vmem:[#allocation86_spill] sm:$0xff] %v9824_v40  ;;  %v9826_v37 = vpop.f32.mrb[125].mxu1  ;;  %v6878_v40 = vld [vmem:[%s11405_s0 + $0x320] ss:$16 sps:$4 sm:$0xff]  }
 0x69e   :  { %11774 = vst [vmem:[#allocation8_spill] sm:$0xff] %v9826_v37  ;;  %v9828_v61 = vpop.f32.mrb[126].mxu1 }
 0x69f   :  { %11775 = vst [vmem:[#allocation55_spill] sm:$0xff] %v9828_v61  ;;  %v9830_v20 = vpop.f32.mrb[127].mxu1  ;;  %v6877_v61 = vld [vmem:[%s11405_s0 + $0x324] ss:$16 sps:$4 sm:$0xff]  }
 0x6a0   :  { %11776 = vst [vmem:[#allocation56_spill] sm:$0xff] %v9830_v20 }
 0x6a1   :  { %4598 = vmatmul.mubr.bf16.gmra.mrb[220].mxu1 %v6874_v26  ;;  %v6879_v26 = vld [vmem:[%s11405_s0 + $0x344] ss:$16 sps:$4 sm:$0xff]  }
 0x6a2   :  { %4605 = vmatprep.mubr.bf16.mxu1 %v6875_v13  ;;  %v6880_v13 = vld [vmem:[%s11405_s0 + $0x340] ss:$16 sps:$4 sm:$0xff]  }
 0x6a9   :  { %4606 = vmatmul.mubr.bf16.gmra.mrb[224].mxu1 %v6876_v4  ;;  %v6881_v4 = vld [vmem:[%s11405_s0 + $0x364] ss:$16 sps:$4 sm:$0xff]  }
 0x6aa   :  { %4613 = vmatprep.mubr.bf16.mxu1 %v6877_v61  ;;  %v6882_v61 = vld [vmem:[%s11405_s0 + $0x360] ss:$16 sps:$4 sm:$0xff]  }
 0x6b1   :  { %4614 = vmatmul.mubr.bf16.gmra.mrb[228].mxu1 %v6878_v40  ;;  %v6883_v40 = vld [vmem:[%s11405_s0 + $0x384] ss:$16 sps:$4 sm:$0xff]  }
 0x6b2   :  { %4621 = vmatprep.mubr.bf16.mxu1 %v6879_v26  ;;  %v6884_v26 = vld [vmem:[%s11405_s0 + $0x380] ss:$16 sps:$4 sm:$0xff]  }
 0x6b9   :  { %4622 = vmatmul.mubr.bf16.gmra.mrb[232].mxu1 %v6880_v13  ;;  %v6885_v13 = vld [vmem:[%s11405_s0 + $0x3a4] ss:$16 sps:$4 sm:$0xff]  }
 0x6ba   :  { %4629 = vmatprep.mubr.bf16.mxu1 %v6881_v4  ;;  %v6886_v4 = vld [vmem:[%s11405_s0 + $0x3a0] ss:$16 sps:$4 sm:$0xff]  }
 0x6c1   :  { %4630 = vmatmul.mubr.bf16.gmra.mrb[236].mxu1 %v6882_v61  ;;  %v6887_v61 = vld [vmem:[%s11405_s0 + $0x3c4] ss:$16 sps:$4 sm:$0xff]  }
 0x6c2   :  { %4637 = vmatprep.mubr.bf16.mxu1 %v6883_v40  ;;  %v6888_v40 = vld [vmem:[%s11405_s0 + $0x3c0] ss:$16 sps:$4 sm:$0xff]  }
 0x6c9   :  { %4638 = vmatmul.mubr.bf16.gmra.mrb[240].mxu1 %v6884_v26  ;;  %v6889_v26 = vld [vmem:[%s11405_s0 + $0x3e4] ss:$16 sps:$4 sm:$0xff]  }
 0x6ca   :  { %4645 = vmatprep.mubr.bf16.mxu1 %v6885_v13  ;;  %v6890_v13 = vld [vmem:[%s11405_s0 + $0x3e0] ss:$16 sps:$4 sm:$0xff]  }
 0x6d1   :  { %4646 = vmatmul.mubr.bf16.gmra.mrb[244].mxu1 %v6886_v4  ;;  %v6891_v4 = vld [vmem:[%s11405_s0 + $0xc] ss:$16 sps:$4 sm:$0xff]  }
 0x6d2   :  { %4653 = vmatprep.mubr.bf16.mxu1 %v6887_v61  ;;  %v6892_v61 = vld [vmem:[%s11405_s0 + $0x8] ss:$16 sps:$4 sm:$0xff]  }
 0x6d9   :  { %4654 = vmatmul.mubr.bf16.gmra.mrb[248].mxu1 %v6888_v40  ;;  %v6893_v40 = vld [vmem:[%s11405_s0 + $0x2c] ss:$16 sps:$4 sm:$0xff]  }
 0x6da   :  { %4661 = vmatprep.mubr.bf16.mxu1 %v6889_v26  ;;  %v6894_v26 = vld [vmem:[%s11405_s0 + $0x28] ss:$16 sps:$4 sm:$0xff]  }
 0x6e1   :  { %4662 = vmatmul.mubr.bf16.gmra.mrb[252].mxu1 %v6890_v13  ;;  %v6895_v13 = vld [vmem:[%s11405_s0 + $0x4c] ss:$16 sps:$4 sm:$0xff]  }
 0x6e2   :  { %4702 = vmatprep.mubr.bf16.mxu1 %v6891_v4  ;;  %v6896_v4 = vld [vmem:[%s11405_s0 + $0x48] ss:$16 sps:$4 sm:$0xff]  }
 0x6e9   :  { %4703 = vmatmul.mubr.bf16.vlgmr.msra.gmra.mrb[128].mxu1 %v6892_v61  ;;  %v6897_v61 = vld [vmem:[%s11405_s0 + $0x6c] ss:$16 sps:$4 sm:$0xff]  }
 0x6ea   :  { %4710 = vmatprep.mubr.bf16.mxu1 %v6893_v40  ;;  %v6898_v40 = vld [vmem:[%s11405_s0 + $0x68] ss:$16 sps:$4 sm:$0xff]  }
 0x6f1   :  { %4711 = vmatmul.mubr.bf16.gmra.mrb[132].mxu1 %v6894_v26  ;;  %v6899_v26 = vld [vmem:[%s11405_s0 + $0x8c] ss:$16 sps:$4 sm:$0xff]  }
 0x6f2   :  { %4718 = vmatprep.mubr.bf16.mxu1 %v6895_v13  ;;  %v6900_v13 = vld [vmem:[%s11405_s0 + $0x88] ss:$16 sps:$4 sm:$0xff]  }
 0x6f9   :  { %4719 = vmatmul.mubr.bf16.gmra.mrb[136].mxu1 %v6896_v4  ;;  %v6901_v4 = vld [vmem:[%s11405_s0 + $0xac] ss:$16 sps:$4 sm:$0xff]  }
 0x6fa   :  { %4726 = vmatprep.mubr.bf16.mxu1 %v6897_v61  ;;  %v6902_v61 = vld [vmem:[%s11405_s0 + $0xa8] ss:$16 sps:$4 sm:$0xff]  }
 0x701   :  { %4727 = vmatmul.mubr.bf16.gmra.mrb[140].mxu1 %v6898_v40  ;;  %v6903_v40 = vld [vmem:[%s11405_s0 + $0xcc] ss:$16 sps:$4 sm:$0xff]  }
 0x702   :  { %4734 = vmatprep.mubr.bf16.mxu1 %v6899_v26  ;;  %v6904_v26 = vld [vmem:[%s11405_s0 + $0xc8] ss:$16 sps:$4 sm:$0xff]  }
 0x709   :  { %4735 = vmatmul.mubr.bf16.gmra.mrb[144].mxu1 %v6900_v13  ;;  %v6905_v13 = vld [vmem:[%s11405_s0 + $0xec] ss:$16 sps:$4 sm:$0xff]  }
 0x70a   :  { %4742 = vmatprep.mubr.bf16.mxu1 %v6901_v4  ;;  %v6906_v4 = vld [vmem:[%s11405_s0 + $0xe8] ss:$16 sps:$4 sm:$0xff]  }
 0x711   :  { %4743 = vmatmul.mubr.bf16.gmra.mrb[148].mxu1 %v6902_v61  ;;  %v6907_v61 = vld [vmem:[%s11405_s0 + $0x10c] ss:$16 sps:$4 sm:$0xff]  }
 0x712   :  { %4750 = vmatprep.mubr.bf16.mxu1 %v6903_v40  ;;  %v6908_v40 = vld [vmem:[%s11405_s0 + $0x108] ss:$16 sps:$4 sm:$0xff]  }
 0x719   :  { %4751 = vmatmul.mubr.bf16.gmra.mrb[152].mxu1 %v6904_v26  ;;  %v6909_v26 = vld [vmem:[%s11405_s0 + $0x12c] ss:$16 sps:$4 sm:$0xff]  }
 0x71a   :  { %4758 = vmatprep.mubr.bf16.mxu1 %v6905_v13  ;;  %v6910_v13 = vld [vmem:[%s11405_s0 + $0x128] ss:$16 sps:$4 sm:$0xff]  }
 0x721   :  { %4759 = vmatmul.mubr.bf16.gmra.mrb[156].mxu1 %v6906_v4  ;;  %v6911_v4 = vld [vmem:[%s11405_s0 + $0x14c] ss:$16 sps:$4 sm:$0xff]  }
 0x722   :  { %4766 = vmatprep.mubr.bf16.mxu1 %v6907_v61  ;;  %v6912_v61 = vld [vmem:[%s11405_s0 + $0x148] ss:$16 sps:$4 sm:$0xff]  }
 0x729   :  { %4767 = vmatmul.mubr.bf16.gmra.mrb[160].mxu1 %v6908_v40  ;;  %v6913_v40 = vld [vmem:[%s11405_s0 + $0x16c] ss:$16 sps:$4 sm:$0xff]  }
 0x72a   :  { %4774 = vmatprep.mubr.bf16.mxu1 %v6909_v26  ;;  %v6914_v26 = vld [vmem:[%s11405_s0 + $0x168] ss:$16 sps:$4 sm:$0xff]  }
 0x731   :  { %4775 = vmatmul.mubr.bf16.gmra.mrb[164].mxu1 %v6910_v13  ;;  %v6915_v13 = vld [vmem:[%s11405_s0 + $0x18c] ss:$16 sps:$4 sm:$0xff]  }
 0x732   :  { %4782 = vmatprep.mubr.bf16.mxu1 %v6911_v4  ;;  %v6916_v4 = vld [vmem:[%s11405_s0 + $0x188] ss:$16 sps:$4 sm:$0xff]  }
 0x739   :  { %4783 = vmatmul.mubr.bf16.gmra.mrb[168].mxu1 %v6912_v61  ;;  %v6917_v61 = vld [vmem:[%s11405_s0 + $0x1ac] ss:$16 sps:$4 sm:$0xff]  }
 0x73a   :  { %4790 = vmatprep.mubr.bf16.mxu1 %v6913_v40  ;;  %v6918_v40 = vld [vmem:[%s11405_s0 + $0x1a8] ss:$16 sps:$4 sm:$0xff]  }
 0x741   :  { %4791 = vmatmul.mubr.bf16.gmra.mrb[172].mxu1 %v6914_v26  ;;  %v6919_v26 = vld [vmem:[%s11405_s0 + $0x1cc] ss:$16 sps:$4 sm:$0xff]  }
 0x742   :  { %4798 = vmatprep.mubr.bf16.mxu1 %v6915_v13  ;;  %v6920_v13 = vld [vmem:[%s11405_s0 + $0x1c8] ss:$16 sps:$4 sm:$0xff]  }
 0x749   :  { %4799 = vmatmul.mubr.bf16.gmra.mrb[176].mxu1 %v6916_v4  ;;  %v6921_v4 = vld [vmem:[%s11405_s0 + $0x1ec] ss:$16 sps:$4 sm:$0xff]  }
 0x74a   :  { %4806 = vmatprep.mubr.bf16.mxu1 %v6917_v61  ;;  %v6922_v61 = vld [vmem:[%s11405_s0 + $0x1e8] ss:$16 sps:$4 sm:$0xff]  }
 0x751   :  { %4807 = vmatmul.mubr.bf16.gmra.mrb[180].mxu1 %v6918_v40  ;;  %v6923_v40 = vld [vmem:[%s11405_s0 + $0x20c] ss:$16 sps:$4 sm:$0xff]  }
 0x752   :  { %4814 = vmatprep.mubr.bf16.mxu1 %v6919_v26  ;;  %v6924_v26 = vld [vmem:[%s11405_s0 + $0x208] ss:$16 sps:$4 sm:$0xff]  }
 0x759   :  { %4815 = vmatmul.mubr.bf16.gmra.mrb[184].mxu1 %v6920_v13  ;;  %v6925_v13 = vld [vmem:[%s11405_s0 + $0x22c] ss:$16 sps:$4 sm:$0xff]  }
 0x75a   :  { %4822 = vmatprep.mubr.bf16.mxu1 %v6921_v4  ;;  %v6926_v4 = vld [vmem:[%s11405_s0 + $0x228] ss:$16 sps:$4 sm:$0xff]  }
 0x761   :  { %4823 = vmatmul.mubr.bf16.gmra.mrb[188].mxu1 %v6922_v61  ;;  %v6927_v61 = vld [vmem:[%s11405_s0 + $0x24c] ss:$16 sps:$4 sm:$0xff]  }
 0x762   :  { %4830 = vmatprep.mubr.bf16.mxu1 %v6923_v40  ;;  %v6928_v40 = vld [vmem:[%s11405_s0 + $0x248] ss:$16 sps:$4 sm:$0xff]  }
 0x769   :  { %4831 = vmatmul.mubr.bf16.gmra.mrb[192].mxu1 %v6924_v26  ;;  %v6929_v26 = vld [vmem:[%s11405_s0 + $0x26c] ss:$16 sps:$4 sm:$0xff]  }
 0x76a   :  { %4838 = vmatprep.mubr.bf16.mxu1 %v6925_v13  ;;  %v6930_v13 = vld [vmem:[%s11405_s0 + $0x268] ss:$16 sps:$4 sm:$0xff]  }
 0x771   :  { %4839 = vmatmul.mubr.bf16.gmra.mrb[196].mxu1 %v6926_v4  ;;  %v6931_v4 = vld [vmem:[%s11405_s0 + $0x28c] ss:$16 sps:$4 sm:$0xff]  }
 0x772   :  { %4846 = vmatprep.mubr.bf16.mxu1 %v6927_v61  ;;  %v6932_v61 = vld [vmem:[%s11405_s0 + $0x288] ss:$16 sps:$4 sm:$0xff]  }
 0x779   :  { %4847 = vmatmul.mubr.bf16.gmra.mrb[200].mxu1 %v6928_v40  ;;  %v6933_v40 = vld [vmem:[%s11405_s0 + $0x2ac] ss:$16 sps:$4 sm:$0xff]  }
 0x77a   :  { %4854 = vmatprep.mubr.bf16.mxu1 %v6929_v26  ;;  %v6934_v26 = vld [vmem:[%s11405_s0 + $0x2a8] ss:$16 sps:$4 sm:$0xff]  }
 0x781   :  { %4855 = vmatmul.mubr.bf16.gmra.mrb[204].mxu1 %v6930_v13  ;;  %v6935_v13 = vld [vmem:[%s11405_s0 + $0x2cc] ss:$16 sps:$4 sm:$0xff]  }
 0x782   :  { %4862 = vmatprep.mubr.bf16.mxu1 %v6931_v4  ;;  %v6936_v4 = vld [vmem:[%s11405_s0 + $0x2c8] ss:$16 sps:$4 sm:$0xff]  }
 0x789   :  { %4863 = vmatmul.mubr.bf16.gmra.mrb[208].mxu1 %v6932_v61  ;;  %v6937_v61 = vld [vmem:[%s11405_s0 + $0x2ec] ss:$16 sps:$4 sm:$0xff]  }
 0x78a   :  { %4870 = vmatprep.mubr.bf16.mxu1 %v6933_v40  ;;  %v6938_v40 = vld [vmem:[%s11405_s0 + $0x2e8] ss:$16 sps:$4 sm:$0xff]  }
 0x791   :  { %4871 = vmatmul.mubr.bf16.gmra.mrb[212].mxu1 %v6934_v26  ;;  %v6939_v26 = vld [vmem:[%s11405_s0 + $0x30c] ss:$16 sps:$4 sm:$0xff]  }
 0x792   :  { %4878 = vmatprep.mubr.bf16.mxu1 %v6935_v13  ;;  %v6940_v13 = vld [vmem:[%s11405_s0 + $0x308] ss:$16 sps:$4 sm:$0xff]  }
 0x799   :  { %4879 = vmatmul.mubr.bf16.gmra.mrb[216].mxu1 %v6936_v4  ;;  %v6941_v4 = vld [vmem:[%s11405_s0 + $0x32c] ss:$16 sps:$4 sm:$0xff]  }
 0x79a   :  { %4886 = vmatprep.mubr.bf16.mxu1 %v6937_v61  ;;  %v6942_v61 = vld [vmem:[%s11405_s0 + $0x328] ss:$16 sps:$4 sm:$0xff]  }
 0x7a1   :  { %4887 = vmatmul.mubr.bf16.gmra.mrb[220].mxu1 %v6938_v40  ;;  %v6943_v40 = vld [vmem:[%s11405_s0 + $0x34c] ss:$16 sps:$4 sm:$0xff]  }
 0x7a2   :  { %4894 = vmatprep.mubr.bf16.mxu1 %v6939_v26  ;;  %v6944_v26 = vld [vmem:[%s11405_s0 + $0x348] ss:$16 sps:$4 sm:$0xff]  }
 0x7a9   :  { %4895 = vmatmul.mubr.bf16.gmra.mrb[224].mxu1 %v6940_v13  ;;  %v10048_v13 = vld [vmem:[%s11412_s10] ss:$0 sm:$0xff] }
 0x7aa   :  { %4902 = vmatprep.mubr.bf16.mxu1 %v6941_v4  ;;  %v6945_v4 = vld [vmem:[%s11405_s0 + $0x36c] ss:$16 sps:$4 sm:$0xff]   ;;  %v4095_v20 = vadd.f32 %v10048_v13, %v9616_v52 }
 0x7ab   :  { %v6947_v52 = vld [vmem:[%s11405_s0 + $0x38c] ss:$16 sps:$4 sm:$0xff]  }
 0x7b1   :  { %4903 = vmatmul.mubr.bf16.gmra.mrb[228].mxu1 %v6942_v61 }
 0x7b2   :  { %4910 = vmatprep.mubr.bf16.mxu1 %v6943_v40  ;;  %v11777_v40 = vld [vmem:[#allocation18_spill] sm:$0xff] }
 0x7b9   :  { %4911 = vmatmul.mubr.bf16.gmra.mrb[232].mxu1 %v6944_v26  ;;  %v4098_v26 = vadd.f32 %v10048_v13, %v9620_v34  ;;  %v4103_v34 = vadd.f32 %v9614_v49, %v10048_v13  ;;  %v6949_v49 = vld [vmem:[%s11405_s0 + $0x3ac] ss:$16 sps:$4 sm:$0xff]  }
 0x7ba   :  { %4918 = vmatprep.mubr.bf16.mxu1 %v6945_v4  ;;  %v6946_v4 = vld [vmem:[%s11405_s0 + $0x368] ss:$16 sps:$4 sm:$0xff]  }
 0x7bc   :  { %v4704_v61 = vpop.f32.mrb[128].mxu1 }
 0x7bd   :  { %v4959_v37 = vmul.f32 %v4704_v61, %v11777_v40  ;;  %v4706_v14 = vpop.f32.mrb[129].mxu1  ;;  %v11781_v61 = vld [vmem:[#allocation21_spill] sm:$0xff] }
 0x7be   :  { %v4707_v6 = vpop.f32.mrb[130].mxu1 }
 0x7bf   :  { %v10058_v35 = vadd.f32 %v4959_v37, %v4095_v20  ;;  %v4960_v62 = vmul.f32 %v4707_v6, %v11778_v23  ;;  %v4709_v2 = vpop.f32.mrb[131].mxu1  ;;  %v11780_v20 = vld [vmem:[#allocation20_spill] sm:$0xff] }
 0x7c1   :  { %v10061_v57 = vadd.f32 %v4960_v62, %v4098_v26  ;;  %4919 = vmatmul.mubr.bf16.gmra.mrb[236].mxu1 %v6946_v4  ;;  %v4106_v62 = vadd.f32 %v9618_v32, %v10048_v13  ;;  %v4111_v32 = vadd.f32 %v10048_v13, %v9630_v54  ;;  %v6951_v54 = vld [vmem:[%s11405_s0 + $0x3cc] ss:$16 sps:$4 sm:$0xff]  }
 0x7c2   :  { %4926 = vmatprep.mubr.bf16.mxu1 %v6947_v52  ;;  %v6948_v52 = vld [vmem:[%s11405_s0 + $0x388] ss:$16 sps:$4 sm:$0xff]  }
 0x7c3   :  { %11779 = vst [vmem:[#allocation59_spill] sm:$0xff] %v10061_v57 }
 0x7c4   :  { %v4712_v14 = vpop.f32.mrb[132].mxu1 }
 0x7c5   :  { %v4961_v37 = vmul.f32 %v4712_v14, %v11780_v20  ;;  %v4714_v6 = vpop.f32.mrb[133].mxu1 }
 0x7c6   :  { %v4715_v2 = vpop.f32.mrb[134].mxu1 }
 0x7c7   :  { %v10074_v23 = vadd.f32 %v4961_v37, %v4103_v34  ;;  %v4962_v40 = vmul.f32 %v4715_v2, %v11781_v61  ;;  %v4717_v26 = vpop.f32.mrb[135].mxu1  ;;  %v11782_v34 = vld [vmem:[#allocation22_spill] sm:$0xff]  ;;  %v4114_v2 = vadd.f32 %v10048_v13, %v9634_v36  ;;  %v11783_v61 = vld [vmem:[#allocation23_spill] sm:$0xff]  ;;  %v4119_v36 = vadd.f32 %v9628_v0, %v10048_v13 }
 0x7c8   :  { %v6953_v0 = vld [vmem:[%s11405_s0 + $0x3ec] ss:$16 sps:$4 sm:$0xff]  }
 0x7c9   :  { %v10077_v4 = vadd.f32 %v4962_v40, %v4106_v62  ;;  %4927 = vmatmul.mubr.bf16.gmra.mrb[240].mxu1 %v6948_v52 }
 0x7ca   :  { %4934 = vmatprep.mubr.bf16.mxu1 %v6949_v49  ;;  %v6950_v49 = vld [vmem:[%s11405_s0 + $0x3a8] ss:$16 sps:$4 sm:$0xff]  }
 0x7cc   :  { %v4720_v14 = vpop.f32.mrb[136].mxu1 }
 0x7cd   :  { %v4963_v20 = vmul.f32 %v4720_v14, %v11782_v34  ;;  %v4722_v37 = vpop.f32.mrb[137].mxu1 }
 0x7ce   :  { %v4723_v6 = vpop.f32.mrb[138].mxu1 }
 0x7cf   :  { %v10090_v62 = vadd.f32 %v4963_v20, %v4111_v32  ;;  %v4964_v40 = vmul.f32 %v4723_v6, %v11783_v61  ;;  %v4725_v26 = vpop.f32.mrb[139].mxu1  ;;  %v11784_v32 = vld [vmem:[#allocation24_spill] sm:$0xff]  ;;  %v4122_v6 = vadd.f32 %v9632_v41, %v10048_v13  ;;  %v11785_v61 = vld [vmem:[#allocation25_spill] sm:$0xff]  ;;  %v4127_v41 = vadd.f32 %v10048_v13, %v9644_v30 }
 0x7d1   :  { %v10093_v52 = vadd.f32 %v4964_v40, %v4114_v2  ;;  %4935 = vmatmul.mubr.bf16.gmra.mrb[244].mxu1 %v6950_v49 }
 0x7d2   :  { %4942 = vmatprep.mubr.bf16.mxu1 %v6951_v54  ;;  %v6952_v54 = vld [vmem:[%s11405_s0 + $0x3c8] ss:$16 sps:$4 sm:$0xff]  }
 0x7d4   :  { %v4728_v14 = vpop.f32.mrb[140].mxu1 }
 0x7d5   :  { %v4965_v34 = vmul.f32 %v4728_v14, %v11784_v32  ;;  %v4730_v20 = vpop.f32.mrb[141].mxu1 }
 0x7d6   :  { %v4731_v37 = vpop.f32.mrb[142].mxu1 }
 0x7d7   :  { %v10106_v2 = vadd.f32 %v4965_v34, %v4119_v36  ;;  %v4966_v40 = vmul.f32 %v4731_v37, %v11785_v61  ;;  %v4733_v26 = vpop.f32.mrb[143].mxu1  ;;  %v11786_v36 = vld [vmem:[#allocation26_spill] sm:$0xff]  ;;  %v4130_v37 = vadd.f32 %v10048_v13, %v9648_v12  ;;  %v11787_v61 = vld [vmem:[#allocation27_spill] sm:$0xff] }
 0x7d9   :  { %v10109_v49 = vadd.f32 %v4966_v40, %v4122_v6  ;;  %4943 = vmatmul.mubr.bf16.gmra.mrb[248].mxu1 %v6952_v54 }
 0x7da   :  { %4950 = vmatprep.mubr.bf16.mxu1 %v6953_v0  ;;  %v6954_v0 = vld [vmem:[%s11405_s0 + $0x3e8] ss:$16 sps:$4 sm:$0xff]  }
 0x7dc   :  { %v4736_v14 = vpop.f32.mrb[144].mxu1 }
 0x7dd   :  { %v4967_v32 = vmul.f32 %v4736_v14, %v11786_v36  ;;  %v4738_v34 = vpop.f32.mrb[145].mxu1  ;;  %v4135_v14 = vadd.f32 %v9642_v33, %v10048_v13  ;;  %v11788_v36 = vld [vmem:[#allocation28_spill] sm:$0xff] }
 0x7de   :  { %v4739_v20 = vpop.f32.mrb[146].mxu1 }
 0x7df   :  { %v10122_v6 = vadd.f32 %v4967_v32, %v4127_v41  ;;  %v4968_v40 = vmul.f32 %v4739_v20, %v11787_v61  ;;  %v4741_v26 = vpop.f32.mrb[147].mxu1  ;;  %v4138_v41 = vadd.f32 %v9646_v45, %v10048_v13  ;;  %v11789_v20 = vld [vmem:[#allocation29_spill] sm:$0xff]  ;;  %v11791_v45 = vld [vmem:[#allocation31_spill] sm:$0xff] }
 0x7e1   :  { %v10125_v54 = vadd.f32 %v4968_v40, %v4130_v37  ;;  %4951 = vmatmul.mubr.bf16.gmra.mrb[252].mxu1 %v6954_v0  ;;  %v4143_v0 = vadd.f32 %v10048_v13, %v9658_v50 }
 0x7e4   :  { %v4744_v30 = vpop.f32.mrb[148].mxu1 }
 0x7e5   :  { %v4969_v34 = vmul.f32 %v4744_v30, %v11788_v36  ;;  %v4746_v27 = vpop.f32.mrb[149].mxu1 }
 0x7e6   :  { %v4747_v12 = vpop.f32.mrb[150].mxu1  ;;  %v4146_v27 = vadd.f32 %v10048_v13, %v9662_v5  ;;  %v11793_v5 = vld [vmem:[#allocation33_spill] sm:$0xff] }
 0x7e7   :  { %v10135_v32 = vadd.f32 %v4969_v34, %v4135_v14  ;;  %v4970_v37 = vmul.f32 %v4747_v12, %v11789_v20  ;;  %v4749_v61 = vpop.f32.mrb[151].mxu1  ;;  %v4151_v20 = vadd.f32 %v9656_v25, %v10048_v13  ;;  %v5153_v25 = vadd.f32 %v10061_v57, %v10058_v35 }
 0x7e9   :  { %v10138_v40 = vadd.f32 %v4970_v37, %v4138_v41  ;;  %v11792_v37 = vld [vmem:[#allocation32_spill] sm:$0xff] }
 0x7ec   :  { %v4752_v26 = vpop.f32.mrb[152].mxu1 }
 0x7ed   :  { %v4971_v33 = vmul.f32 %v4752_v26, %v11790_v47  ;;  %v4754_v11 = vpop.f32.mrb[153].mxu1 }
 0x7ee   :  { %v4755_v30 = vpop.f32.mrb[154].mxu1  ;;  %v4154_v11 = vadd.f32 %v9660_v19, %v10048_v13  ;;  %v4162_v19 = vadd.f32 %v10048_v13, %v9676_v38 }
 0x7ef   :  { %v10145_v36 = vadd.f32 %v4971_v33, %v4143_v0  ;;  %v4972_v14 = vmul.f32 %v4755_v30, %v11791_v45  ;;  %v4757_v34 = vpop.f32.mrb[155].mxu1  ;;  %v4159_v45 = vadd.f32 %v10048_v13, %v9672_v42 }
 0x7f1   :  { %v10148_v12 = vadd.f32 %v4972_v14, %v4146_v27  ;;  %v11794_v14 = vld [vmem:[#allocation34_spill] sm:$0xff] }
 0x7f4   :  { %v4760_v41 = vpop.f32.mrb[156].mxu1 }
 0x7f5   :  { %v4973_v50 = vmul.f32 %v4760_v41, %v11792_v37  ;;  %v4762_v61 = vpop.f32.mrb[157].mxu1 }
 0x7f6   :  { %v4763_v47 = vpop.f32.mrb[158].mxu1  ;;  %v11795_v61 = vld [vmem:[#allocation35_spill] sm:$0xff] }
 0x7f7   :  { %v10155_v26 = vadd.f32 %v4973_v50, %v4151_v20  ;;  %v4974_v0 = vmul.f32 %v4763_v47, %v11793_v5  ;;  %v4765_v33 = vpop.f32.mrb[159].mxu1  ;;  %v5154_v20 = vadd.f32 %v5153_v25, %v10074_v23 }
 0x7f8   :  { %v4167_v33 = vadd.f32 %v9670_v18, %v10048_v13 }
 0x7f9   :  { %v10158_v30 = vadd.f32 %v4974_v0, %v4154_v11  ;;  %v5155_v42 = vadd.f32 %v5154_v20, %v10077_v4 }
 0x7fc   :  { %v4768_v27 = vpop.f32.mrb[160].mxu1 }
 0x7fd   :  { %v4975_v34 = vmul.f32 %v4768_v27, %v11794_v14  ;;  %v4770_v41 = vpop.f32.mrb[161].mxu1  ;;  %v5156_v27 = vadd.f32 %v5155_v42, %v10090_v62  ;;  %v11796_v14 = vld [vmem:[#allocation36_spill] sm:$0xff]  ;;  %v11798_v42 = vld [vmem:[#allocation38_spill] sm:$0xff] }
 0x7fe   :  { %v4771_v37 = vpop.f32.mrb[162].mxu1 }
 0x7ff   :  { %v10168_v50 = vadd.f32 %v4975_v34, %v4159_v45  ;;  %v4976_v47 = vmul.f32 %v4771_v37, %v11795_v61  ;;  %v4773_v11 = vpop.f32.mrb[163].mxu1  ;;  %v4170_v45 = vadd.f32 %v9674_v31, %v10048_v13  ;;  %v11797_v34 = vld [vmem:[#allocation37_spill] sm:$0xff]  ;;  %v5157_v20 = vadd.f32 %v5156_v27, %v10093_v52  ;;  %v11799_v27 = vld [vmem:[#allocation39_spill] sm:$0xff] }
 0x800   :  { %v4175_v11 = vadd.f32 %v10048_v13, %v9686_v56  ;;  %v4178_v31 = vadd.f32 %v10048_v13, %v9690_v51  ;;  %v4183_v56 = vadd.f32 %v9684_v53, %v10048_v13 }
 0x801   :  { %v10171_v5 = vadd.f32 %v4976_v47, %v4162_v19  ;;  %v5158_v18 = vadd.f32 %v5157_v20, %v10106_v2 }
 0x804   :  { %v4776_v0 = vpop.f32.mrb[164].mxu1 }
 0x805   :  { %v4977_v41 = vmul.f32 %v4776_v0, %v11796_v14  ;;  %v4778_v38 = vpop.f32.mrb[165].mxu1 }
 0x806   :  { %v4779_v57 = vpop.f32.mrb[166].mxu1 }
 0x807   :  { %v10180_v25 = vadd.f32 %v4977_v41, %v4167_v33  ;;  %v4978_v37 = vmul.f32 %v4779_v57, %v11797_v34  ;;  %v4781_v19 = vpop.f32.mrb[167].mxu1  ;;  %v5159_v57 = vadd.f32 %v5158_v18, %v10109_v49  ;;  %v4186_v18 = vadd.f32 %v9688_v17, %v10048_v13 }
 0x809   :  { %v10184_v61 = vadd.f32 %v4978_v37, %v4170_v45  ;;  %v5160_v34 = vadd.f32 %v5159_v57, %v10122_v6 }
 0x80b   :  { %v5161_v20 = vadd.f32 %v5160_v34, %v10125_v54 }
 0x80c   :  { %v4784_v47 = vpop.f32.mrb[168].mxu1 }
 0x80d   :  { %v4979_v0 = vmul.f32 %v4784_v47, %v11798_v42  ;;  %v4786_v14 = vpop.f32.mrb[169].mxu1  ;;  %v11800_v47 = vld [vmem:[#allocation40_spill] sm:$0xff] }
 0x80e   :  { %v4787_v38 = vpop.f32.mrb[170].mxu1 }
 0x80f   :  { %v10193_v33 = vadd.f32 %v4979_v0, %v4175_v11  ;;  %v4980_v41 = vmul.f32 %v4787_v38, %v11799_v27  ;;  %v4789_v45 = vpop.f32.mrb[171].mxu1  ;;  %v5162_v11 = vadd.f32 %v5161_v20, %v10135_v32  ;;  %v11801_v38 = vld [vmem:[#allocation41_spill] sm:$0xff] }
 0x810   :  { %v4191_v45 = vadd.f32 %v10048_v13, %v9700_v55 }
 0x811   :  { %v10197_v37 = vadd.f32 %v4980_v41, %v4178_v31  ;;  %v5163_v53 = vadd.f32 %v5162_v11, %v10138_v40 }
 0x813   :  { %v5164_v34 = vadd.f32 %v5163_v53, %v10145_v36  ;;  %v11804_v53 = vld [vmem:[#allocation44_spill] sm:$0xff] }
 0x814   :  { %v4792_v19 = vpop.f32.mrb[172].mxu1 }
 0x815   :  { %v4981_v42 = vmul.f32 %v4792_v19, %v11800_v47  ;;  %v4794_v51 = vpop.f32.mrb[173].mxu1  ;;  %v11802_v19 = vld [vmem:[#allocation42_spill] sm:$0xff]  ;;  %v5165_v11 = vadd.f32 %v5164_v34, %v10148_v12  ;;  %v11805_v34 = vld [vmem:[#allocation45_spill] sm:$0xff] }
 0x816   :  { %v4795_v14 = vpop.f32.mrb[174].mxu1 }
 0x817   :  { %v10206_v0 = vadd.f32 %v4981_v42, %v4183_v56  ;;  %v4982_v31 = vmul.f32 %v4795_v14, %v11801_v38  ;;  %v4797_v57 = vpop.f32.mrb[175].mxu1  ;;  %v4194_v56 = vadd.f32 %v10048_v13, %v9704_v44  ;;  %v11803_v42 = vld [vmem:[#allocation43_spill] sm:$0xff]  ;;  %v5166_v55 = vadd.f32 %v5165_v11, %v10155_v26 }
 0x818   :  { %v4199_v57 = vadd.f32 %v9698_v48, %v10048_v13  ;;  %v4202_v44 = vadd.f32 %v9702_v58, %v10048_v13  ;;  %v4207_v48 = vadd.f32 %v10048_v13, %v9714_v24 }
 0x819   :  { %v10209_v27 = vadd.f32 %v4982_v31, %v4186_v18 }
 0x81c   :  { %v4800_v41 = vpop.f32.mrb[176].mxu1 }
 0x81d   :  { %v4983_v47 = vmul.f32 %v4800_v41, %v11802_v19  ;;  %v4802_v17 = vpop.f32.mrb[177].mxu1 }
 0x81e   :  { %v4803_v51 = vpop.f32.mrb[178].mxu1 }
 0x81f   :  { %v10218_v20 = vadd.f32 %v4983_v47, %v4191_v45  ;;  %v4984_v14 = vmul.f32 %v4803_v51, %v11803_v42  ;;  %v4805_v18 = vpop.f32.mrb[179].mxu1  ;;  %v5167_v45 = vadd.f32 %v5166_v55, %v10158_v30  ;;  %v4210_v55 = vadd.f32 %v10048_v13, %v9718_v21 }
 0x821   :  { %v10222_v38 = vadd.f32 %v4984_v14, %v4194_v56  ;;  %v5168_v42 = vadd.f32 %v5167_v45, %v10168_v50 }
 0x823   :  { %v5169_v11 = vadd.f32 %v5168_v42, %v10171_v5 }
 0x824   :  { %v4808_v31 = vpop.f32.mrb[180].mxu1 }
 0x825   :  { %v4985_v41 = vmul.f32 %v4808_v31, %v11804_v53  ;;  %v4810_v19 = vpop.f32.mrb[181].mxu1  ;;  %v11806_v31 = vld [vmem:[#allocation46_spill] sm:$0xff] }
 0x826   :  { %v4811_v17 = vpop.f32.mrb[182].mxu1 }
 0x827   :  { %v10231_v47 = vadd.f32 %v4985_v41, %v4199_v57  ;;  %v4986_v51 = vmul.f32 %v4811_v17, %v11805_v34  ;;  %v4813_v56 = vpop.f32.mrb[183].mxu1  ;;  %v5170_v57 = vadd.f32 %v5169_v11, %v10180_v25  ;;  %v11807_v17 = vld [vmem:[#allocation47_spill] sm:$0xff] }
 0x828   :  { %v4215_v56 = vadd.f32 %v9712_v7, %v10048_v13 }
 0x829   :  { %v10235_v14 = vadd.f32 %v4986_v51, %v4202_v44  ;;  %v5171_v24 = vadd.f32 %v5170_v57, %v10184_v61 }
 0x82b   :  { %v5172_v42 = vadd.f32 %v5171_v24, %v10193_v33  ;;  %v11810_v24 = vld [vmem:[#allocation50_spill] sm:$0xff] }
 0x82c   :  { %v4816_v18 = vpop.f32.mrb[184].mxu1 }
 0x82d   :  { %v4987_v53 = vmul.f32 %v4816_v18, %v11806_v31  ;;  %v4818_v58 = vpop.f32.mrb[185].mxu1  ;;  %v11808_v18 = vld [vmem:[#allocation48_spill] sm:$0xff]  ;;  %v5173_v57 = vadd.f32 %v5172_v42, %v10197_v37  ;;  %v11811_v42 = vld [vmem:[#allocation51_spill] sm:$0xff] }
 0x82e   :  { %v4819_v19 = vpop.f32.mrb[186].mxu1 }
 0x82f   :  { %v10244_v41 = vadd.f32 %v4987_v53, %v4207_v48  ;;  %v4988_v44 = vmul.f32 %v4819_v19, %v11807_v17  ;;  %v4821_v45 = vpop.f32.mrb[187].mxu1  ;;  %v4218_v48 = vadd.f32 %v9716_v43, %v10048_v13  ;;  %v11809_v53 = vld [vmem:[#allocation49_spill] sm:$0xff]  ;;  %v5174_v7 = vadd.f32 %v5173_v57, %v10206_v0 }
 0x830   :  { %v4223_v45 = vadd.f32 %v10048_v13, %v9728_v10  ;;  %v4226_v43 = vadd.f32 %v10048_v13, %v9732_v59  ;;  %v4231_v10 = vadd.f32 %v9726_v8, %v10048_v13 }
 0x831   :  { %v10247_v34 = vadd.f32 %v4988_v44, %v4210_v55 }
 0x834   :  { %v4824_v51 = vpop.f32.mrb[188].mxu1 }
 0x835   :  { %v4989_v31 = vmul.f32 %v4824_v51, %v11808_v18  ;;  %v4826_v21 = vpop.f32.mrb[189].mxu1 }
 0x836   :  { %v4827_v58 = vpop.f32.mrb[190].mxu1 }
 0x837   :  { %v10256_v11 = vadd.f32 %v4989_v31, %v4215_v56  ;;  %v4990_v19 = vmul.f32 %v4827_v58, %v11809_v53  ;;  %v4829_v55 = vpop.f32.mrb[191].mxu1  ;;  %v5175_v56 = vadd.f32 %v5174_v7, %v10209_v27  ;;  %v4234_v7 = vadd.f32 %v9730_v28, %v10048_v13 }
 0x839   :  { %v10260_v17 = vadd.f32 %v4990_v19, %v4218_v48  ;;  %v5176_v53 = vadd.f32 %v5175_v56, %v10218_v20 }
 0x83b   :  { %v5177_v57 = vadd.f32 %v5176_v53, %v10222_v38 }
 0x83c   :  { %v4832_v44 = vpop.f32.mrb[192].mxu1 }
 0x83d   :  { %v4991_v51 = vmul.f32 %v4832_v44, %v11810_v24  ;;  %v4834_v18 = vpop.f32.mrb[193].mxu1  ;;  %v11812_v44 = vld [vmem:[#allocation53_spill] sm:$0xff] }
 0x83e   :  { %v4835_v21 = vpop.f32.mrb[194].mxu1 }
 0x83f   :  { %v10269_v31 = vadd.f32 %v4991_v51, %v4223_v45  ;;  %v4992_v58 = vmul.f32 %v4835_v21, %v11811_v42  ;;  %v4837_v48 = vpop.f32.mrb[195].mxu1  ;;  %v5178_v45 = vadd.f32 %v5177_v57, %v10231_v47  ;;  %v11814_v21 = vld [vmem:[#allocation54_spill] sm:$0xff] }
 0x840   :  { %v4239_v48 = vadd.f32 %v10048_v13, %v9742_v9 }
 0x841   :  { %v10273_v19 = vadd.f32 %v4992_v58, %v4226_v43  ;;  %v5179_v8 = vadd.f32 %v5178_v45, %v10235_v14 }
 0x843   :  { %v5180_v53 = vadd.f32 %v5179_v8, %v10244_v41  ;;  %v11820_v8 = vld [vmem:[#allocation61_spill] sm:$0xff] }
 0x844   :  { %v4840_v55 = vpop.f32.mrb[196].mxu1 }
 0x845   :  { %v4993_v24 = vmul.f32 %v4840_v55, %v11812_v44  ;;  %v4842_v59 = vpop.f32.mrb[197].mxu1  ;;  %v11816_v55 = vld [vmem:[#allocation57_spill] sm:$0xff]  ;;  %v5181_v45 = vadd.f32 %v5180_v53, %v10247_v34  ;;  %v11822_v53 = vld [vmem:[#allocation62_spill] sm:$0xff] }
 0x846   :  { %v4843_v18 = vpop.f32.mrb[198].mxu1 }
 0x847   :  { %v10282_v51 = vadd.f32 %v4993_v24, %v4231_v10  ;;  %v4994_v43 = vmul.f32 %v4843_v18, %v11814_v21  ;;  %v4845_v56 = vpop.f32.mrb[199].mxu1  ;;  %v4242_v10 = vadd.f32 %v10048_v13, %v9746_v63  ;;  %v11818_v24 = vld [vmem:[#allocation58_spill] sm:$0xff]  ;;  %v5182_v9 = vadd.f32 %v5181_v45, %v10256_v11 }
 0x848   :  { %v4247_v56 = vadd.f32 %v9740_v15, %v10048_v13  ;;  %v4250_v63 = vadd.f32 %v9744_v60, %v10048_v13  ;;  %v4255_v15 = vadd.f32 %v10048_v13, %v9756_v1 }
 0x849   :  { %11813 = vst [vmem:[#allocation60_spill] sm:$0xff] %v10282_v51  ;;  %v10285_v42 = vadd.f32 %v4994_v43, %v4234_v7 }
 0x84b   :  { %11815 = vst [vmem:[#allocation63_spill] sm:$0xff] %v10285_v42 }
 0x84c   :  { %v4848_v58 = vpop.f32.mrb[200].mxu1 }
 0x84d   :  { %v4995_v44 = vmul.f32 %v4848_v58, %v11816_v55  ;;  %v4850_v28 = vpop.f32.mrb[201].mxu1 }
 0x84e   :  { %v4851_v59 = vpop.f32.mrb[202].mxu1 }
 0x84f   :  { %v10294_v57 = vadd.f32 %v4995_v44, %v4239_v48  ;;  %v4996_v18 = vmul.f32 %v4851_v59, %v11818_v24  ;;  %v4853_v7 = vpop.f32.mrb[203].mxu1  ;;  %v5183_v48 = vadd.f32 %v5182_v9, %v10260_v17  ;;  %v4258_v9 = vadd.f32 %v10048_v13, %v9760_v29 }
 0x851   :  { %11817 = vst [vmem:[#allocation64_spill] sm:$0xff] %v10294_v57  ;;  %v10298_v21 = vadd.f32 %v4996_v18, %v4242_v10  ;;  %v5184_v24 = vadd.f32 %v5183_v48, %v10269_v31 }
 0x853   :  { %11819 = vst [vmem:[#allocation16_spill] sm:$0xff] %v10298_v21  ;;  %v5185_v45 = vadd.f32 %v5184_v24, %v10273_v19 }
 0x854   :  { %v4856_v43 = vpop.f32.mrb[204].mxu1 }
 0x855   :  { %v4997_v58 = vmul.f32 %v4856_v43, %v11820_v8  ;;  %v4858_v55 = vpop.f32.mrb[205].mxu1  ;;  %v11824_v43 = vld [vmem:[#allocation65_spill] sm:$0xff] }
 0x856   :  { %v4859_v28 = vpop.f32.mrb[206].mxu1 }
 0x857   :  { %v10307_v44 = vadd.f32 %v4997_v58, %v4247_v56  ;;  %v4998_v59 = vmul.f32 %v4859_v28, %v11822_v53  ;;  %v4861_v10 = vpop.f32.mrb[207].mxu1  ;;  %v5186_v56 = vadd.f32 %v5185_v45, %v10282_v51  ;;  %v11826_v28 = vld [vmem:[#allocation66_spill] sm:$0xff] }
 0x858   :  { %v4263_v10 = vadd.f32 %v9754_v3, %v10048_v13 }
 0x859   :  { %11821 = vst [vmem:[#allocation91_spill] sm:$0xff] %v10307_v44  ;;  %v10311_v18 = vadd.f32 %v4998_v59, %v4250_v63  ;;  %v5187_v1 = vadd.f32 %v5186_v56, %v10285_v42 }
 0x85b   :  { %11823 = vst [vmem:[#allocation92_spill] sm:$0xff] %v10311_v18  ;;  %v5188_v24 = vadd.f32 %v5187_v1, %v10294_v57  ;;  %v11832_v1 = vld [vmem:[#allocation73_spill] sm:$0xff] }
 0x85c   :  { %v4864_v7 = vpop.f32.mrb[208].mxu1 }
 0x85d   :  { %v4999_v8 = vmul.f32 %v4864_v7, %v11824_v43  ;;  %v4866_v60 = vpop.f32.mrb[209].mxu1  ;;  %v11828_v7 = vld [vmem:[#allocation69_spill] sm:$0xff]  ;;  %v5189_v56 = vadd.f32 %v5188_v24, %v10298_v21  ;;  %v11834_v24 = vld [vmem:[#allocation74_spill] sm:$0xff] }
 0x85e   :  { %v4867_v55 = vpop.f32.mrb[210].mxu1 }
 0x85f   :  { %v10320_v58 = vadd.f32 %v4999_v8, %v4255_v15  ;;  %v5000_v63 = vmul.f32 %v4867_v55, %v11826_v28  ;;  %v4869_v48 = vpop.f32.mrb[211].mxu1  ;;  %v4266_v15 = vadd.f32 %v9758_v16, %v10048_v13  ;;  %v11830_v8 = vld [vmem:[#allocation70_spill] sm:$0xff]  ;;  %v5190_v3 = vadd.f32 %v5189_v56, %v10307_v44 }
 0x860   :  { %v4271_v48 = vadd.f32 %v10048_v13, %v9770_v22  ;;  %v4274_v16 = vadd.f32 %v10048_v13, %v9774_v46  ;;  %v4279_v22 = vadd.f32 %v9768_v39, %v10048_v13 }
 0x861   :  { %11825 = vst [vmem:[#allocation93_spill] sm:$0xff] %v10320_v58  ;;  %v10323_v53 = vadd.f32 %v5000_v63, %v4258_v9 }
 0x863   :  { %11827 = vst [vmem:[#allocation94_spill] sm:$0xff] %v10323_v53 }
 0x864   :  { %v4872_v59 = vpop.f32.mrb[212].mxu1 }
 0x865   :  { %v5001_v43 = vmul.f32 %v4872_v59, %v11828_v7  ;;  %v4874_v29 = vpop.f32.mrb[213].mxu1 }
 0x866   :  { %v4875_v60 = vpop.f32.mrb[214].mxu1 }
 0x867   :  { %v10332_v45 = vadd.f32 %v5001_v43, %v4263_v10  ;;  %v5002_v55 = vmul.f32 %v4875_v60, %v11830_v8  ;;  %v4877_v9 = vpop.f32.mrb[215].mxu1  ;;  %v5191_v10 = vadd.f32 %v5190_v3, %v10311_v18  ;;  %v11837_v3 = vld [vmem:[#allocation67_spill] sm:$0xff] }
 0x869   :  { %11829 = vst [vmem:[#allocation95_spill] sm:$0xff] %v10332_v45  ;;  %v10336_v28 = vadd.f32 %v5002_v55, %v4266_v15  ;;  %v5192_v8 = vadd.f32 %v5191_v10, %v10320_v58  ;;  %v11839_v10 = vld [vmem:[#allocation78_spill] sm:$0xff] }
 0x86b   :  { %11831 = vst [vmem:[#allocation96_spill] sm:$0xff] %v10336_v28  ;;  %v5193_v56 = vadd.f32 %v5192_v8, %v10323_v53  ;;  %v11841_v8 = vld [vmem:[#allocation71_spill] sm:$0xff] }
 0x86c   :  { %v4880_v63 = vpop.f32.mrb[216].mxu1 }
 0x86d   :  { %v5003_v59 = vmul.f32 %v4880_v63, %v11832_v1  ;;  %v4882_v7 = vpop.f32.mrb[217].mxu1  ;;  %v11836_v63 = vld [vmem:[#allocation77_spill] sm:$0xff] }
 0x86e   :  { %v4883_v29 = vpop.f32.mrb[218].mxu1 }
 0x86f   :  { %v10345_v43 = vadd.f32 %v5003_v59, %v4271_v48  ;;  %v5004_v60 = vmul.f32 %v4883_v29, %v11834_v24  ;;  %v4885_v15 = vpop.f32.mrb[219].mxu1  ;;  %v4282_v48 = vadd.f32 %v11837_v3, %v10048_v13  ;;  %v5194_v59 = vadd.f32 %v5193_v56, %v10332_v45  ;;  %v11843_v56 = vld [vmem:[#allocation75_spill] sm:$0xff] }
 0x871   :  { %11833 = vst [vmem:[#allocation97_spill] sm:$0xff] %v10345_v43  ;;  %v10349_v55 = vadd.f32 %v5004_v60, %v4274_v16  ;;  %v5195_v39 = vadd.f32 %v5194_v59, %v10336_v28 }
 0x873   :  { %11835 = vst [vmem:[#allocation98_spill] sm:$0xff] %v10349_v55 }
 0x874   :  { %v4888_v9 = vpop.f32.mrb[220].mxu1 }
 0x875   :  { %v5005_v1 = vmul.f32 %v4888_v9, %v11836_v63  ;;  %v4890_v46 = vpop.f32.mrb[221].mxu1  ;;  %v4287_v9 = vadd.f32 %v10048_v13, %v11841_v8  ;;  %v5196_v63 = vadd.f32 %v5195_v39, %v10345_v43  ;;  %v11847_v39 = vld [vmem:[#allocation68_spill] sm:$0xff] }
 0x876   :  { %v4891_v7 = vpop.f32.mrb[222].mxu1  ;;  %v11842_v46 = vld [vmem:[#allocation81_spill] sm:$0xff] }
 0x877   :  { %v10358_v29 = vadd.f32 %v5005_v1, %v4279_v22  ;;  %v5006_v16 = vmul.f32 %v4891_v7, %v11839_v10  ;;  %v4893_v24 = vpop.f32.mrb[223].mxu1  ;;  %v4290_v22 = vadd.f32 %v10048_v13, %v11843_v56  ;;  %v11845_v7 = vld [vmem:[#allocation3_spill] sm:$0xff]  ;;  %v5197_v59 = vadd.f32 %v5196_v63, %v10349_v55  ;;  %v11851_v63 = vld [vmem:[#allocation2_spill] sm:$0xff] }
 0x879   :  { %11838 = vst [vmem:[#allocation99_spill] sm:$0xff] %v10358_v29  ;;  %v10361_v60 = vadd.f32 %v5006_v16, %v4282_v48  ;;  %v5198_v24 = vadd.f32 %v5197_v59, %v10358_v29 }
 0x87b   :  { %11840 = vst [vmem:[#allocation100_spill] sm:$0xff] %v10361_v60 }
 0x87c   :  { %v4896_v15 = vpop.f32.mrb[224].mxu1 }
 0x87d   :  { %v5007_v53 = vmul.f32 %v4896_v15, %v11842_v46  ;;  %v4898_v3 = vpop.f32.mrb[225].mxu1  ;;  %v4295_v15 = vadd.f32 %v11847_v39, %v10048_v13  ;;  %v11848_v46 = vld [vmem:[#allocation83_spill] sm:$0xff] }
 0x87e   :  { %v4899_v58 = vpop.f32.mrb[226].mxu1  ;;  %v11853_v39 = vld [vmem:[#allocation79_spill] sm:$0xff] }
 0x87f   :  { %v10370_v1 = vadd.f32 %v5007_v53, %v4287_v9  ;;  %v5008_v48 = vmul.f32 %v4899_v58, %v11845_v7  ;;  %v4901_v10 = vpop.f32.mrb[227].mxu1  ;;  %v11849_v53 = vld [vmem:[#allocation72_spill] sm:$0xff]  ;;  %v5199_v58 = vadd.f32 %v5198_v24, %v10361_v60  ;;  %v11855_v24 = vld [vmem:[#allocation5_spill] sm:$0xff] }
 0x880   :  { %v4298_v9 = vadd.f32 %v11849_v53, %v10048_v13 }
 0x881   :  { %11844 = vst [vmem:[#allocation101_spill] sm:$0xff] %v10370_v1  ;;  %v10374_v16 = vadd.f32 %v5008_v48, %v4290_v22  ;;  %v5200_v48 = vadd.f32 %v5199_v58, %v10370_v1  ;;  %v11857_v58 = vld [vmem:[#allocation7_spill] sm:$0xff] }
 0x883   :  { %11846 = vst [vmem:[#allocation102_spill] sm:$0xff] %v10374_v16 }
 0x884   :  { %v4904_v8 = vpop.f32.mrb[228].mxu1 }
 0x885   :  { %v5009_v3 = vmul.f32 %v4904_v8, %v11848_v46  ;;  %v4906_v43 = vpop.f32.mrb[229].mxu1  ;;  %v4303_v8 = vadd.f32 %v10048_v13, %v11853_v39  ;;  %v11854_v46 = vld [vmem:[#allocation85_spill] sm:$0xff] }
 0x886   :  { %v4907_v28 = vpop.f32.mrb[230].mxu1  ;;  %v5201_v43 = vadd.f32 %v5200_v48, %v10374_v16  ;;  %v11859_v48 = vld [vmem:[#allocation76_spill] sm:$0xff] }
 0x887   :  { %v10383_v56 = vadd.f32 %v5009_v3, %v4295_v15  ;;  %v5010_v22 = vmul.f32 %v4907_v28, %v11851_v63  ;;  %v4909_v7 = vpop.f32.mrb[231].mxu1  ;;  %v4306_v15 = vadd.f32 %v10048_v13, %v11855_v24 }
 0x889   :  { %11850 = vst [vmem:[#allocation103_spill] sm:$0xff] %v10383_v56  ;;  %v10387_v10 = vadd.f32 %v5010_v22, %v4298_v9  ;;  %v5202_v28 = vadd.f32 %v5201_v43, %v10383_v56  ;;  %v11866_v56 = vld [vmem:[#allocation9_spill] sm:$0xff] }
 0x88b   :  { %11852 = vst [vmem:[#allocation52_spill] sm:$0xff] %v10387_v10  ;;  %v5203_v7 = vadd.f32 %v5202_v28, %v10387_v10  ;;  %v11864_v10 = vld [vmem:[#allocation4_spill] sm:$0xff] }
 0x88c   :  { %v4912_v59 = vpop.f32.mrb[232].mxu1 }
 0x88d   :  { %v5011_v29 = vmul.f32 %v4912_v59, %v11854_v46  ;;  %v4914_v53 = vpop.f32.mrb[233].mxu1  ;;  %v4311_v59 = vadd.f32 %v11859_v48, %v10048_v13 }
 0x88e   :  { %v4915_v55 = vpop.f32.mrb[234].mxu1  ;;  %v11860_v53 = vld [vmem:[#allocation87_spill] sm:$0xff] }
 0x88f   :  { %v10396_v3 = vadd.f32 %v5011_v29, %v4303_v8  ;;  %v5012_v9 = vmul.f32 %v4915_v55, %v11857_v58  ;;  %v4917_v63 = vpop.f32.mrb[235].mxu1  ;;  %v11861_v29 = vld [vmem:[#allocation80_spill] sm:$0xff]  ;;  %v11863_v55 = vld [vmem:[#allocation6_spill] sm:$0xff] }
 0x890   :  { %v4314_v8 = vadd.f32 %v11861_v29, %v10048_v13 }
 0x891   :  { %11856 = vst [vmem:[#allocation18_spill] sm:$0xff] %v10396_v3  ;;  %v10399_v22 = vadd.f32 %v5012_v9, %v4306_v15  ;;  %v5204_v46 = vadd.f32 %v5203_v7, %v10396_v3  ;;  %v4319_v7 = vadd.f32 %v10048_v13, %v11864_v10  ;;  %v11869_v10 = vld [vmem:[#allocation13_spill] sm:$0xff] }
 0x893   :  { %11858 = vst [vmem:[#allocation19_spill] sm:$0xff] %v10399_v22  ;;  %v5205_v28 = vadd.f32 %v5204_v46, %v10399_v22 }
 0x894   :  { %v4920_v39 = vpop.f32.mrb[236].mxu1 }
 0x895   :  { %v5013_v16 = vmul.f32 %v4920_v39, %v11860_v53  ;;  %v4922_v24 = vpop.f32.mrb[237].mxu1  ;;  %v11865_v39 = vld [vmem:[#allocation88_spill] sm:$0xff] }
 0x896   :  { %v4923_v1 = vpop.f32.mrb[238].mxu1 }
 0x897   :  { %v10408_v43 = vadd.f32 %v5013_v16, %v4311_v59  ;;  %v5014_v15 = vmul.f32 %v4923_v1, %v11863_v55  ;;  %v4925_v58 = vpop.f32.mrb[239].mxu1  ;;  %v4322_v16 = vadd.f32 %v10048_v13, %v11866_v56  ;;  %v11867_v1 = vld [vmem:[#allocation11_spill] sm:$0xff] }
 0x899   :  { %11862 = vst [vmem:[#allocation20_spill] sm:$0xff] %v10408_v43  ;;  %v5078_v9 = vadd.f32 %v5014_v15, %v4314_v8  ;;  %v5206_v63 = vadd.f32 %v5205_v28, %v10408_v43  ;;  %v11868_v43 = vld [vmem:[#allocation82_spill] sm:$0xff] }
 0x89a   :  { %v4327_v22 = vadd.f32 %v11868_v43, %v10048_v13 }
 0x89b   :  { %v5207_v59 = vadd.f32 %v5206_v63, %v5078_v9  ;;  %v11871_v63 = vld [vmem:[#allocation10_spill] sm:$0xff] }
 0x89c   :  { %v4928_v48 = vpop.f32.mrb[240].mxu1 }
 0x89d   :  { %v5015_v53 = vmul.f32 %v4928_v48, %v11865_v39  ;;  %v4930_v24 = vpop.f32.mrb[241].mxu1 }
 0x89e   :  { %v4931_v3 = vpop.f32.mrb[242].mxu1  ;;  %v11870_v24 = vld [vmem:[#allocation84_spill] sm:$0xff] }
 0x89f   :  { %v5079_v29 = vadd.f32 %v5015_v53, %v4319_v7  ;;  %v5016_v55 = vmul.f32 %v4931_v3, %v11867_v1  ;;  %v4933_v58 = vpop.f32.mrb[243].mxu1  ;;  %v4330_v45 = vadd.f32 %v11870_v24, %v10048_v13  ;;  %v11875_v24 = vld [vmem:[#allocation15_spill] sm:$0xff] }
 0x8a1   :  { %v5208_v46 = vadd.f32 %v5207_v59, %v5079_v29  ;;  %v5080_v8 = vadd.f32 %v5016_v55, %v4322_v16  ;;  %v11872_v55 = vld [vmem:[#allocation8_spill] sm:$0xff] }
 0x8a2   :  { %v4335_v58 = vadd.f32 %v10048_v13, %v11872_v55 }
 0x8a3   :  { %v5209_v15 = vadd.f32 %v5208_v46, %v5080_v8  ;;  %v11873_v46 = vld [vmem:[#allocation89_spill] sm:$0xff] }
 0x8a4   :  { %v4936_v28 = vpop.f32.mrb[244].mxu1 }
 0x8a5   :  { %v5017_v60 = vmul.f32 %v4936_v28, %v11869_v10  ;;  %v4938_v48 = vpop.f32.mrb[245].mxu1  ;;  %v11874_v10 = vld [vmem:[#allocation56_spill] sm:$0xff] }
 0x8a6   :  { %v4939_v39 = vpop.f32.mrb[246].mxu1  ;;  %v4338_v48 = vadd.f32 %v10048_v13, %v11874_v10  ;;  %v11879_v10 = vld [vmem:[#allocation14_spill] sm:$0xff] }
 0x8a7   :  { %v5081_v56 = vadd.f32 %v5017_v60, %v4327_v22  ;;  %v5018_v7 = vmul.f32 %v4939_v39, %v11871_v63  ;;  %v4941_v53 = vpop.f32.mrb[247].mxu1 }
 0x8a9   :  { %v5210_v3 = vadd.f32 %v5209_v15, %v5081_v56  ;;  %v5082_v1 = vadd.f32 %v5018_v7, %v4330_v45  ;;  %v11876_v7 = vld [vmem:[#allocation86_spill] sm:$0xff] }
 0x8aa   :  { %v4343_v53 = vadd.f32 %v11876_v7, %v10048_v13 }
 0x8ab   :  { %v5211_v59 = vadd.f32 %v5210_v3, %v5082_v1  ;;  %v11877_v3 = vld [vmem:[#allocation17_spill] sm:$0xff] }
 0x8ac   :  { %v4944_v16 = vpop.f32.mrb[248].mxu1 }
 0x8ad   :  { %v5019_v43 = vmul.f32 %v4944_v16, %v11873_v46  ;;  %v4946_v18 = vpop.f32.mrb[249].mxu1 }
 0x8ae   :  { %v4947_v28 = vpop.f32.mrb[250].mxu1  ;;  %v11878_v18 = vld [vmem:[#allocation55_spill] sm:$0xff] }
 0x8af   :  { %v5083_v44 = vadd.f32 %v5019_v43, %v4335_v58  ;;  %v5020_v60 = vmul.f32 %v4947_v28, %v11875_v24  ;;  %v4949_v22 = vpop.f32.mrb[251].mxu1  ;;  %v4346_v46 = vadd.f32 %v11878_v18, %v10048_v13  ;;  %v11880_v28 = vld [vmem:[#allocation90_spill] sm:$0xff] }
 0x8b1   :  { %v5212_v39 = vadd.f32 %v5211_v59, %v5083_v44  ;;  %v5084_v63 = vadd.f32 %v5020_v60, %v4338_v48 }
 0x8b3   :  { %v5213_v15 = vadd.f32 %v5212_v39, %v5084_v63 }
 0x8b4   :  { %v4952_v45 = vpop.f32.mrb[252].mxu1 }
 0x8b5   :  { %v5021_v55 = vmul.f32 %v4952_v45, %v11877_v3  ;;  %v4954_v21 = vpop.f32.mrb[253].mxu1 }
 0x8b6   :  { %v4955_v16 = vpop.f32.mrb[254].mxu1 }
 0x8b7   :  { %v5085_v57 = vadd.f32 %v5021_v55, %v4343_v53  ;;  %v5022_v58 = vmul.f32 %v4955_v16, %v11879_v10  ;;  %v4957_v43 = vpop.f32.mrb[255].mxu1 }
 0x8b9   :  { %v5151_v24 = vmul.f32 %v11880_v28, %v5085_v57  ;;  %v5086_v59 = vadd.f32 %v5022_v58, %v4346_v46 }
 0x8bb   :  { %v5214_v48 = vadd.f32 %v5213_v15, %v5151_v24  ;;  %v5152_v60 = vmul.f32 0.0, %v5086_v59 }
 0x8bd   :  { %v5215_v22 = vadd.f32 %v5214_v48, %v5152_v60 }
 0x8bf   :  { %v5216_v39 = vrot.slane %v5215_v22, 4 }
 0x8c1   :  { %v5217_v42 = vadd.f32 %v5216_v39, %v5215_v22 }
 0x8c3   :  { %v5218_v7 = vrot.slane %v5217_v42, 2 }
 0x8c5   :  { %v5219_v51 = vadd.f32 %v5218_v7, %v5217_v42 }
 0x8c7   :  { %v5220_v45 = vrot.slane %v5219_v51, 1 }
 0x8c9   :  { %v5221_v21 = vadd.f32 %v5220_v45, %v5219_v51 }
 0x8cb   :  { %v10438_v3 = vmul.f32 0.002, %v5221_v21 }
 0x8cd   :  { %v10441_v13 = vsub.f32 %v5078_v9, %v10438_v3  ;;  %v10444_v53 = vsub.f32 %v5079_v29, %v10438_v3  ;;  %v10447_v55 = vsub.f32 %v5080_v8, %v10438_v3  ;;  %v10450_v15 = vsub.f32 %v5081_v56, %v10438_v3  ;;  %v11888_v56 = vld [vmem:[#allocation59_spill] sm:$0xff] }
 0x8ce   :  { %v10453_v16 = vsub.f32 %v5082_v1, %v10438_v3  ;;  %v10456_v42 = vsub.f32 %v5083_v44, %v10438_v3  ;;  %v10459_v51 = vsub.f32 %v5084_v63, %v10438_v3  ;;  %v10462_v9 = vsub.f32 %v5085_v57, %v10438_v3 }
 0x8cf   :  { %11881 = vst [vmem:[#allocation21_spill] sm:$0xff] %v10441_v13  ;;  %11882 = vst [vmem:[#allocation22_spill] sm:$0xff] %v10444_v53  ;;  %v10465_v29 = vsub.f32 %v5086_v59, %v10438_v3  ;;  %v10469_v8 = vsub.f32 %v10058_v35, %v10438_v3  ;;  %v10473_v1 = vsub.f32 %v11888_v56, %v10438_v3 }
 0x8d0   :  { %11883 = vst [vmem:[#allocation23_spill] sm:$0xff] %v10447_v55  ;;  %11884 = vst [vmem:[#allocation24_spill] sm:$0xff] %v10450_v15  ;;  %v10477_v44 = vsub.f32 %v10074_v23, %v10438_v3  ;;  %v10485_v18 = vsub.f32 %v10077_v4, %v10438_v3  ;;  %v10489_v35 = vsub.f32 %v10090_v62, %v10438_v3 }
 0x8d1   :  { %11885 = vst [vmem:[#allocation25_spill] sm:$0xff] %v10453_v16  ;;  %11886 = vst [vmem:[#allocation26_spill] sm:$0xff] %v10456_v42  ;;  %v5351_v63 = vmul.f32 %v10469_v8, %v10469_v8  ;;  %v5352_v57 = vmul.f32 %v10473_v1, %v10473_v1  ;;  %v10495_v23 = vsub.f32 %v10093_v52, %v10438_v3 }
 0x8d2   :  { %11887 = vst [vmem:[#allocation27_spill] sm:$0xff] %v10462_v9  ;;  %v5353_v46 = vmul.f32 %v10477_v44, %v10477_v44  ;;  %v5354_v58 = vmul.f32 %v10485_v18, %v10485_v18  ;;  %v10501_v4 = vsub.f32 %v10106_v2, %v10438_v3  ;;  %v5355_v62 = vmul.f32 %v10489_v35, %v10489_v35 }
 0x8d3   :  { %v5415_v10 = vadd.f32 %v5352_v57, %v5351_v63  ;;  %v10507_v59 = vsub.f32 %v10109_v49, %v10438_v3  ;;  %v5356_v52 = vmul.f32 %v10495_v23, %v10495_v23  ;;  %v10513_v60 = vsub.f32 %v10122_v6, %v10438_v3 }
 0x8d4   :  { %v5357_v2 = vmul.f32 %v10501_v4, %v10501_v4  ;;  %v10519_v39 = vsub.f32 %v10125_v54, %v10438_v3  ;;  %v10525_v45 = vsub.f32 %v10135_v32, %v10438_v3  ;;  %v10531_v56 = vsub.f32 %v10138_v40, %v10438_v3 }
 0x8d5   :  { %v5416_v43 = vadd.f32 %v5415_v10, %v5353_v46  ;;  %v5358_v49 = vmul.f32 %v10507_v59, %v10507_v59  ;;  %v5359_v6 = vmul.f32 %v10513_v60, %v10513_v60  ;;  %v10537_v57 = vsub.f32 %v10145_v36, %v10438_v3 }
 0x8d6   :  { %v5360_v54 = vmul.f32 %v10519_v39, %v10519_v39  ;;  %v5361_v32 = vmul.f32 %v10525_v45, %v10525_v45  ;;  %v10543_v10 = vsub.f32 %v10148_v12, %v10438_v3  ;;  %v5362_v40 = vmul.f32 %v10531_v56, %v10531_v56 }
 0x8d7   :  { %v5417_v24 = vadd.f32 %v5416_v43, %v5354_v58  ;;  %v10549_v43 = vsub.f32 %v10155_v26, %v10438_v3  ;;  %v5363_v36 = vmul.f32 %v10537_v57, %v10537_v57 }
 0x8d8   :  { %v5364_v12 = vmul.f32 %v10543_v10, %v10543_v10 }
 0x8d9   :  { %v5418_v48 = vadd.f32 %v5417_v24, %v5355_v62  ;;  %v10555_v24 = vsub.f32 %v10158_v30, %v10438_v3  ;;  %v5365_v26 = vmul.f32 %v10549_v43, %v10549_v43 }
 0x8db   :  { %v5419_v22 = vadd.f32 %v5418_v48, %v5356_v52  ;;  %v10561_v48 = vsub.f32 %v10168_v50, %v10438_v3  ;;  %v5366_v30 = vmul.f32 %v10555_v24, %v10555_v24 }
 0x8dd   :  { %v5420_v7 = vadd.f32 %v5419_v22, %v5357_v2  ;;  %v10567_v22 = vsub.f32 %v10171_v5, %v10438_v3  ;;  %v5367_v50 = vmul.f32 %v10561_v48, %v10561_v48 }
 0x8df   :  { %v5421_v21 = vadd.f32 %v5420_v7, %v5358_v49  ;;  %v10573_v7 = vsub.f32 %v10180_v25, %v10438_v3  ;;  %v5368_v5 = vmul.f32 %v10567_v22, %v10567_v22 }
 0x8e1   :  { %v5422_v63 = vadd.f32 %v5421_v21, %v5359_v6  ;;  %v10579_v21 = vsub.f32 %v10184_v61, %v10438_v3  ;;  %v5369_v25 = vmul.f32 %v10573_v7, %v10573_v7 }
 0x8e3   :  { %v5423_v46 = vadd.f32 %v5422_v63, %v5360_v54  ;;  %v10585_v63 = vsub.f32 %v10193_v33, %v10438_v3  ;;  %v5370_v61 = vmul.f32 %v10579_v21, %v10579_v21 }
 0x8e5   :  { %v5424_v58 = vadd.f32 %v5423_v46, %v5361_v32  ;;  %v10591_v46 = vsub.f32 %v10197_v37, %v10438_v3  ;;  %v5371_v33 = vmul.f32 %v10585_v63, %v10585_v63 }
 0x8e7   :  { %v5425_v62 = vadd.f32 %v5424_v58, %v5362_v40  ;;  %v10597_v58 = vsub.f32 %v10206_v0, %v10438_v3  ;;  %v5372_v37 = vmul.f32 %v10591_v46, %v10591_v46 }
 0x8e9   :  { %v5426_v52 = vadd.f32 %v5425_v62, %v5363_v36  ;;  %v10603_v62 = vsub.f32 %v10209_v27, %v10438_v3  ;;  %v5373_v0 = vmul.f32 %v10597_v58, %v10597_v58 }
 0x8eb   :  { %v5427_v2 = vadd.f32 %v5426_v52, %v5364_v12  ;;  %v10609_v52 = vsub.f32 %v10218_v20, %v10438_v3  ;;  %v5374_v27 = vmul.f32 %v10603_v62, %v10603_v62 }
 0x8ed   :  { %v5428_v49 = vadd.f32 %v5427_v2, %v5365_v26  ;;  %v10615_v2 = vsub.f32 %v10222_v38, %v10438_v3  ;;  %v5375_v20 = vmul.f32 %v10609_v52, %v10609_v52 }
 0x8ef   :  { %v5429_v6 = vadd.f32 %v5428_v49, %v5366_v30  ;;  %v10621_v49 = vsub.f32 %v10231_v47, %v10438_v3  ;;  %v5376_v38 = vmul.f32 %v10615_v2, %v10615_v2 }
 0x8f1   :  { %v5430_v54 = vadd.f32 %v5429_v6, %v5367_v50  ;;  %v10627_v6 = vsub.f32 %v10235_v14, %v10438_v3  ;;  %v5377_v47 = vmul.f32 %v10621_v49, %v10621_v49 }
 0x8f3   :  { %v5431_v32 = vadd.f32 %v5430_v54, %v5368_v5  ;;  %v10633_v54 = vsub.f32 %v10244_v41, %v10438_v3  ;;  %v5378_v14 = vmul.f32 %v10627_v6, %v10627_v6 }
 0x8f5   :  { %v5432_v40 = vadd.f32 %v5431_v32, %v5369_v25  ;;  %v10639_v32 = vsub.f32 %v10247_v34, %v10438_v3  ;;  %v5379_v41 = vmul.f32 %v10633_v54, %v10633_v54 }
 0x8f7   :  { %v5433_v36 = vadd.f32 %v5432_v40, %v5370_v61  ;;  %v10645_v40 = vsub.f32 %v10256_v11, %v10438_v3  ;;  %v5380_v34 = vmul.f32 %v10639_v32, %v10639_v32 }
 0x8f9   :  { %v5434_v12 = vadd.f32 %v5433_v36, %v5371_v33  ;;  %v10651_v36 = vsub.f32 %v10260_v17, %v10438_v3  ;;  %v5381_v11 = vmul.f32 %v10645_v40, %v10645_v40 }
 0x8fb   :  { %v5435_v26 = vadd.f32 %v5434_v12, %v5372_v37  ;;  %v10657_v12 = vsub.f32 %v10269_v31, %v10438_v3  ;;  %v5382_v17 = vmul.f32 %v10651_v36, %v10651_v36 }
 0x8fd   :  { %v5436_v30 = vadd.f32 %v5435_v26, %v5373_v0  ;;  %v10663_v26 = vsub.f32 %v10273_v19, %v10438_v3  ;;  %v5383_v31 = vmul.f32 %v10657_v12, %v10657_v12 }
 0x8ff   :  { %v5437_v50 = vadd.f32 %v5436_v30, %v5374_v27  ;;  %v11889_v30 = vld [vmem:[#allocation60_spill] sm:$0xff]  ;;  %v5384_v19 = vmul.f32 %v10663_v26, %v10663_v26 }
 0x901   :  { %v5438_v5 = vadd.f32 %v5437_v50, %v5375_v20  ;;  %v10669_v20 = vsub.f32 %v11889_v30, %v10438_v3 }
 0x903   :  { %v5439_v25 = vadd.f32 %v5438_v5, %v5376_v38  ;;  %v11890_v38 = vld [vmem:[#allocation63_spill] sm:$0xff] }
 0x904   :  { %v10675_v5 = vsub.f32 %v11890_v38, %v10438_v3 }
 0x905   :  { %v5440_v61 = vadd.f32 %v5439_v25, %v5377_v47  ;;  %v11891_v25 = vld [vmem:[#allocation64_spill] sm:$0xff] }
 0x907   :  { %v5441_v33 = vadd.f32 %v5440_v61, %v5378_v14  ;;  %v10681_v14 = vsub.f32 %v11891_v25, %v10438_v3  ;;  %v5385_v61 = vmul.f32 %v10669_v20, %v10669_v20 }
 0x909   :  { %v5442_v37 = vadd.f32 %v5441_v33, %v5379_v41  ;;  %v11892_v33 = vld [vmem:[#allocation16_spill] sm:$0xff] }
 0x90b   :  { %v5443_v0 = vadd.f32 %v5442_v37, %v5380_v34  ;;  %v10687_v34 = vsub.f32 %v11892_v33, %v10438_v3  ;;  %v5386_v37 = vmul.f32 %v10675_v5, %v10675_v5  ;;  %v11900_v33 = vld [vmem:[#allocation94_spill] sm:$0xff] }
 0x90d   :  { %v5444_v27 = vadd.f32 %v5443_v0, %v5381_v11  ;;  %11893 = vst [vmem:[#allocation28_spill] sm:$0xff] %v10687_v34  ;;  %v11894_v0 = vld [vmem:[#allocation91_spill] sm:$0xff]  ;;  %v5388_v38 = vmul.f32 %v10687_v34, %v10687_v34 }
 0x90f   :  { %v5445_v50 = vadd.f32 %v5444_v27, %v5382_v17  ;;  %v10693_v17 = vsub.f32 %v11894_v0, %v10438_v3  ;;  %v5387_v27 = vmul.f32 %v10681_v14, %v10681_v14  ;;  %v10711_v0 = vsub.f32 %v11900_v33, %v10438_v3  ;;  %v11906_v33 = vld [vmem:[#allocation97_spill] sm:$0xff] }
 0x911   :  { %v5446_v47 = vadd.f32 %v5445_v50, %v5383_v31  ;;  %11895 = vst [vmem:[#allocation29_spill] sm:$0xff] %v10693_v17  ;;  %v11896_v31 = vld [vmem:[#allocation92_spill] sm:$0xff]  ;;  %11901 = vst [vmem:[#allocation32_spill] sm:$0xff] %v10711_v0 }
 0x912   :  { %v10699_v50 = vsub.f32 %v11896_v31, %v10438_v3  ;;  %v11902_v31 = vld [vmem:[#allocation95_spill] sm:$0xff] }
 0x913   :  { %v5447_v41 = vadd.f32 %v5446_v47, %v5384_v19  ;;  %v11898_v47 = vld [vmem:[#allocation93_spill] sm:$0xff]  ;;  %v10717_v34 = vsub.f32 %v11902_v31, %v10438_v3  ;;  %v11908_v31 = vld [vmem:[#allocation98_spill] sm:$0xff] }
 0x914   :  { %11897 = vst [vmem:[#allocation30_spill] sm:$0xff] %v10699_v50  ;;  %v10705_v25 = vsub.f32 %v11898_v47, %v10438_v3  ;;  %v11904_v47 = vld [vmem:[#allocation96_spill] sm:$0xff] }
 0x915   :  { %v5448_v11 = vadd.f32 %v5447_v41, %v5385_v61  ;;  %v5389_v61 = vmul.f32 %v10693_v17, %v10693_v17  ;;  %11903 = vst [vmem:[#allocation33_spill] sm:$0xff] %v10717_v34  ;;  %v10723_v17 = vsub.f32 %v11904_v47, %v10438_v3  ;;  %v11910_v47 = vld [vmem:[#allocation99_spill] sm:$0xff] }
 0x916   :  { %11899 = vst [vmem:[#allocation31_spill] sm:$0xff] %v10705_v25 }
 0x917   :  { %v5449_v30 = vadd.f32 %v5448_v11, %v5386_v37  ;;  %v5390_v37 = vmul.f32 %v10699_v50, %v10699_v50  ;;  %11905 = vst [vmem:[#allocation34_spill] sm:$0xff] %v10723_v17  ;;  %v10729_v50 = vsub.f32 %v11906_v33, %v10438_v3  ;;  %v11912_v33 = vld [vmem:[#allocation100_spill] sm:$0xff] }
 0x919   :  { %v5450_v19 = vadd.f32 %v5449_v30, %v5387_v27  ;;  %v5391_v27 = vmul.f32 %v10705_v25, %v10705_v25  ;;  %11907 = vst [vmem:[#allocation35_spill] sm:$0xff] %v10729_v50  ;;  %v10735_v25 = vsub.f32 %v11908_v31, %v10438_v3  ;;  %v11914_v31 = vld [vmem:[#allocation101_spill] sm:$0xff] }
 0x91b   :  { %v5451_v41 = vadd.f32 %v5450_v19, %v5388_v38  ;;  %v5392_v38 = vmul.f32 %v10711_v0, %v10711_v0  ;;  %11909 = vst [vmem:[#allocation36_spill] sm:$0xff] %v10735_v25  ;;  %v10741_v0 = vsub.f32 %v11910_v47, %v10438_v3  ;;  %v11916_v47 = vld [vmem:[#allocation102_spill] sm:$0xff] }
 0x91d   :  { %v5452_v11 = vadd.f32 %v5451_v41, %v5389_v61  ;;  %v5393_v61 = vmul.f32 %v10717_v34, %v10717_v34  ;;  %11911 = vst [vmem:[#allocation37_spill] sm:$0xff] %v10741_v0  ;;  %v10747_v34 = vsub.f32 %v11912_v33, %v10438_v3  ;;  %v11918_v33 = vld [vmem:[#allocation103_spill] sm:$0xff] }
 0x91f   :  { %v5453_v30 = vadd.f32 %v5452_v11, %v5390_v37  ;;  %v5394_v37 = vmul.f32 %v10723_v17, %v10723_v17  ;;  %11913 = vst [vmem:[#allocation38_spill] sm:$0xff] %v10747_v34  ;;  %v10753_v17 = vsub.f32 %v11914_v31, %v10438_v3  ;;  %v11919_v31 = vld [vmem:[#allocation52_spill] sm:$0xff] }
 0x921   :  { %v5454_v19 = vadd.f32 %v5453_v30, %v5391_v27  ;;  %v5395_v27 = vmul.f32 %v10729_v50, %v10729_v50  ;;  %11915 = vst [vmem:[#allocation39_spill] sm:$0xff] %v10753_v17  ;;  %v10759_v50 = vsub.f32 %v11916_v47, %v10438_v3  ;;  %v11921_v47 = vld [vmem:[#allocation18_spill] sm:$0xff] }
 0x923   :  { %v5455_v41 = vadd.f32 %v5454_v19, %v5392_v38  ;;  %v5396_v38 = vmul.f32 %v10735_v25, %v10735_v25  ;;  %11917 = vst [vmem:[#allocation40_spill] sm:$0xff] %v10759_v50  ;;  %v10765_v25 = vsub.f32 %v11918_v33, %v10438_v3  ;;  %v11922_v33 = vld [vmem:[#allocation19_spill] sm:$0xff] }
 0x925   :  { %v5456_v11 = vadd.f32 %v5455_v41, %v5393_v61  ;;  %v5397_v61 = vmul.f32 %v10741_v0, %v10741_v0  ;;  %v10771_v0 = vsub.f32 %v11919_v31, %v10438_v3  ;;  %v11923_v31 = vld [vmem:[#allocation20_spill] sm:$0xff] }
 0x927   :  { %v5457_v30 = vadd.f32 %v5456_v11, %v5394_v37  ;;  %v5398_v37 = vmul.f32 %v10747_v34, %v10747_v34  ;;  %11920 = vst [vmem:[#allocation41_spill] sm:$0xff] %v10771_v0  ;;  %v10777_v34 = vsub.f32 %v11921_v47, %v10438_v3 }
 0x929   :  { %v5458_v19 = vadd.f32 %v5457_v30, %v5395_v27  ;;  %v5399_v27 = vmul.f32 %v10753_v17, %v10753_v17  ;;  %v10783_v17 = vsub.f32 %v11922_v33, %v10438_v3 }
 0x92b   :  { %v5459_v41 = vadd.f32 %v5458_v19, %v5396_v38  ;;  %v5400_v38 = vmul.f32 %v10759_v50, %v10759_v50  ;;  %v10789_v50 = vsub.f32 %v11923_v31, %v10438_v3  ;;  %v5404_v47 = vmul.f32 %v10783_v17, %v10783_v17 }
 0x92c   :  { %v5407_v3 = vmul.f32 %v10444_v53, %v10444_v53  ;;  %v5408_v31 = vmul.f32 %v10447_v55, %v10447_v55 }
 0x92d   :  { %v5460_v11 = vadd.f32 %v5459_v41, %v5397_v61  ;;  %v5401_v61 = vmul.f32 %v10765_v25, %v10765_v25 }
 0x92f   :  { %v5461_v30 = vadd.f32 %v5460_v11, %v5398_v37  ;;  %v5402_v37 = vmul.f32 %v10771_v0, %v10771_v0  ;;  %v5406_v0 = vmul.f32 %v10441_v13, %v10441_v13 }
 0x931   :  { %v5462_v19 = vadd.f32 %v5461_v30, %v5399_v27  ;;  %v5403_v27 = vmul.f32 %v10777_v34, %v10777_v34 }
 0x933   :  { %v5463_v41 = vadd.f32 %v5462_v19, %v5400_v38  ;;  %v5405_v19 = vmul.f32 %v10789_v50, %v10789_v50 }
 0x935   :  { %v5464_v11 = vadd.f32 %v5463_v41, %v5401_v61 }
 0x937   :  { %v5465_v30 = vadd.f32 %v5464_v11, %v5402_v37  ;;  %v5409_v11 = vmul.f32 %v10450_v15, %v10450_v15 }
 0x939   :  { %v5466_v38 = vadd.f32 %v5465_v30, %v5403_v27  ;;  %v5410_v30 = vmul.f32 %v10453_v16, %v10453_v16 }
 0x93b   :  { %v5467_v33 = vadd.f32 %v5466_v38, %v5404_v47  ;;  %v5349_v38 = vmul.f32 %v11880_v28, %v10462_v9 }
 0x93d   :  { %v5468_v61 = vadd.f32 %v5467_v33, %v5405_v19  ;;  %v5411_v19 = vmul.f32 %v10456_v42, %v10456_v42 }
 0x93f   :  { %v5469_v41 = vadd.f32 %v5468_v61, %v5406_v0  ;;  %v5350_v0 = vmul.f32 0.0, %v10465_v29  ;;  %v5412_v61 = vmul.f32 %v10459_v51, %v10459_v51 }
 0x941   :  { %v5470_v37 = vadd.f32 %v5469_v41, %v5407_v3  ;;  %v5413_v41 = vmul.f32 %v5349_v38, %v5349_v38  ;;  %v11924_v38 = vld [vmem:[#allocation12_spill] sm:$0xff] }
 0x943   :  { %v5471_v27 = vadd.f32 %v5470_v37, %v5408_v31  ;;  %v5414_v31 = vmul.f32 %v5350_v0, %v5350_v0 }
 0x945   :  { %v5472_v47 = vadd.f32 %v5471_v27, %v5409_v11 }
 0x947   :  { %v5473_v33 = vadd.f32 %v5472_v47, %v5410_v30  ;;  %v5087_v30 = vld [vmem:[%s11413_s11] sm:$0x1] }
 0x949   :  { %v5474_v3 = vadd.f32 %v5473_v33, %v5411_v19  ;;  %v11925_v33 = vsub.s32 0, %v11924_v38  ;;  %v11935_v38 = vld [vmem:[#allocation37_spill] sm:$0xff] }
 0x94b   :  { %v5475_v15 = vadd.f32 %v5474_v3, %v5412_v61  ;;  %v11928_v61 = vld [vmem:[#allocation30_spill] sm:$0xff]  ;;  %v11929_v3 = vld [vmem:[#allocation31_spill] sm:$0xff] }
 0x94d   :  { %v5476_v37 = vadd.f32 %v5475_v15, %v5413_v41  ;;  %v11930_v41 = vld [vmem:[#allocation32_spill] sm:$0xff] }
 0x94f   :  { %v5477_v55 = vadd.f32 %v5476_v37, %v5414_v31  ;;  %v11931_v31 = vld [vmem:[#allocation33_spill] sm:$0xff] }
 0x951   :  { %v5478_v16 = vrot.slane %v5477_v55, 4 }
 0x953   :  { %v5479_v11 = vadd.f32 %v5478_v16, %v5477_v55 }
 0x955   :  { %v5480_v27 = vrot.slane %v5479_v11, 2 }
 0x957   :  { %v5481_v53 = vadd.f32 %v5480_v27, %v5479_v11  ;;  %v11932_v11 = vld [vmem:[#allocation34_spill] sm:$0xff] }
 0x959   :  { %v5482_v28 = vrot.slane %v5481_v53, 1 }
 0x95b   :  { %v5483_v9 = vadd.f32 %v5482_v28, %v5481_v53  ;;  %v11933_v28 = vld [vmem:[#allocation35_spill] sm:$0xff] }
 0x95d   :  { %v5484_v13 = vmul.f32 0.002, %v5483_v9 }
 0x95f   :  { %v5485_v42 = vadd.f32 1e-05, %v5484_v13 }
 0x961   :  { %6825 = vrsqrt.f32 %v5485_v42 }
 0x96b   :  { %v6826_v47 = vpop.eup %6825 }
 0x96c   :  { %v5487_v19 = vmul.f32 %v6826_v47, %v5087_v30  ;;  %v11934_v47 = vld [vmem:[#allocation36_spill] sm:$0xff] }
 0x96e   :  { %v10819_v0 = vrot.slane %v5487_v19, %v11925_v33 }
 0x970   :  { %v10823_v55 = vmul.f32 %v10819_v0, %v10469_v8  ;;  %v10827_v53 = vmul.f32 %v10819_v0, %v10473_v1  ;;  %v10831_v13 = vmul.f32 %v10819_v0, %v10477_v44  ;;  %v10835_v15 = vmul.f32 %v10819_v0, %v10485_v18 }
 0x971   :  { %v10839_v16 = vmul.f32 %v10819_v0, %v10489_v35  ;;  %v10843_v42 = vmul.f32 %v10819_v0, %v10495_v23  ;;  %v10847_v9 = vmul.f32 %v10819_v0, %v10501_v4  ;;  %v10851_v8 = vmul.f32 %v10819_v0, %v10507_v59 }
 0x972   :  { %v10855_v1 = vmul.f32 %v10819_v0, %v10513_v60  ;;  %v10859_v44 = vmul.f32 %v10819_v0, %v10519_v39  ;;  %v10863_v18 = vmul.f32 %v10819_v0, %v10525_v45  ;;  %v10867_v35 = vmul.f32 %v10819_v0, %v10531_v56 }
 0x973   :  { %v10871_v23 = vmul.f32 %v10819_v0, %v10537_v57  ;;  %v10875_v4 = vmul.f32 %v10819_v0, %v10543_v10  ;;  %v10879_v59 = vmul.f32 %v10819_v0, %v10549_v43  ;;  %v10883_v60 = vmul.f32 %v10819_v0, %v10555_v24 }
 0x974   :  { %v10887_v39 = vmul.f32 %v10819_v0, %v10561_v48  ;;  %v10891_v45 = vmul.f32 %v10819_v0, %v10567_v22  ;;  %v10895_v56 = vmul.f32 %v10819_v0, %v10573_v7  ;;  %v10899_v57 = vmul.f32 %v10819_v0, %v10579_v21 }
 0x975   :  { %v10903_v10 = vmul.f32 %v10819_v0, %v10585_v63  ;;  %v10907_v43 = vmul.f32 %v10819_v0, %v10591_v46  ;;  %v10911_v24 = vmul.f32 %v10819_v0, %v10597_v58  ;;  %v10915_v48 = vmul.f32 %v10819_v0, %v10603_v62 }
 0x976   :  { %v10919_v22 = vmul.f32 %v10819_v0, %v10609_v52  ;;  %v10923_v7 = vmul.f32 %v10819_v0, %v10615_v2  ;;  %v10927_v21 = vmul.f32 %v10819_v0, %v10621_v49  ;;  %v10931_v63 = vmul.f32 %v10819_v0, %v10627_v6 }
 0x977   :  { %v10935_v46 = vmul.f32 %v10819_v0, %v10633_v54  ;;  %v10939_v58 = vmul.f32 %v10819_v0, %v10639_v32  ;;  %v10943_v62 = vmul.f32 %v10819_v0, %v10645_v40  ;;  %v10947_v52 = vmul.f32 %v10819_v0, %v10651_v36  ;;  %v11926_v40 = vld [vmem:[#allocation28_spill] sm:$0xff] }
 0x978   :  { %v10951_v2 = vmul.f32 %v10819_v0, %v10657_v12  ;;  %v10955_v49 = vmul.f32 %v10819_v0, %v10663_v26  ;;  %v10959_v6 = vmul.f32 %v10819_v0, %v10669_v20  ;;  %v10963_v54 = vmul.f32 %v10819_v0, %v10675_v5  ;;  %v11927_v12 = vld [vmem:[#allocation29_spill] sm:$0xff] }
 0x979   :  { %v10967_v32 = vmul.f32 %v10819_v0, %v10681_v14  ;;  %v10971_v36 = vmul.f32 %v10819_v0, %v11926_v40  ;;  %v10975_v26 = vmul.f32 %v10819_v0, %v11927_v12  ;;  %v10979_v20 = vmul.f32 %v10819_v0, %v11928_v61  ;;  %v11936_v40 = vld [vmem:[#allocation38_spill] sm:$0xff]  ;;  %v11937_v61 = vld [vmem:[#allocation39_spill] sm:$0xff] }
 0x97a   :  { %v10983_v5 = vmul.f32 %v10819_v0, %v11929_v3  ;;  %v10987_v14 = vmul.f32 %v10819_v0, %v11930_v41  ;;  %v10991_v37 = vmul.f32 %v10819_v0, %v11931_v31  ;;  %v10995_v27 = vmul.f32 %v10819_v0, %v11932_v11  ;;  %v11938_v41 = vld [vmem:[#allocation40_spill] sm:$0xff] }
 0x97b   :  { %v10999_v30 = vmul.f32 %v10819_v0, %v11933_v28  ;;  %v11003_v19 = vmul.f32 %v10819_v0, %v11934_v47  ;;  %v11007_v33 = vmul.f32 %v10819_v0, %v11935_v38  ;;  %v11011_v12 = vmul.f32 %v10819_v0, %v11936_v40  ;;  %v11941_v28 = vld [vmem:[#allocation41_spill] sm:$0xff]  ;;  %v11032_v38 = vld [vmem:[%s11414_s12] ss:$0 sm:$0xff] }
 0x97c   :  { %v11015_v3 = vmul.f32 %v10819_v0, %v11937_v61  ;;  %v11019_v31 = vmul.f32 %v10819_v0, %v11938_v41  ;;  %v11023_v11 = vmul.f32 %v10819_v0, %v10765_v25  ;;  %v11027_v47 = vmul.f32 %v10819_v0, %v11941_v28  ;;  %v11946_v41 = vld [vmem:[#allocation21_spill] sm:$0xff] }
 0x97d   :  { %v11036_v40 = vmul.f32 %v10819_v0, %v10777_v34  ;;  %v11040_v61 = vmul.f32 %v10819_v0, %v10783_v17  ;;  %v11044_v25 = vmul.f32 %v10819_v0, %v10789_v50  ;;  %v11048_v28 = vmul.f32 %v10819_v0, %v11946_v41 }
 0x97e   :  { %11939 = vst [vmem:[#allocation42_spill] sm:$0xff] %v11019_v31  ;;  %11940 = vst [vmem:[#allocation43_spill] sm:$0xff] %v11023_v11  ;;  %v11949_v31 = vld [vmem:[#allocation23_spill] sm:$0xff] }
 0x97f   :  { %11942 = vst [vmem:[#allocation44_spill] sm:$0xff] %v11027_v47  ;;  %11943 = vst [vmem:[#allocation45_spill] sm:$0xff] %v11036_v40  ;;  %v11947_v47 = vld [vmem:[#allocation22_spill] sm:$0xff]  ;;  %v11056_v34 = vmul.f32 %v10819_v0, %v11949_v31  ;;  %v11950_v40 = vld [vmem:[#allocation24_spill] sm:$0xff] }
 0x980   :  { %11944 = vst [vmem:[#allocation46_spill] sm:$0xff] %v11040_v61  ;;  %11945 = vst [vmem:[#allocation47_spill] sm:$0xff] %v11044_v25  ;;  %v11052_v11 = vmul.f32 %v10819_v0, %v11947_v47  ;;  %v11060_v17 = vmul.f32 %v10819_v0, %v11950_v40  ;;  %v11951_v61 = vld [vmem:[#allocation25_spill] sm:$0xff]  ;;  %v11953_v25 = vld [vmem:[#allocation26_spill] sm:$0xff]  ;;  %v11072_v47 = vmul.f32 %v10819_v0, %v10459_v51 }
 0x981   :  { %v11064_v50 = vmul.f32 %v10819_v0, %v11951_v61  ;;  %v11068_v41 = vmul.f32 %v10819_v0, %v11953_v25  ;;  %v11080_v40 = vmul.f32 %v10819_v0, %v10465_v29  ;;  %v5562_v61 = vadd.f32 %v11032_v38, %v10823_v55 }
 0x982   :  { %11948 = vst [vmem:[#allocation48_spill] sm:$0xff] %v11052_v11  ;;  %v11954_v11 = vld [vmem:[#allocation27_spill] sm:$0xff]  ;;  %v5564_v25 = vadd.f32 %v11032_v38, %v10831_v13  ;;  %v5565_v51 = vadd.f32 %v11032_v38, %v10835_v15  ;;  %v5568_v29 = vadd.f32 %v11032_v38, %v10847_v9  ;;  %v5570_v55 = vadd.f32 %v11032_v38, %v10855_v1 }
 0x983   :  { %11952 = vst [vmem:[#allocation49_spill] sm:$0xff] %v11064_v50  ;;  %v11076_v31 = vmul.f32 %v10819_v0, %v11954_v11  ;;  %v5563_v50 = vadd.f32 %v11032_v38, %v10827_v53  ;;  %v5566_v11 = vadd.f32 %v11032_v38, %v10839_v16  ;;  %v5569_v0 = vadd.f32 %v11032_v38, %v10851_v8 }
 0x984   :  { %v5571_v53 = vadd.f32 %v11032_v38, %v10859_v44  ;;  %v5572_v13 = vadd.f32 %v11032_v38, %v10863_v18  ;;  %v5573_v15 = vadd.f32 %v11032_v38, %v10867_v35  ;;  %5626 = vst [vmem:[%s11415_s13] sm:$0xff] %v5562_v61  ;;  %5628 = vst [vmem:[%s11415_s13 + $0x10] sm:$0xff] %v5564_v25 }
 0x985   :  { %11955 = vst [vmem:[#allocation50_spill] sm:$0xff] %v11076_v31  ;;  %v5567_v31 = vadd.f32 %v11032_v38, %v10843_v42  ;;  %5627 = vst [vmem:[%s11415_s13 + $0x8] sm:$0xff] %v5563_v50  ;;  %v5574_v16 = vadd.f32 %v11032_v38, %v10871_v23  ;;  %v5575_v42 = vadd.f32 %v11032_v38, %v10875_v4 }
 0x986   :  { %5629 = vst [vmem:[%s11415_s13 + $0x18] sm:$0xff] %v5565_v51  ;;  %v5576_v9 = vadd.f32 %v11032_v38, %v10879_v59  ;;  %v5577_v8 = vadd.f32 %v11032_v38, %v10883_v60  ;;  %5630 = vst [vmem:[%s11415_s13 + $0x20] sm:$0xff] %v5566_v11  ;;  %v5578_v1 = vadd.f32 %v11032_v38, %v10887_v39 }
 0x987   :  { %5631 = vst [vmem:[%s11415_s13 + $0x28] sm:$0xff] %v5567_v31  ;;  %5632 = vst [vmem:[%s11415_s13 + $0x30] sm:$0xff] %v5568_v29  ;;  %v5579_v44 = vadd.f32 %v11032_v38, %v10891_v45  ;;  %v5580_v18 = vadd.f32 %v11032_v38, %v10895_v56  ;;  %v5581_v35 = vadd.f32 %v11032_v38, %v10899_v57  ;;  %v11960_v50 = vld [vmem:[#allocation46_spill] sm:$0xff]  ;;  %v11961_v61 = vld [vmem:[#allocation47_spill] sm:$0xff] }
 0x988   :  { %5633 = vst [vmem:[%s11415_s13 + $0x38] sm:$0xff] %v5569_v0  ;;  %5634 = vst [vmem:[%s11415_s13 + $0x40] sm:$0xff] %v5570_v55  ;;  %v5582_v23 = vadd.f32 %v11032_v38, %v10903_v10  ;;  %v5583_v4 = vadd.f32 %v11032_v38, %v10907_v43  ;;  %v5584_v59 = vadd.f32 %v11032_v38, %v10911_v24 }
 0x989   :  { %5635 = vst [vmem:[%s11415_s13 + $0x48] sm:$0xff] %v5571_v53  ;;  %5636 = vst [vmem:[%s11415_s13 + $0x50] sm:$0xff] %v5572_v13  ;;  %v5585_v60 = vadd.f32 %v11032_v38, %v10915_v48  ;;  %v5586_v39 = vadd.f32 %v11032_v38, %v10919_v22  ;;  %v5587_v45 = vadd.f32 %v11032_v38, %v10923_v7  ;;  %v11962_v11 = vld [vmem:[#allocation48_spill] sm:$0xff] }
 0x98a   :  { %5637 = vst [vmem:[%s11415_s13 + $0x58] sm:$0xff] %v5573_v15  ;;  %5638 = vst [vmem:[%s11415_s13 + $0x60] sm:$0xff] %v5574_v16  ;;  %v5588_v56 = vadd.f32 %v11032_v38, %v10927_v21  ;;  %v5589_v57 = vadd.f32 %v11032_v38, %v10931_v63  ;;  %v5590_v10 = vadd.f32 %v11032_v38, %v10935_v46  ;;  %v11963_v55 = vld [vmem:[#allocation49_spill] sm:$0xff] }
 0x98b   :  { %5639 = vst [vmem:[%s11415_s13 + $0x68] sm:$0xff] %v5575_v42  ;;  %5640 = vst [vmem:[%s11415_s13 + $0x70] sm:$0xff] %v5576_v9  ;;  %v5591_v43 = vadd.f32 %v11032_v38, %v10939_v58  ;;  %v5592_v24 = vadd.f32 %v11032_v38, %v10943_v62  ;;  %v5593_v48 = vadd.f32 %v11032_v38, %v10947_v52 }
 0x98c   :  { %5641 = vst [vmem:[%s11415_s13 + $0x78] sm:$0xff] %v5577_v8  ;;  %5642 = vst [vmem:[%s11415_s13 + $0x80] sm:$0xff] %v5578_v1  ;;  %v5594_v22 = vadd.f32 %v11032_v38, %v10951_v2  ;;  %v5595_v7 = vadd.f32 %v11032_v38, %v10955_v49  ;;  %v5596_v21 = vadd.f32 %v11032_v38, %v10959_v6  ;;  %v11964_v13 = vld [vmem:[#allocation50_spill] sm:$0xff] }
 0x98d   :  { %5643 = vst [vmem:[%s11415_s13 + $0x88] sm:$0xff] %v5579_v44  ;;  %5644 = vst [vmem:[%s11415_s13 + $0x90] sm:$0xff] %v5580_v18  ;;  %v5597_v63 = vadd.f32 %v11032_v38, %v10963_v54  ;;  %v5598_v46 = vadd.f32 %v11032_v38, %v10967_v32  ;;  %v5599_v58 = vadd.f32 %v11032_v38, %v10971_v36 }
 0x98e   :  { %5645 = vst [vmem:[%s11415_s13 + $0x98] sm:$0xff] %v5581_v35  ;;  %5646 = vst [vmem:[%s11415_s13 + $0xa0] sm:$0xff] %v5582_v23  ;;  %v5600_v62 = vadd.f32 %v11032_v38, %v10975_v26  ;;  %v5601_v52 = vadd.f32 %v11032_v38, %v10979_v20  ;;  %v5602_v2 = vadd.f32 %v11032_v38, %v10983_v5 }
 0x98f   :  { %5647 = vst [vmem:[%s11415_s13 + $0xa8] sm:$0xff] %v5583_v4  ;;  %5648 = vst [vmem:[%s11415_s13 + $0xb0] sm:$0xff] %v5584_v59  ;;  %v5603_v49 = vadd.f32 %v11032_v38, %v10987_v14  ;;  %v5604_v6 = vadd.f32 %v11032_v38, %v10991_v37  ;;  %v5605_v54 = vadd.f32 %v11032_v38, %v10995_v27  ;;  %v11956_v14 = vld [vmem:[#allocation42_spill] sm:$0xff]  ;;  %v11957_v27 = vld [vmem:[#allocation43_spill] sm:$0xff] }
 0x990   :  { %5649 = vst [vmem:[%s11415_s13 + $0xb8] sm:$0xff] %v5585_v60  ;;  %5650 = vst [vmem:[%s11415_s13 + $0xc0] sm:$0xff] %v5586_v39  ;;  %v5606_v32 = vadd.f32 %v11032_v38, %v10999_v30  ;;  %v5607_v36 = vadd.f32 %v11032_v38, %v11003_v19  ;;  %v5608_v26 = vadd.f32 %v11032_v38, %v11007_v33  ;;  %v11958_v19 = vld [vmem:[#allocation44_spill] sm:$0xff] }
 0x991   :  { %5651 = vst [vmem:[%s11415_s13 + $0xc8] sm:$0xff] %v5587_v45  ;;  %5652 = vst [vmem:[%s11415_s13 + $0xd0] sm:$0xff] %v5588_v56  ;;  %v5609_v20 = vadd.f32 %v11032_v38, %v11011_v12  ;;  %v5610_v5 = vadd.f32 %v11032_v38, %v11015_v3  ;;  %v5611_v37 = vadd.f32 %v11032_v38, %v11956_v14  ;;  %v11959_v12 = vld [vmem:[#allocation45_spill] sm:$0xff] }
 0x992   :  { %5653 = vst [vmem:[%s11415_s13 + $0xd8] sm:$0xff] %v5589_v57  ;;  %5654 = vst [vmem:[%s11415_s13 + $0xe0] sm:$0xff] %v5590_v10  ;;  %v5612_v30 = vadd.f32 %v11032_v38, %v11957_v27  ;;  %v5613_v33 = vadd.f32 %v11032_v38, %v11958_v19  ;;  %v5614_v3 = vadd.f32 %v11032_v38, %v11959_v12 }
 0x993   :  { %5655 = vst [vmem:[%s11415_s13 + $0xe8] sm:$0xff] %v5591_v43  ;;  %5656 = vst [vmem:[%s11415_s13 + $0xf0] sm:$0xff] %v5592_v24  ;;  %v5615_v31 = vadd.f32 %v11032_v38, %v11960_v50  ;;  %v5616_v25 = vadd.f32 %v11032_v38, %v11961_v61  ;;  %v5617_v51 = vadd.f32 %v11032_v38, %v11048_v28 }
 0x994   :  { %5657 = vst [vmem:[%s11415_s13 + $0xf8] sm:$0xff] %v5593_v48  ;;  %5658 = vst [vmem:[%s11415_s13 + $0x100] sm:$0xff] %v5594_v22  ;;  %v5618_v29 = vadd.f32 %v11032_v38, %v11962_v11  ;;  %v5619_v28 = vadd.f32 %v11032_v38, %v11056_v34  ;;  %v5620_v0 = vadd.f32 %v11032_v38, %v11060_v17 }
 0x995   :  { %5659 = vst [vmem:[%s11415_s13 + $0x108] sm:$0xff] %v5595_v7  ;;  %5660 = vst [vmem:[%s11415_s13 + $0x110] sm:$0xff] %v5596_v21  ;;  %v5621_v53 = vadd.f32 %v11032_v38, %v11963_v55  ;;  %v5622_v34 = vadd.f32 %v11032_v38, %v11068_v41  ;;  %v5623_v17 = vadd.f32 %v11032_v38, %v11072_v47 }
 0x996   :  { %5661 = vst [vmem:[%s11415_s13 + $0x118] sm:$0xff] %v5597_v63  ;;  %5662 = vst [vmem:[%s11415_s13 + $0x120] sm:$0xff] %v5598_v46  ;;  %v5624_v15 = vadd.f32 %v11032_v38, %v11964_v13  ;;  %v5625_v16 = vadd.f32 %v11032_v38, %v11080_v40 }
 0x997   :  { %5663 = vst [vmem:[%s11415_s13 + $0x128] sm:$0xff] %v5599_v58  ;;  %5664 = vst [vmem:[%s11415_s13 + $0x130] sm:$0xff] %v5600_v62 }
 0x998   :  { %5665 = vst [vmem:[%s11415_s13 + $0x138] sm:$0xff] %v5601_v52  ;;  %5666 = vst [vmem:[%s11415_s13 + $0x140] sm:$0xff] %v5602_v2 }
 0x999   :  { %5667 = vst [vmem:[%s11415_s13 + $0x148] sm:$0xff] %v5603_v49  ;;  %5668 = vst [vmem:[%s11415_s13 + $0x150] sm:$0xff] %v5604_v6 }
 0x99a   :  { %5669 = vst [vmem:[%s11415_s13 + $0x158] sm:$0xff] %v5605_v54  ;;  %5670 = vst [vmem:[%s11415_s13 + $0x160] sm:$0xff] %v5606_v32 }
 0x99b   :  { %5671 = vst [vmem:[%s11415_s13 + $0x168] sm:$0xff] %v5607_v36  ;;  %5672 = vst [vmem:[%s11415_s13 + $0x170] sm:$0xff] %v5608_v26 }
 0x99c   :  { %5673 = vst [vmem:[%s11415_s13 + $0x178] sm:$0xff] %v5609_v20  ;;  %5674 = vst [vmem:[%s11415_s13 + $0x180] sm:$0xff] %v5610_v5 }
 0x99d   :  { %5675 = vst [vmem:[%s11415_s13 + $0x188] sm:$0xff] %v5611_v37  ;;  %5676 = vst [vmem:[%s11415_s13 + $0x190] sm:$0xff] %v5612_v30 }
 0x99e   :  { %5677 = vst [vmem:[%s11415_s13 + $0x198] sm:$0xff] %v5613_v33  ;;  %5678 = vst [vmem:[%s11415_s13 + $0x1a0] sm:$0xff] %v5614_v3 }
 0x99f   :  { %5679 = vst [vmem:[%s11415_s13 + $0x1a8] sm:$0xff] %v5615_v31  ;;  %5680 = vst [vmem:[%s11415_s13 + $0x1b0] sm:$0xff] %v5616_v25 }
 0x9a0   :  { %5681 = vst [vmem:[%s11415_s13 + $0x1b8] sm:$0xff] %v5617_v51  ;;  %5682 = vst [vmem:[%s11415_s13 + $0x1c0] sm:$0xff] %v5618_v29 }
 0x9a1   :  { %5683 = vst [vmem:[%s11415_s13 + $0x1c8] sm:$0xff] %v5619_v28  ;;  %5684 = vst [vmem:[%s11415_s13 + $0x1d0] sm:$0xff] %v5620_v0 }
 0x9a2   :  { %5685 = vst [vmem:[%s11415_s13 + $0x1d8] sm:$0xff] %v5621_v53  ;;  %5686 = vst [vmem:[%s11415_s13 + $0x1e0] sm:$0xff] %v5622_v34 }
 0x9a3   :  { %5687 = vst [vmem:[%s11415_s13 + $0x1e8] sm:$0xff] %v5623_v17  ;;  %5688 = vst [vmem:[%s11415_s13 + $0x1f0] sm:$0xff] %v5624_v15 }
 0x9a4   :  { %5689 = vst [vmem:[%s11415_s13 + $0x1f8] sm:$0xff] %v5625_v16 }

</bundles_post_ra>
